<compile_context>
chip_gen: v6e
topology: v6e:2x2x1
jax: 0.10.0
libtpu: 0.0.40
codegen_flags: <defaults>
</compile_context>

<pallas_src>
import functools

import numpy as np
import jax
import jax.numpy as jnp
from jax.experimental import pallas as pl
from jax.experimental.pallas import tpu as pltpu

BN_EPS = 1e-5
MXU_DTYPE = jnp.bfloat16   # 3x3-conv matmul operand dtype (f32 accumulation/epilogue)


def _cparams():
    return pltpu.CompilerParams(
        dimension_semantics=("parallel",),
        vmem_limit_bytes=32 * 1024 * 1024,
    )


# ----------------------------------------------------------------------------
# Pallas kernels
# ----------------------------------------------------------------------------
def _conv3x3_bn_relu_kernel(x_ref, w_ref, scale_ref, bias_ref, o_ref, pad_ref, *, H, W):
    # x (1, H, W, Cin) f32; w (9*Cin, Cout) bf16; scale/bias (1, Cout) f32;
    # o (1, H*W, Cout) f32; pad_ref VMEM (H+2, W+2, Cin) f32 scratch.
    Cin = x_ref.shape[3]
    pad_ref[...] = jnp.zeros(pad_ref.shape, pad_ref.dtype)
    pad_ref[1:H + 1, 1:W + 1, :] = x_ref[0]
    xp = pad_ref[...]
    cols = [xp[dy:dy + H, dx:dx + W, :].reshape(H * W, Cin)
            for dy in range(3) for dx in range(3)]
    col = jnp.concatenate(cols, axis=1).astype(w_ref.dtype)      # (H*W, 9*Cin) bf16
    acc = jnp.dot(col, w_ref[...], preferred_element_type=jnp.float32)
    o_ref[0] = jnp.maximum(acc * scale_ref[...] + bias_ref[...], 0.0)


def _resize_bilinear_kernel(x_ref, wh_ref, b_ref, o_ref):
    # x (1, Hin, Win*C) f32; wh (Hout, Hin); b (Win*C, Wout*C); o (1, Hout, Wout*C)
    t = jnp.dot(wh_ref[...], x_ref[0], preferred_element_type=jnp.float32)
    o_ref[0] = jnp.dot(t, b_ref[...], preferred_element_type=jnp.float32)


def _scse_conv_final_kernel(x_ref, w1_ref, b1_ref, w2_ref, b2_ref, ws_ref, bs_ref,
                            wc_ref, scale_ref, bias_ref, wp_ref, bp_ref,
                            next_ref, final_ref, pad_ref, *, H, W):
    # Fused: scSE gating (writes gated x_next) + ConvBnRelu(C->Ch) + 1x1 conv (Ch->1).
    C = x_ref.shape[3]
    x = x_ref[0].reshape(H * W, C)                               # (HW, C) f32
    # -- scSE --
    pooled = jnp.mean(x, axis=0, keepdims=True)                  # (1, C)
    z = jnp.maximum(
        jnp.dot(pooled, w1_ref[...], preferred_element_type=jnp.float32) + b1_ref[...],
        0.0)
    cg = jax.nn.sigmoid(
        jnp.dot(z, w2_ref[...], preferred_element_type=jnp.float32) + b2_ref[...])
    sg = jax.nn.sigmoid(
        jnp.dot(x, ws_ref[...], preferred_element_type=jnp.float32) + bs_ref[...])
    xg = x * cg + x * sg                                         # gated activation
    next_ref[0] = xg                                             # x_next output
    # -- ConvBnRelu on the gated activation (in-kernel zero padding) --
    pad_ref[...] = jnp.zeros(pad_ref.shape, pad_ref.dtype)
    pad_ref[1:H + 1, 1:W + 1, :] = xg.reshape(H, W, C)
    xp = pad_ref[...]
    cols = [xp[dy:dy + H, dx:dx + W, :].reshape(H * W, C)
            for dy in range(3) for dx in range(3)]
    col = jnp.concatenate(cols, axis=1).astype(wc_ref.dtype)     # (HW, 9*C) bf16
    acc = jnp.dot(col, wc_ref[...], preferred_element_type=jnp.float32)
    y = jnp.maximum(acc * scale_ref[...] + bias_ref[...], 0.0)   # (HW, Ch)
    # -- fused 1x1 conv (Ch -> 1) --
    final_ref[0] = jnp.dot(y, wp_ref[...], preferred_element_type=jnp.float32) + bp_ref[...]


def _resize_nearest_1ch_kernel(x_ref, nh_ref, nwt_ref, o_ref):
    # x (1, Hin, Win); nh (Hout, Hin); nwt (Win, Wout); o (1, Hout, Wout)
    t = jnp.dot(nh_ref[...], x_ref[0], preferred_element_type=jnp.float32)
    o_ref[0] = jnp.dot(t, nwt_ref[...], preferred_element_type=jnp.float32)


# ----------------------------------------------------------------------------
# Parameter / interpolation-matrix helpers
# ----------------------------------------------------------------------------
def _fold_bn(conv_b, gamma, beta, mean, var):
    scale = gamma / jnp.sqrt(var + BN_EPS)
    bias = (conv_b - mean) * scale + beta
    return scale, bias


def _conv_weight_matrix(w):
    # (Cout, Cin, 3, 3) -> (9*Cin, Cout), row order (dy, dx, cin); bf16 MXU operand.
    Cout, Cin = w.shape[0], w.shape[1]
    return jnp.transpose(w, (2, 3, 1, 0)).reshape(9 * Cin, Cout).astype(MXU_DTYPE)


def _bilinear_matrix(out_size, in_size):
    # PyTorch Upsample(mode='bilinear', align_corners=False) source-index rule.
    scale = in_size / out_size
    dst = np.arange(out_size, dtype=np.float64)
    src = np.maximum((dst + 0.5) * scale - 0.5, 0.0)
    i0 = np.minimum(np.floor(src).astype(np.int64), in_size - 1)
    i1 = np.minimum(i0 + 1, in_size - 1)
    frac = src - i0
    M = np.zeros((out_size, in_size), dtype=np.float32)
    np.add.at(M, (np.arange(out_size), i0), 1.0 - frac)
    np.add.at(M, (np.arange(out_size), i1), frac)
    return M


def _nearest_matrix(out_size, in_size):
    # PyTorch Upsample(mode='nearest') source-index rule.
    scale = in_size / out_size
    src = np.minimum(np.floor(np.arange(out_size) * scale).astype(np.int64), in_size - 1)
    M = np.zeros((out_size, in_size), dtype=np.float32)
    M[np.arange(out_size), src] = 1.0
    return M


# ----------------------------------------------------------------------------
# Wrappers (NHWC in / NHWC out; all reshapes here are free XLA bitcasts)
# ----------------------------------------------------------------------------
def conv3x3_bn_relu_nhwc(x_nhwc, w, b, gamma, beta, mean, var):
    N, H, W, Cin = x_nhwc.shape
    Cout = w.shape[0]
    scale, bias = _fold_bn(b, gamma, beta, mean, var)
    w9 = _conv_weight_matrix(w)
    out = pl.pallas_call(
        functools.partial(_conv3x3_bn_relu_kernel, H=H, W=W),
        out_shape=jax.ShapeDtypeStruct((N, H * W, Cout), jnp.float32),
        grid=(N,),
        in_specs=[
            pl.BlockSpec((1, H, W, Cin), lambda n: (n, 0, 0, 0)),
            pl.BlockSpec((9 * Cin, Cout), lambda n: (0, 0)),
            pl.BlockSpec((1, Cout), lambda n: (0, 0)),
            pl.BlockSpec((1, Cout), lambda n: (0, 0)),
        ],
        out_specs=pl.BlockSpec((1, H * W, Cout), lambda n: (n, 0, 0)),
        scratch_shapes=[pltpu.VMEM((H + 2, W + 2, Cin), jnp.float32)],
        compiler_params=_cparams(),
    )(x_nhwc, w9, scale.reshape(1, Cout), bias.reshape(1, Cout))
    return out.reshape(N, H, W, Cout)


def resize_bilinear_nhwc(x_nhwc, out_hw):
    N, Hin, Win, C = x_nhwc.shape
    Hout, Wout = out_hw
    wh = jnp.asarray(_bilinear_matrix(Hout, Hin))                       # (Hout, Hin)
    ww = _bilinear_matrix(Wout, Win)                                    # (Wout, Win)
    # Column-interp expanded over channels: B[w*C+c, u*C+c] = Ww[u, w].
    b = jnp.asarray(np.kron(ww.T, np.eye(C, dtype=np.float32)))         # (Win*C, Wout*C)
    x_m = x_nhwc.reshape(N, Hin, Win * C)
    out = pl.pallas_call(
        _resize_bilinear_kernel,
        out_shape=jax.ShapeDtypeStruct((N, Hout, Wout * C), jnp.float32),
        grid=(N,),
        in_specs=[
            pl.BlockSpec((1, Hin, Win * C), lambda n: (n, 0, 0)),
            pl.BlockSpec((Hout, Hin), lambda n: (0, 0)),
            pl.BlockSpec((Win * C, Wout * C), lambda n: (0, 0)),
        ],
        out_specs=pl.BlockSpec((1, Hout, Wout * C), lambda n: (n, 0, 0)),
        compiler_params=_cparams(),
    )(x_m, wh, b)
    return out.reshape(N, Hout, Wout, C)


def scse_conv_final_nhwc(x_nhwc, se, conv, pw):
    # scSE gate (outputs gated x_next) + ConvBnRelu(C->Ch) + 1x1 conv (Ch->1).
    N, H, W, C = x_nhwc.shape
    Cr = se["w1"].shape[0]
    Ch = conv["w"].shape[0]
    scale, bias = _fold_bn(conv["b"], conv["gamma"], conv["beta"], conv["mean"], conv["var"])
    w9 = _conv_weight_matrix(conv["w"])
    x_next_flat, x_final_flat = pl.pallas_call(
        functools.partial(_scse_conv_final_kernel, H=H, W=W),
        out_shape=(jax.ShapeDtypeStruct((N, H * W, C), jnp.float32),
                   jax.ShapeDtypeStruct((N, H * W, 1), jnp.float32)),
        grid=(N,),
        in_specs=[
            pl.BlockSpec((1, H, W, C), lambda n: (n, 0, 0, 0)),
            pl.BlockSpec((C, Cr), lambda n: (0, 0)),
            pl.BlockSpec((1, Cr), lambda n: (0, 0)),
            pl.BlockSpec((Cr, C), lambda n: (0, 0)),
            pl.BlockSpec((1, C), lambda n: (0, 0)),
            pl.BlockSpec((C, 1), lambda n: (0, 0)),
            pl.BlockSpec((1, 1), lambda n: (0, 0)),
            pl.BlockSpec((9 * C, Ch), lambda n: (0, 0)),
            pl.BlockSpec((1, Ch), lambda n: (0, 0)),
            pl.BlockSpec((1, Ch), lambda n: (0, 0)),
            pl.BlockSpec((Ch, 1), lambda n: (0, 0)),
            pl.BlockSpec((1, 1), lambda n: (0, 0)),
        ],
        out_specs=(pl.BlockSpec((1, H * W, C), lambda n: (n, 0, 0)),
                   pl.BlockSpec((1, H * W, 1), lambda n: (n, 0, 0))),
        scratch_shapes=[pltpu.VMEM((H + 2, W + 2, C), jnp.float32)],
        compiler_params=_cparams(),
    )(x_nhwc,
      jnp.transpose(se["w1"]), se["b1"].reshape(1, Cr),
      jnp.transpose(se["w2"]), se["b2"].reshape(1, C),
      jnp.transpose(se["ws"]), se["bs"].reshape(1, 1),
      w9, scale.reshape(1, Ch), bias.reshape(1, Ch),
      jnp.transpose(pw["w"].reshape(1, Ch)), pw["b"].reshape(1, 1))
    return x_next_flat.reshape(N, H, W, C), x_final_flat


def resize_nearest_1ch(x_flat, in_hw, out_hw):
    # x_flat: (N, Hin*Win, 1) single-channel map -> (N, 1, Hout, Wout)
    N = x_flat.shape[0]
    Hin, Win = in_hw
    Hout, Wout = out_hw
    nh = jnp.asarray(_nearest_matrix(Hout, Hin))
    nwt = jnp.asarray(_nearest_matrix(Wout, Win).T)
    x2d = x_flat.reshape(N, Hin, Win)
    out = pl.pallas_call(
        _resize_nearest_1ch_kernel,
        out_shape=jax.ShapeDtypeStruct((N, Hout, Wout), jnp.float32),
        grid=(N,),
        in_specs=[
            pl.BlockSpec((1, Hin, Win), lambda n: (n, 0, 0)),
            pl.BlockSpec((Hout, Hin), lambda n: (0, 0)),
            pl.BlockSpec((Win, Wout), lambda n: (0, 0)),
        ],
        out_specs=pl.BlockSpec((1, Hout, Wout), lambda n: (n, 0, 0)),
        compiler_params=_cparams(),
    )(x2d, nh, nwt)
    return out.reshape(N, 1, Hout, Wout)


# ----------------------------------------------------------------------------
# DecoderBlock: parameters + forward (public API stays NCHW like PyTorch)
# ----------------------------------------------------------------------------
def init_params(key, in_channels, out_channels_next, out_channels_input, reduction=2):
    keys = iter(jax.random.split(key, 40))

    def nrm(shape, s=0.1):
        return s * jax.random.normal(next(keys), shape, jnp.float32)

    def bn(c):
        return dict(gamma=1.0 + nrm((c,)), beta=nrm((c,)), mean=nrm((c,)),
                    var=0.5 + jnp.abs(nrm((c,))))

    cn, ci = out_channels_next, out_channels_input
    cr = max(cn // reduction, 1)
    ch = cn // 2
    params = {
        "conv_next": dict(w=nrm((cn, in_channels, 3, 3)), b=nrm((cn,)), **bn(cn)),
        "se": dict(w1=nrm((cr, cn)), b1=nrm((cr,)), w2=nrm((cn, cr)), b2=nrm((cn,)),
                   ws=nrm((1, cn)), bs=nrm((1,))),
        "final_conv": dict(w=nrm((ch, cn, 3, 3)), b=nrm((ch,)), **bn(ch)),
        "final_1x1": dict(w=nrm((1, ch, 1, 1)), b=nrm((1,))),
        "conv_input": dict(w=nrm((ci, in_channels, 3, 3)), b=nrm((ci,)), **bn(ci)),
    }
    return params


def decoder_block_forward(params, x_nchw, up_size_next, up_size_input):
    # Single layout conversion in; one per returned activation out.
    x = jnp.transpose(x_nchw, (0, 2, 3, 1))                      # NCHW -> NHWC

    p = params["conv_next"]
    xn = conv3x3_bn_relu_nhwc(x, p["w"], p["b"], p["gamma"], p["beta"], p["mean"], p["var"])
    xn = resize_bilinear_nhwc(xn, up_size_next)
    x_next_nhwc, x_final_flat = scse_conv_final_nhwc(
        xn, params["se"], params["final_conv"], params["final_1x1"])
    x_final = resize_nearest_1ch(x_final_flat, up_size_next, up_size_input)

    p = params["conv_input"]
    xu = conv3x3_bn_relu_nhwc(x, p["w"], p["b"], p["gamma"], p["beta"], p["mean"], p["var"])
    xu = resize_bilinear_nhwc(xu, up_size_input)

    x_next = jnp.transpose(x_next_nhwc, (0, 3, 1, 2))            # NHWC -> NCHW
    x_up = jnp.transpose(xu, (0, 3, 1, 2))
    return x_next, x_final, x_up


# ----------------------------------------------------------------------------
# Pure-JAX reference (mirrors the bf16-MXU-operand policy of the kernels)
# ----------------------------------------------------------------------------
def _ref_forward(params, x, up_size_next, up_size_input):
    def conv_bn_relu(x, p):
        y = jax.lax.conv_general_dilated(
            x.astype(MXU_DTYPE), p["w"].astype(MXU_DTYPE), (1, 1), ((1, 1), (1, 1)),
            dimension_numbers=("NCHW", "OIHW", "NCHW"),
            preferred_element_type=jnp.float32)
        y = y + p["b"][None, :, None, None]
        y = (y - p["mean"][None, :, None, None]) * (
            p["gamma"][None, :, None, None] / jnp.sqrt(p["var"][None, :, None, None] + BN_EPS)
        ) + p["beta"][None, :, None, None]
        return jnp.maximum(y, 0.0)

    def resize(x, out_hw, mode):
        Hout, Wout = out_hw
        Hin, Win = x.shape[2], x.shape[3]
        mk = _bilinear_matrix if mode == "bilinear" else _nearest_matrix
        return jnp.einsum("hH,wW,ncHW->nchw",
                          jnp.asarray(mk(Hout, Hin)), jnp.asarray(mk(Wout, Win)), x)

    def se(x, p):
        pooled = x.mean(axis=(2, 3))
        z = jnp.maximum(pooled @ p["w1"].T + p["b1"], 0.0)
        cg = jax.nn.sigmoid(z @ p["w2"].T + p["b2"])
        sg = jax.nn.sigmoid(jnp.einsum("nchw,oc->nohw", x, p["ws"]) + p["bs"][None, :, None, None])
        return x * cg[:, :, None, None] + x * sg

    xn = conv_bn_relu(x, params["conv_next"])
    xn = resize(xn, up_size_next, "bilinear")
    xn = se(xn, params["se"])
    xf = conv_bn_relu(xn, params["final_conv"])
    p1 = params["final_1x1"]
    xf = jax.lax.conv_general_dilated(xf, p1["w"], (1, 1), ((0, 0), (0, 0)),
                                      dimension_numbers=("NCHW", "OIHW", "NCHW"))
    xf = xf + p1["b"][None, :, None, None]
    xf = resize(xf, up_size_input, "nearest")
    xu = conv_bn_relu(x, params["conv_input"])
    xu = resize(xu, up_size_input, "bilinear")
    return xn, xf, xu


if __name__ == "__main__":
    key = jax.random.PRNGKey(0)
    N, Cin, H, W = 2, 4, 8, 8
    out_channels_next, out_channels_input = 8, 4
    up_size_next, up_size_input = (16, 16), (32, 32)

    kp, kx = jax.random.split(key)
    params = init_params(kp, Cin, out_channels_next, out_channels_input)
    x = jax.random.normal(kx, (N, Cin, H, W), jnp.float32)

    fwd = jax.jit(lambda p, xx: decoder_block_forward(p, xx, up_size_next, up_size_input))
    outs = jax.block_until_ready(fwd(params, x))

    refs = _ref_forward(params, x, up_size_next, up_size_input)
    names = ("x_next", "x_final", "x_up")
    for name, o, r in zip(names, outs, refs):
        assert o.shape == r.shape, (name, o.shape, r.shape)
        err = float(jnp.max(jnp.abs(o - r)))
        # bf16 MXU operands in the 3x3 convs => allow small deviation vs the
        # (identically-cast) reference; anything structural would be O(0.1-1).
        assert err < 5e-3, (name, err)

    print("KERNEL_OK")
</pallas_src>

<mosaic_0001>
module attributes {stable_mosaic.version = 11 : i64} {
  func.func @_conv3x3_bn_relu_kernel(%arg0: i32, %arg1: memref<1x8x8x4xf32, #tpu.memory_space<vmem>>, %arg2: memref<36x8xbf16, #tpu.memory_space<vmem>>, %arg3: memref<1x8xf32, #tpu.memory_space<vmem>>, %arg4: memref<1x8xf32, #tpu.memory_space<vmem>>, %arg5: memref<1x64x8xf32, #tpu.memory_space<vmem>>, %arg6: memref<10x10x4xf32, #tpu.memory_space<vmem>>) attributes {dimension_semantics = [#tpu.dimension_semantics<parallel>], iteration_bounds = array<i64: 2>, scalar_prefetch = 0 : i64, scratch_operands = 1 : i64, tpu.core_type = #tpu.core_type<tc>, window_params = [{transform_indices = @transform_0, window_bounds = array<i64: 1, 8, 8, 4>}, {pipeline_mode = #tpu.pipeline_mode<synchronous>, transform_indices = @transform_1, window_bounds = array<i64: 36, 8>}, {pipeline_mode = #tpu.pipeline_mode<synchronous>, transform_indices = @transform_2, window_bounds = array<i64: 1, 8>}, {pipeline_mode = #tpu.pipeline_mode<synchronous>, transform_indices = @transform_3, window_bounds = array<i64: 1, 8>}, {transform_indices = @transform_4, window_bounds = array<i64: 1, 64, 8>}]} {
    %cst = arith.constant 0.000000e+00 : f32
    %0 = vector.broadcast %cst : f32 to vector<10x10x4xf32>
    %c0 = arith.constant 0 : index
    %c0_0 = arith.constant 0 : index
    %c0_1 = arith.constant 0 : index
    %1 = vector.load %arg6[%c0, %c0_0, %c0_1] : memref<10x10x4xf32, #tpu.memory_space<vmem>>, vector<10x10x4xf32>
    tpu.vector_store %arg6[%c0, %c0_0, %c0_1], %0 {strides = array<i32>} : memref<10x10x4xf32, #tpu.memory_space<vmem>>, vector<10x10x4xf32>,
    %c0_2 = arith.constant 0 : index
    %c0_3 = arith.constant 0 : index
    %c0_4 = arith.constant 0 : index
    %c0_5 = arith.constant 0 : index
    %2 = vector.load %arg1[%c0_2, %c0_3, %c0_4, %c0_5] : memref<1x8x8x4xf32, #tpu.memory_space<vmem>>, vector<1x8x8x4xf32>
    %3 = vector.shape_cast %2 : vector<1x8x8x4xf32> to vector<8x8x4xf32>
    %c1 = arith.constant 1 : index
    %c1_6 = arith.constant 1 : index
    %c0_7 = arith.constant 0 : index
    %4 = vector.load %arg6[%c1, %c1_6, %c0_7] : memref<10x10x4xf32, #tpu.memory_space<vmem>>, vector<8x8x4xf32>
    tpu.vector_store %arg6[%c1, %c1_6, %c0_7], %3 {strides = array<i32>} : memref<10x10x4xf32, #tpu.memory_space<vmem>>, vector<8x8x4xf32>,
    %c0_8 = arith.constant 0 : index
    %c0_9 = arith.constant 0 : index
    %c0_10 = arith.constant 0 : index
    %5 = vector.load %arg6[%c0_8, %c0_9, %c0_10] : memref<10x10x4xf32, #tpu.memory_space<vmem>>, vector<10x10x4xf32>
    %6 = vector.extract_strided_slice %5 {offsets = [0, 0, 0], sizes = [8, 8, 4], strides = [1, 1, 1]} : vector<10x10x4xf32> to vector<8x8x4xf32>
    %7 = vector.shape_cast %6 : vector<8x8x4xf32> to vector<64x4xf32>
    %8 = vector.extract_strided_slice %5 {offsets = [0, 1, 0], sizes = [8, 8, 4], strides = [1, 1, 1]} : vector<10x10x4xf32> to vector<8x8x4xf32>
    %9 = vector.shape_cast %8 : vector<8x8x4xf32> to vector<64x4xf32>
    %10 = vector.extract_strided_slice %5 {offsets = [0, 2, 0], sizes = [8, 8, 4], strides = [1, 1, 1]} : vector<10x10x4xf32> to vector<8x8x4xf32>
    %11 = vector.shape_cast %10 : vector<8x8x4xf32> to vector<64x4xf32>
    %12 = vector.extract_strided_slice %5 {offsets = [1, 0, 0], sizes = [8, 8, 4], strides = [1, 1, 1]} : vector<10x10x4xf32> to vector<8x8x4xf32>
    %13 = vector.shape_cast %12 : vector<8x8x4xf32> to vector<64x4xf32>
    %14 = vector.extract_strided_slice %5 {offsets = [1, 1, 0], sizes = [8, 8, 4], strides = [1, 1, 1]} : vector<10x10x4xf32> to vector<8x8x4xf32>
    %15 = vector.shape_cast %14 : vector<8x8x4xf32> to vector<64x4xf32>
    %16 = vector.extract_strided_slice %5 {offsets = [1, 2, 0], sizes = [8, 8, 4], strides = [1, 1, 1]} : vector<10x10x4xf32> to vector<8x8x4xf32>
    %17 = vector.shape_cast %16 : vector<8x8x4xf32> to vector<64x4xf32>
    %18 = vector.extract_strided_slice %5 {offsets = [2, 0, 0], sizes = [8, 8, 4], strides = [1, 1, 1]} : vector<10x10x4xf32> to vector<8x8x4xf32>
    %19 = vector.shape_cast %18 : vector<8x8x4xf32> to vector<64x4xf32>
    %20 = vector.extract_strided_slice %5 {offsets = [2, 1, 0], sizes = [8, 8, 4], strides = [1, 1, 1]} : vector<10x10x4xf32> to vector<8x8x4xf32>
    %21 = vector.shape_cast %20 : vector<8x8x4xf32> to vector<64x4xf32>
    %22 = vector.extract_strided_slice %5 {offsets = [2, 2, 0], sizes = [8, 8, 4], strides = [1, 1, 1]} : vector<10x10x4xf32> to vector<8x8x4xf32>
    %23 = vector.shape_cast %22 : vector<8x8x4xf32> to vector<64x4xf32>
    %24 = tpu.concatenate %7, %9, %11, %13, %15, %17, %19, %21, %23 in 1 : vector<64x4xf32>, vector<64x4xf32>, vector<64x4xf32>, vector<64x4xf32>, vector<64x4xf32>, vector<64x4xf32>, vector<64x4xf32>, vector<64x4xf32>, vector<64x4xf32> -> vector<64x36xf32>
    %25 = arith.truncf %24 : vector<64x36xf32> to vector<64x36xbf16>
    %c0_11 = arith.constant 0 : index
    %c0_12 = arith.constant 0 : index
    %26 = vector.load %arg2[%c0_11, %c0_12] : memref<36x8xbf16, #tpu.memory_space<vmem>>, vector<36x8xbf16>
    %cst_13 = arith.constant dense<0.000000e+00> : vector<64x8xf32>
    %27 = tpu.matmul %25, %26, %cst_13 {dimension_numbers = #tpu.dot_dimension_numbers<[1], [0], [0], [1], [0, 0, 1, 1], [], []>} : vector<64x36xbf16>, vector<36x8xbf16>, vector<64x8xf32> -> vector<64x8xf32>
    %c0_14 = arith.constant 0 : index
    %c0_15 = arith.constant 0 : index
    %28 = vector.load %arg3[%c0_14, %c0_15] : memref<1x8xf32, #tpu.memory_space<vmem>>, vector<1x8xf32>
    %29 = vector.broadcast %28 : vector<1x8xf32> to vector<64x8xf32>
    %30 = arith.mulf %27, %29 : vector<64x8xf32>
    %c0_16 = arith.constant 0 : index
    %c0_17 = arith.constant 0 : index
    %31 = vector.load %arg4[%c0_16, %c0_17] : memref<1x8xf32, #tpu.memory_space<vmem>>, vector<1x8xf32>
    %32 = vector.broadcast %31 : vector<1x8xf32> to vector<64x8xf32>
    %33 = arith.addf %30, %32 : vector<64x8xf32>
    %cst_18 = arith.constant 0.000000e+00 : f32
    %34 = vector.broadcast %cst_18 : f32 to vector<64x8xf32>
    %35 = arith.maximumf %33, %34 : vector<64x8xf32>
    %c0_19 = arith.constant 0 : index
    %c0_20 = arith.constant 0 : index
    %c0_21 = arith.constant 0 : index
    %36 = vector.load %arg5[%c0_19, %c0_20, %c0_21] : memref<1x64x8xf32, #tpu.memory_space<vmem>>, vector<1x64x8xf32>
    %37 = vector.shape_cast %36 : vector<1x64x8xf32> to vector<64x8xf32>
    %38 = vector.shape_cast %35 : vector<64x8xf32> to vector<1x64x8xf32>
    tpu.vector_store %arg5[%c0_19, %c0_20, %c0_21], %38 {strides = array<i32>} : memref<1x64x8xf32, #tpu.memory_space<vmem>>, vector<1x64x8xf32>,
    return
  }
  func.func @transform_0(%arg0: i32) -> (i32, i32, i32, i32) {
    %c0_i32 = arith.constant 0 : i32
    %c0_i32_0 = arith.constant 0 : i32
    %c0_i32_1 = arith.constant 0 : i32
    %c0_i32_2 = arith.constant 0 : i32
    return %arg0, %c0_i32, %c0_i32_0, %c0_i32_1 : i32, i32, i32, i32
  }
  func.func @transform_1(%arg0: i32) -> (i32, i32) {
    %c0_i32 = arith.constant 0 : i32
    %c0_i32_0 = arith.constant 0 : i32
    %c0_i32_1 = arith.constant 0 : i32
    return %c0_i32, %c0_i32_0 : i32, i32
  }
  func.func @transform_2(%arg0: i32) -> (i32, i32) {
    %c0_i32 = arith.constant 0 : i32
    %c0_i32_0 = arith.constant 0 : i32
    %c0_i32_1 = arith.constant 0 : i32
    return %c0_i32, %c0_i32_0 : i32, i32
  }
  func.func @transform_3(%arg0: i32) -> (i32, i32) {
    %c0_i32 = arith.constant 0 : i32
    %c0_i32_0 = arith.constant 0 : i32
    %c0_i32_1 = arith.constant 0 : i32
    return %c0_i32, %c0_i32_0 : i32, i32
  }
  func.func @transform_4(%arg0: i32) -> (i32, i32, i32) {
    %c0_i32 = arith.constant 0 : i32
    %c0_i32_0 = arith.constant 0 : i32
    %c0_i32_1 = arith.constant 0 : i32
    return %arg0, %c0_i32, %c0_i32_0 : i32, i32, i32
  }
}

module attributes {stable_mosaic.version = 11 : i64} {
  func.func @_resize_bilinear_kernel(%arg0: i32, %arg1: memref<1x8x64xf32, #tpu.memory_space<vmem>>, %arg2: memref<16x8xf32, #tpu.memory_space<vmem>>, %arg3: memref<64x128xf32, #tpu.memory_space<vmem>>, %arg4: memref<1x16x128xf32, #tpu.memory_space<vmem>>) attributes {dimension_semantics = [#tpu.dimension_semantics<parallel>], iteration_bounds = array<i64: 2>, scalar_prefetch = 0 : i64, scratch_operands = 0 : i64, tpu.core_type = #tpu.core_type<tc>, window_params = [{transform_indices = @transform_0, window_bounds = array<i64: 1, 8, 64>}, {pipeline_mode = #tpu.pipeline_mode<synchronous>, transform_indices = @transform_1, window_bounds = array<i64: 16, 8>}, {pipeline_mode = #tpu.pipeline_mode<synchronous>, transform_indices = @transform_2, window_bounds = array<i64: 64, 128>}, {transform_indices = @transform_3, window_bounds = array<i64: 1, 16, 128>}]} {
    %c0 = arith.constant 0 : index
    %c0_0 = arith.constant 0 : index
    %0 = vector.load %arg2[%c0, %c0_0] : memref<16x8xf32, #tpu.memory_space<vmem>>, vector<16x8xf32>
    %c0_1 = arith.constant 0 : index
    %c0_2 = arith.constant 0 : index
    %c0_3 = arith.constant 0 : index
    %1 = vector.load %arg1[%c0_1, %c0_2, %c0_3] : memref<1x8x64xf32, #tpu.memory_space<vmem>>, vector<1x8x64xf32>
    %2 = vector.shape_cast %1 : vector<1x8x64xf32> to vector<8x64xf32>
    %cst = arith.constant dense<0.000000e+00> : vector<16x64xf32>
    %3 = tpu.matmul %0, %2, %cst {dimension_numbers = #tpu.dot_dimension_numbers<[1], [0], [0], [1], [0, 0, 1, 1], [], []>} : vector<16x8xf32>, vector<8x64xf32>, vector<16x64xf32> -> vector<16x64xf32>
    %c0_4 = arith.constant 0 : index
    %c0_5 = arith.constant 0 : index
    %4 = vector.load %arg3[%c0_4, %c0_5] : memref<64x128xf32, #tpu.memory_space<vmem>>, vector<64x128xf32>
    %cst_6 = arith.constant dense<0.000000e+00> : vector<16x128xf32>
    %5 = tpu.matmul %3, %4, %cst_6 {dimension_numbers = #tpu.dot_dimension_numbers<[1], [0], [0], [1], [0, 0, 1, 1], [], []>} : vector<16x64xf32>, vector<64x128xf32>, vector<16x128xf32> -> vector<16x128xf32>
    %c0_7 = arith.constant 0 : index
    %c0_8 = arith.constant 0 : index
    %c0_9 = arith.constant 0 : index
    %6 = vector.load %arg4[%c0_7, %c0_8, %c0_9] : memref<1x16x128xf32, #tpu.memory_space<vmem>>, vector<1x16x128xf32>
    %7 = vector.shape_cast %6 : vector<1x16x128xf32> to vector<16x128xf32>
    %8 = vector.shape_cast %5 : vector<16x128xf32> to vector<1x16x128xf32>
    tpu.vector_store %arg4[%c0_7, %c0_8, %c0_9], %8 {strides = array<i32>} : memref<1x16x128xf32, #tpu.memory_space<vmem>>, vector<1x16x128xf32>,
    return
  }
  func.func @transform_0(%arg0: i32) -> (i32, i32, i32) {
    %c0_i32 = arith.constant 0 : i32
    %c0_i32_0 = arith.constant 0 : i32
    %c0_i32_1 = arith.constant 0 : i32
    return %arg0, %c0_i32, %c0_i32_0 : i32, i32, i32
  }
  func.func @transform_1(%arg0: i32) -> (i32, i32) {
    %c0_i32 = arith.constant 0 : i32
    %c0_i32_0 = arith.constant 0 : i32
    %c0_i32_1 = arith.constant 0 : i32
    return %c0_i32, %c0_i32_0 : i32, i32
  }
  func.func @transform_2(%arg0: i32) -> (i32, i32) {
    %c0_i32 = arith.constant 0 : i32
    %c0_i32_0 = arith.constant 0 : i32
    %c0_i32_1 = arith.constant 0 : i32
    return %c0_i32, %c0_i32_0 : i32, i32
  }
  func.func @transform_3(%arg0: i32) -> (i32, i32, i32) {
    %c0_i32 = arith.constant 0 : i32
    %c0_i32_0 = arith.constant 0 : i32
    %c0_i32_1 = arith.constant 0 : i32
    return %arg0, %c0_i32, %c0_i32_0 : i32, i32, i32
  }
}

module attributes {stable_mosaic.version = 11 : i64} {
  func.func @_scse_conv_final_kernel(%arg0: i32, %arg1: memref<1x16x16x8xf32, #tpu.memory_space<vmem>>, %arg2: memref<8x4xf32, #tpu.memory_space<vmem>>, %arg3: memref<1x4xf32, #tpu.memory_space<vmem>>, %arg4: memref<4x8xf32, #tpu.memory_space<vmem>>, %arg5: memref<1x8xf32, #tpu.memory_space<vmem>>, %arg6: memref<8x1xf32, #tpu.memory_space<vmem>>, %arg7: memref<1x1xf32, #tpu.memory_space<vmem>>, %arg8: memref<72x4xbf16, #tpu.memory_space<vmem>>, %arg9: memref<1x4xf32, #tpu.memory_space<vmem>>, %arg10: memref<1x4xf32, #tpu.memory_space<vmem>>, %arg11: memref<4x1xf32, #tpu.memory_space<vmem>>, %arg12: memref<1x1xf32, #tpu.memory_space<vmem>>, %arg13: memref<1x256x8xf32, #tpu.memory_space<vmem>>, %arg14: memref<1x256x1xf32, #tpu.memory_space<vmem>>, %arg15: memref<18x18x8xf32, #tpu.memory_space<vmem>>) attributes {dimension_semantics = [#tpu.dimension_semantics<parallel>], iteration_bounds = array<i64: 2>, scalar_prefetch = 0 : i64, scratch_operands = 1 : i64, tpu.core_type = #tpu.core_type<tc>, window_params = [{transform_indices = @transform_0, window_bounds = array<i64: 1, 16, 16, 8>}, {pipeline_mode = #tpu.pipeline_mode<synchronous>, transform_indices = @transform_1, window_bounds = array<i64: 8, 4>}, {pipeline_mode = #tpu.pipeline_mode<synchronous>, transform_indices = @transform_2, window_bounds = array<i64: 1, 4>}, {pipeline_mode = #tpu.pipeline_mode<synchronous>, transform_indices = @transform_3, window_bounds = array<i64: 4, 8>}, {pipeline_mode = #tpu.pipeline_mode<synchronous>, transform_indices = @transform_4, window_bounds = array<i64: 1, 8>}, {pipeline_mode = #tpu.pipeline_mode<synchronous>, transform_indices = @transform_5, window_bounds = array<i64: 8, 1>}, {pipeline_mode = #tpu.pipeline_mode<synchronous>, transform_indices = @transform_6, window_bounds = array<i64: 1, 1>}, {pipeline_mode = #tpu.pipeline_mode<synchronous>, transform_indices = @transform_7, window_bounds = array<i64: 72, 4>}, {pipeline_mode = #tpu.pipeline_mode<synchronous>, transform_indices = @transform_8, window_bounds = array<i64: 1, 4>}, {pipeline_mode = #tpu.pipeline_mode<synchronous>, transform_indices = @transform_9, window_bounds = array<i64: 1, 4>}, {pipeline_mode = #tpu.pipeline_mode<synchronous>, transform_indices = @transform_10, window_bounds = array<i64: 4, 1>}, {pipeline_mode = #tpu.pipeline_mode<synchronous>, transform_indices = @transform_11, window_bounds = array<i64: 1, 1>}, {transform_indices = @transform_12, window_bounds = array<i64: 1, 256, 8>}, {transform_indices = @transform_13, window_bounds = array<i64: 1, 256, 1>}]} {
    %c0 = arith.constant 0 : index
    %c0_0 = arith.constant 0 : index
    %c0_1 = arith.constant 0 : index
    %c0_2 = arith.constant 0 : index
    %0 = vector.load %arg1[%c0, %c0_0, %c0_1, %c0_2] : memref<1x16x16x8xf32, #tpu.memory_space<vmem>>, vector<1x16x16x8xf32>
    %1 = vector.shape_cast %0 : vector<1x16x16x8xf32> to vector<16x16x8xf32>
    %2 = vector.shape_cast %1 : vector<16x16x8xf32> to vector<256x8xf32>
    %cst = arith.constant dense<0.000000e+00> : vector<8xf32>
    %3 = vector.multi_reduction <add>, %2, %cst [0] : vector<256x8xf32> to vector<8xf32>
    %4 = vector.shape_cast %3 : vector<8xf32> to vector<1x8xf32>
    %cst_3 = arith.constant 2.560000e+02 : f32
    %5 = vector.broadcast %cst_3 : f32 to vector<1x8xf32>
    %6 = arith.divf %4, %5 : vector<1x8xf32>
    %c0_4 = arith.constant 0 : index
    %c0_5 = arith.constant 0 : index
    %7 = vector.load %arg2[%c0_4, %c0_5] : memref<8x4xf32, #tpu.memory_space<vmem>>, vector<8x4xf32>
    %cst_6 = arith.constant dense<0.000000e+00> : vector<1x4xf32>
    %8 = tpu.matmul %6, %7, %cst_6 {dimension_numbers = #tpu.dot_dimension_numbers<[1], [0], [0], [1], [0, 0, 1, 1], [], []>} : vector<1x8xf32>, vector<8x4xf32>, vector<1x4xf32> -> vector<1x4xf32>
    %c0_7 = arith.constant 0 : index
    %c0_8 = arith.constant 0 : index
    %9 = vector.load %arg3[%c0_7, %c0_8] : memref<1x4xf32, #tpu.memory_space<vmem>>, vector<1x4xf32>
    %10 = arith.addf %8, %9 : vector<1x4xf32>
    %cst_9 = arith.constant 0.000000e+00 : f32
    %11 = vector.broadcast %cst_9 : f32 to vector<1x4xf32>
    %12 = arith.maximumf %10, %11 : vector<1x4xf32>
    %c0_10 = arith.constant 0 : index
    %c0_11 = arith.constant 0 : index
    %13 = vector.load %arg4[%c0_10, %c0_11] : memref<4x8xf32, #tpu.memory_space<vmem>>, vector<4x8xf32>
    %cst_12 = arith.constant dense<0.000000e+00> : vector<1x8xf32>
    %14 = tpu.matmul %12, %13, %cst_12 {dimension_numbers = #tpu.dot_dimension_numbers<[1], [0], [0], [1], [0, 0, 1, 1], [], []>} : vector<1x4xf32>, vector<4x8xf32>, vector<1x8xf32> -> vector<1x8xf32>
    %c0_13 = arith.constant 0 : index
    %c0_14 = arith.constant 0 : index
    %15 = vector.load %arg5[%c0_13, %c0_14] : memref<1x8xf32, #tpu.memory_space<vmem>>, vector<1x8xf32>
    %16 = arith.addf %14, %15 : vector<1x8xf32>
    %17 = arith.negf %16 : vector<1x8xf32>
    %18 = math.exp %17 : vector<1x8xf32>
    %cst_15 = arith.constant 1.000000e+00 : f32
    %19 = vector.broadcast %cst_15 : f32 to vector<1x8xf32>
    %20 = arith.addf %19, %18 : vector<1x8xf32>
    %21 = arith.divf %19, %20 : vector<1x8xf32>
    %c0_16 = arith.constant 0 : index
    %c0_17 = arith.constant 0 : index
    %22 = vector.load %arg6[%c0_16, %c0_17] : memref<8x1xf32, #tpu.memory_space<vmem>>, vector<8x1xf32>
    %cst_18 = arith.constant dense<0.000000e+00> : vector<256x1xf32>
    %23 = tpu.matmul %2, %22, %cst_18 {dimension_numbers = #tpu.dot_dimension_numbers<[1], [0], [0], [1], [0, 0, 1, 1], [], []>} : vector<256x8xf32>, vector<8x1xf32>, vector<256x1xf32> -> vector<256x1xf32>
    %c0_19 = arith.constant 0 : index
    %c0_20 = arith.constant 0 : index
    %24 = vector.load %arg7[%c0_19, %c0_20] : memref<1x1xf32, #tpu.memory_space<vmem>>, vector<1x1xf32>
    %25 = vector.broadcast %24 : vector<1x1xf32> to vector<256x1xf32>
    %26 = arith.addf %23, %25 : vector<256x1xf32>
    %27 = arith.negf %26 : vector<256x1xf32>
    %28 = math.exp %27 : vector<256x1xf32>
    %cst_21 = arith.constant 1.000000e+00 : f32
    %29 = vector.broadcast %cst_21 : f32 to vector<256x1xf32>
    %30 = arith.addf %29, %28 : vector<256x1xf32>
    %31 = arith.divf %29, %30 : vector<256x1xf32>
    %32 = vector.broadcast %21 : vector<1x8xf32> to vector<256x8xf32>
    %33 = arith.mulf %2, %32 : vector<256x8xf32>
    %34 = vector.broadcast %31 : vector<256x1xf32> to vector<256x8xf32>
    %35 = arith.mulf %2, %34 : vector<256x8xf32>
    %36 = arith.addf %33, %35 : vector<256x8xf32>
    %c0_22 = arith.constant 0 : index
    %c0_23 = arith.constant 0 : index
    %c0_24 = arith.constant 0 : index
    %37 = vector.load %arg13[%c0_22, %c0_23, %c0_24] : memref<1x256x8xf32, #tpu.memory_space<vmem>>, vector<1x256x8xf32>
    %38 = vector.shape_cast %37 : vector<1x256x8xf32> to vector<256x8xf32>
    %39 = vector.shape_cast %36 : vector<256x8xf32> to vector<1x256x8xf32>
    tpu.vector_store %arg13[%c0_22, %c0_23, %c0_24], %39 {strides = array<i32>} : memref<1x256x8xf32, #tpu.memory_space<vmem>>, vector<1x256x8xf32>,
    %cst_25 = arith.constant 0.000000e+00 : f32
    %40 = vector.broadcast %cst_25 : f32 to vector<18x18x8xf32>
    %c0_26 = arith.constant 0 : index
    %c0_27 = arith.constant 0 : index
    %c0_28 = arith.constant 0 : index
    %41 = vector.load %arg15[%c0_26, %c0_27, %c0_28] : memref<18x18x8xf32, #tpu.memory_space<vmem>>, vector<18x18x8xf32>
    tpu.vector_store %arg15[%c0_26, %c0_27, %c0_28], %40 {strides = array<i32>} : memref<18x18x8xf32, #tpu.memory_space<vmem>>, vector<18x18x8xf32>,
    %42 = vector.shape_cast %36 : vector<256x8xf32> to vector<16x16x8xf32>
    %c1 = arith.constant 1 : index
    %c1_29 = arith.constant 1 : index
    %c0_30 = arith.constant 0 : index
    %43 = vector.load %arg15[%c1, %c1_29, %c0_30] : memref<18x18x8xf32, #tpu.memory_space<vmem>>, vector<16x16x8xf32>
    tpu.vector_store %arg15[%c1, %c1_29, %c0_30], %42 {strides = array<i32>} : memref<18x18x8xf32, #tpu.memory_space<vmem>>, vector<16x16x8xf32>,
    %c0_31 = arith.constant 0 : index
    %c0_32 = arith.constant 0 : index
    %c0_33 = arith.constant 0 : index
    %44 = vector.load %arg15[%c0_31, %c0_32, %c0_33] : memref<18x18x8xf32, #tpu.memory_space<vmem>>, vector<18x18x8xf32>
    %45 = vector.extract_strided_slice %44 {offsets = [0, 0, 0], sizes = [16, 16, 8], strides = [1, 1, 1]} : vector<18x18x8xf32> to vector<16x16x8xf32>
    %46 = vector.shape_cast %45 : vector<16x16x8xf32> to vector<256x8xf32>
    %47 = vector.extract_strided_slice %44 {offsets = [0, 1, 0], sizes = [16, 16, 8], strides = [1, 1, 1]} : vector<18x18x8xf32> to vector<16x16x8xf32>
    %48 = vector.shape_cast %47 : vector<16x16x8xf32> to vector<256x8xf32>
    %49 = vector.extract_strided_slice %44 {offsets = [0, 2, 0], sizes = [16, 16, 8], strides = [1, 1, 1]} : vector<18x18x8xf32> to vector<16x16x8xf32>
    %50 = vector.shape_cast %49 : vector<16x16x8xf32> to vector<256x8xf32>
    %51 = vector.extract_strided_slice %44 {offsets = [1, 0, 0], sizes = [16, 16, 8], strides = [1, 1, 1]} : vector<18x18x8xf32> to vector<16x16x8xf32>
    %52 = vector.shape_cast %51 : vector<16x16x8xf32> to vector<256x8xf32>
    %53 = vector.extract_strided_slice %44 {offsets = [1, 1, 0], sizes = [16, 16, 8], strides = [1, 1, 1]} : vector<18x18x8xf32> to vector<16x16x8xf32>
    %54 = vector.shape_cast %53 : vector<16x16x8xf32> to vector<256x8xf32>
    %55 = vector.extract_strided_slice %44 {offsets = [1, 2, 0], sizes = [16, 16, 8], strides = [1, 1, 1]} : vector<18x18x8xf32> to vector<16x16x8xf32>
    %56 = vector.shape_cast %55 : vector<16x16x8xf32> to vector<256x8xf32>
    %57 = vector.extract_strided_slice %44 {offsets = [2, 0, 0], sizes = [16, 16, 8], strides = [1, 1, 1]} : vector<18x18x8xf32> to vector<16x16x8xf32>
    %58 = vector.shape_cast %57 : vector<16x16x8xf32> to vector<256x8xf32>
    %59 = vector.extract_strided_slice %44 {offsets = [2, 1, 0], sizes = [16, 16, 8], strides = [1, 1, 1]} : vector<18x18x8xf32> to vector<16x16x8xf32>
    %60 = vector.shape_cast %59 : vector<16x16x8xf32> to vector<256x8xf32>
    %61 = vector.extract_strided_slice %44 {offsets = [2, 2, 0], sizes = [16, 16, 8], strides = [1, 1, 1]} : vector<18x18x8xf32> to vector<16x16x8xf32>
    %62 = vector.shape_cast %61 : vector<16x16x8xf32> to vector<256x8xf32>
    %63 = tpu.concatenate %46, %48, %50, %52, %54, %56, %58, %60, %62 in 1 : vector<256x8xf32>, vector<256x8xf32>, vector<256x8xf32>, vector<256x8xf32>, vector<256x8xf32>, vector<256x8xf32>, vector<256x8xf32>, vector<256x8xf32>, vector<256x8xf32> -> vector<256x72xf32>
    %64 = arith.truncf %63 : vector<256x72xf32> to vector<256x72xbf16>
    %c0_34 = arith.constant 0 : index
    %c0_35 = arith.constant 0 : index
    %65 = vector.load %arg8[%c0_34, %c0_35] : memref<72x4xbf16, #tpu.memory_space<vmem>>, vector<72x4xbf16>
    %cst_36 = arith.constant dense<0.000000e+00> : vector<256x4xf32>
    %66 = tpu.matmul %64, %65, %cst_36 {dimension_numbers = #tpu.dot_dimension_numbers<[1], [0], [0], [1], [0, 0, 1, 1], [], []>} : vector<256x72xbf16>, vector<72x4xbf16>, vector<256x4xf32> -> vector<256x4xf32>
    %c0_37 = arith.constant 0 : index
    %c0_38 = arith.constant 0 : index
    %67 = vector.load %arg9[%c0_37, %c0_38] : memref<1x4xf32, #tpu.memory_space<vmem>>, vector<1x4xf32>
    %68 = vector.broadcast %67 : vector<1x4xf32> to vector<256x4xf32>
    %69 = arith.mulf %66, %68 : vector<256x4xf32>
    %c0_39 = arith.constant 0 : index
    %c0_40 = arith.constant 0 : index
    %70 = vector.load %arg10[%c0_39, %c0_40] : memref<1x4xf32, #tpu.memory_space<vmem>>, vector<1x4xf32>
    %71 = vector.broadcast %70 : vector<1x4xf32> to vector<256x4xf32>
    %72 = arith.addf %69, %71 : vector<256x4xf32>
    %cst_41 = arith.constant 0.000000e+00 : f32
    %73 = vector.broadcast %cst_41 : f32 to vector<256x4xf32>
    %74 = arith.maximumf %72, %73 : vector<256x4xf32>
    %c0_42 = arith.constant 0 : index
    %c0_43 = arith.constant 0 : index
    %75 = vector.load %arg11[%c0_42, %c0_43] : memref<4x1xf32, #tpu.memory_space<vmem>>, vector<4x1xf32>
    %cst_44 = arith.constant dense<0.000000e+00> : vector<256x1xf32>
    %76 = tpu.matmul %74, %75, %cst_44 {dimension_numbers = #tpu.dot_dimension_numbers<[1], [0], [0], [1], [0, 0, 1, 1], [], []>} : vector<256x4xf32>, vector<4x1xf32>, vector<256x1xf32> -> vector<256x1xf32>
    %c0_45 = arith.constant 0 : index
    %c0_46 = arith.constant 0 : index
    %77 = vector.load %arg12[%c0_45, %c0_46] : memref<1x1xf32, #tpu.memory_space<vmem>>, vector<1x1xf32>
    %78 = vector.broadcast %77 : vector<1x1xf32> to vector<256x1xf32>
    %79 = arith.addf %76, %78 : vector<256x1xf32>
    %c0_47 = arith.constant 0 : index
    %c0_48 = arith.constant 0 : index
    %c0_49 = arith.constant 0 : index
    %80 = vector.load %arg14[%c0_47, %c0_48, %c0_49] : memref<1x256x1xf32, #tpu.memory_space<vmem>>, vector<1x256x1xf32>
    %81 = vector.shape_cast %80 : vector<1x256x1xf32> to vector<256x1xf32>
    %82 = vector.shape_cast %79 : vector<256x1xf32> to vector<1x256x1xf32>
    tpu.vector_store %arg14[%c0_47, %c0_48, %c0_49], %82 {strides = array<i32>} : memref<1x256x1xf32, #tpu.memory_space<vmem>>, vector<1x256x1xf32>,
    return
  }
  func.func @transform_0(%arg0: i32) -> (i32, i32, i32, i32) {
    %c0_i32 = arith.constant 0 : i32
    %c0_i32_0 = arith.constant 0 : i32
    %c0_i32_1 = arith.constant 0 : i32
    %c0_i32_2 = arith.constant 0 : i32
    return %arg0, %c0_i32, %c0_i32_0, %c0_i32_1 : i32, i32, i32, i32
  }
  func.func @transform_1(%arg0: i32) -> (i32, i32) {
    %c0_i32 = arith.constant 0 : i32
    %c0_i32_0 = arith.constant 0 : i32
    %c0_i32_1 = arith.constant 0 : i32
    return %c0_i32, %c0_i32_0 : i32, i32
  }
  func.func @transform_2(%arg0: i32) -> (i32, i32) {
    %c0_i32 = arith.constant 0 : i32
    %c0_i32_0 = arith.constant 0 : i32
    %c0_i32_1 = arith.constant 0 : i32
    return %c0_i32, %c0_i32_0 : i32, i32
  }
  func.func @transform_3(%arg0: i32) -> (i32, i32) {
    %c0_i32 = arith.constant 0 : i32
    %c0_i32_0 = arith.constant 0 : i32
    %c0_i32_1 = arith.constant 0 : i32
    return %c0_i32, %c0_i32_0 : i32, i32
  }
  func.func @transform_4(%arg0: i32) -> (i32, i32) {
    %c0_i32 = arith.constant 0 : i32
    %c0_i32_0 = arith.constant 0 : i32
    %c0_i32_1 = arith.constant 0 : i32
    return %c0_i32, %c0_i32_0 : i32, i32
  }
  func.func @transform_5(%arg0: i32) -> (i32, i32) {
    %c0_i32 = arith.constant 0 : i32
    %c0_i32_0 = arith.constant 0 : i32
    %c0_i32_1 = arith.constant 0 : i32
    return %c0_i32, %c0_i32_0 : i32, i32
  }
  func.func @transform_6(%arg0: i32) -> (i32, i32) {
    %c0_i32 = arith.constant 0 : i32
    %c0_i32_0 = arith.constant 0 : i32
    %c0_i32_1 = arith.constant 0 : i32
    return %c0_i32, %c0_i32_0 : i32, i32
  }
  func.func @transform_7(%arg0: i32) -> (i32, i32) {
    %c0_i32 = arith.constant 0 : i32
    %c0_i32_0 = arith.constant 0 : i32
    %c0_i32_1 = arith.constant 0 : i32
    return %c0_i32, %c0_i32_0 : i32, i32
  }
  func.func @transform_8(%arg0: i32) -> (i32, i32) {
    %c0_i32 = arith.constant 0 : i32
    %c0_i32_0 = arith.constant 0 : i32
    %c0_i32_1 = arith.constant 0 : i32
    return %c0_i32, %c0_i32_0 : i32, i32
  }
  func.func @transform_9(%arg0: i32) -> (i32, i32) {
    %c0_i32 = arith.constant 0 : i32
    %c0_i32_0 = arith.constant 0 : i32
    %c0_i32_1 = arith.constant 0 : i32
    return %c0_i32, %c0_i32_0 : i32, i32
  }
  func.func @transform_10(%arg0: i32) -> (i32, i32) {
    %c0_i32 = arith.constant 0 : i32
    %c0_i32_0 = arith.constant 0 : i32
    %c0_i32_1 = arith.constant 0 : i32
    return %c0_i32, %c0_i32_0 : i32, i32
  }
  func.func @transform_11(%arg0: i32) -> (i32, i32) {
    %c0_i32 = arith.constant 0 : i32
    %c0_i32_0 = arith.constant 0 : i32
    %c0_i32_1 = arith.constant 0 : i32
    return %c0_i32, %c0_i32_0 : i32, i32
  }
  func.func @transform_12(%arg0: i32) -> (i32, i32, i32) {
    %c0_i32 = arith.constant 0 : i32
    %c0_i32_0 = arith.constant 0 : i32
    %c0_i32_1 = arith.constant 0 : i32
    return %arg0, %c0_i32, %c0_i32_0 : i32, i32, i32
  }
  func.func @transform_13(%arg0: i32) -> (i32, i32, i32) {
    %c0_i32 = arith.constant 0 : i32
    %c0_i32_0 = arith.constant 0 : i32
    %c0_i32_1 = arith.constant 0 : i32
    return %arg0, %c0_i32, %c0_i32_0 : i32, i32, i32
  }
}

module attributes {stable_mosaic.version = 11 : i64} {
  func.func @_resize_nearest_1ch_kernel(%arg0: i32, %arg1: memref<1x16x16xf32, #tpu.memory_space<vmem>>, %arg2: memref<32x16xf32, #tpu.memory_space<vmem>>, %arg3: memref<16x32xf32, #tpu.memory_space<vmem>>, %arg4: memref<1x32x32xf32, #tpu.memory_space<vmem>>) attributes {dimension_semantics = [#tpu.dimension_semantics<parallel>], iteration_bounds = array<i64: 2>, scalar_prefetch = 0 : i64, scratch_operands = 0 : i64, tpu.core_type = #tpu.core_type<tc>, window_params = [{transform_indices = @transform_0, window_bounds = array<i64: 1, 16, 16>}, {pipeline_mode = #tpu.pipeline_mode<synchronous>, transform_indices = @transform_1, window_bounds = array<i64: 32, 16>}, {pipeline_mode = #tpu.pipeline_mode<synchronous>, transform_indices = @transform_2, window_bounds = array<i64: 16, 32>}, {transform_indices = @transform_3, window_bounds = array<i64: 1, 32, 32>}]} {
    %c0 = arith.constant 0 : index
    %c0_0 = arith.constant 0 : index
    %0 = vector.load %arg2[%c0, %c0_0] : memref<32x16xf32, #tpu.memory_space<vmem>>, vector<32x16xf32>
    %c0_1 = arith.constant 0 : index
    %c0_2 = arith.constant 0 : index
    %c0_3 = arith.constant 0 : index
    %1 = vector.load %arg1[%c0_1, %c0_2, %c0_3] : memref<1x16x16xf32, #tpu.memory_space<vmem>>, vector<1x16x16xf32>
    %2 = vector.shape_cast %1 : vector<1x16x16xf32> to vector<16x16xf32>
    %cst = arith.constant dense<0.000000e+00> : vector<32x16xf32>
    %3 = tpu.matmul %0, %2, %cst {dimension_numbers = #tpu.dot_dimension_numbers<[1], [0], [0], [1], [0, 0, 1, 1], [], []>} : vector<32x16xf32>, vector<16x16xf32>, vector<32x16xf32> -> vector<32x16xf32>
    %c0_4 = arith.constant 0 : index
    %c0_5 = arith.constant 0 : index
    %4 = vector.load %arg3[%c0_4, %c0_5] : memref<16x32xf32, #tpu.memory_space<vmem>>, vector<16x32xf32>
    %cst_6 = arith.constant dense<0.000000e+00> : vector<32x32xf32>
    %5 = tpu.matmul %3, %4, %cst_6 {dimension_numbers = #tpu.dot_dimension_numbers<[1], [0], [0], [1], [0, 0, 1, 1], [], []>} : vector<32x16xf32>, vector<16x32xf32>, vector<32x32xf32> -> vector<32x32xf32>
    %c0_7 = arith.constant 0 : index
    %c0_8 = arith.constant 0 : index
    %c0_9 = arith.constant 0 : index
    %6 = vector.load %arg4[%c0_7, %c0_8, %c0_9] : memref<1x32x32xf32, #tpu.memory_space<vmem>>, vector<1x32x32xf32>
    %7 = vector.shape_cast %6 : vector<1x32x32xf32> to vector<32x32xf32>
    %8 = vector.shape_cast %5 : vector<32x32xf32> to vector<1x32x32xf32>
    tpu.vector_store %arg4[%c0_7, %c0_8, %c0_9], %8 {strides = array<i32>} : memref<1x32x32xf32, #tpu.memory_space<vmem>>, vector<1x32x32xf32>,
    return
  }
  func.func @transform_0(%arg0: i32) -> (i32, i32, i32) {
    %c0_i32 = arith.constant 0 : i32
    %c0_i32_0 = arith.constant 0 : i32
    %c0_i32_1 = arith.constant 0 : i32
    return %arg0, %c0_i32, %c0_i32_0 : i32, i32, i32
  }
  func.func @transform_1(%arg0: i32) -> (i32, i32) {
    %c0_i32 = arith.constant 0 : i32
    %c0_i32_0 = arith.constant 0 : i32
    %c0_i32_1 = arith.constant 0 : i32
    return %c0_i32, %c0_i32_0 : i32, i32
  }
  func.func @transform_2(%arg0: i32) -> (i32, i32) {
    %c0_i32 = arith.constant 0 : i32
    %c0_i32_0 = arith.constant 0 : i32
    %c0_i32_1 = arith.constant 0 : i32
    return %c0_i32, %c0_i32_0 : i32, i32
  }
  func.func @transform_3(%arg0: i32) -> (i32, i32, i32) {
    %c0_i32 = arith.constant 0 : i32
    %c0_i32_0 = arith.constant 0 : i32
    %c0_i32_1 = arith.constant 0 : i32
    return %arg0, %c0_i32, %c0_i32_0 : i32, i32, i32
  }
}

module attributes {stable_mosaic.version = 11 : i64} {
  func.func @_conv3x3_bn_relu_kernel(%arg0: i32, %arg1: memref<1x8x8x4xf32, #tpu.memory_space<vmem>>, %arg2: memref<36x4xbf16, #tpu.memory_space<vmem>>, %arg3: memref<1x4xf32, #tpu.memory_space<vmem>>, %arg4: memref<1x4xf32, #tpu.memory_space<vmem>>, %arg5: memref<1x64x4xf32, #tpu.memory_space<vmem>>, %arg6: memref<10x10x4xf32, #tpu.memory_space<vmem>>) attributes {dimension_semantics = [#tpu.dimension_semantics<parallel>], iteration_bounds = array<i64: 2>, scalar_prefetch = 0 : i64, scratch_operands = 1 : i64, tpu.core_type = #tpu.core_type<tc>, window_params = [{transform_indices = @transform_0, window_bounds = array<i64: 1, 8, 8, 4>}, {pipeline_mode = #tpu.pipeline_mode<synchronous>, transform_indices = @transform_1, window_bounds = array<i64: 36, 4>}, {pipeline_mode = #tpu.pipeline_mode<synchronous>, transform_indices = @transform_2, window_bounds = array<i64: 1, 4>}, {pipeline_mode = #tpu.pipeline_mode<synchronous>, transform_indices = @transform_3, window_bounds = array<i64: 1, 4>}, {transform_indices = @transform_4, window_bounds = array<i64: 1, 64, 4>}]} {
    %cst = arith.constant 0.000000e+00 : f32
    %0 = vector.broadcast %cst : f32 to vector<10x10x4xf32>
    %c0 = arith.constant 0 : index
    %c0_0 = arith.constant 0 : index
    %c0_1 = arith.constant 0 : index
    %1 = vector.load %arg6[%c0, %c0_0, %c0_1] : memref<10x10x4xf32, #tpu.memory_space<vmem>>, vector<10x10x4xf32>
    tpu.vector_store %arg6[%c0, %c0_0, %c0_1], %0 {strides = array<i32>} : memref<10x10x4xf32, #tpu.memory_space<vmem>>, vector<10x10x4xf32>,
    %c0_2 = arith.constant 0 : index
    %c0_3 = arith.constant 0 : index
    %c0_4 = arith.constant 0 : index
    %c0_5 = arith.constant 0 : index
    %2 = vector.load %arg1[%c0_2, %c0_3, %c0_4, %c0_5] : memref<1x8x8x4xf32, #tpu.memory_space<vmem>>, vector<1x8x8x4xf32>
    %3 = vector.shape_cast %2 : vector<1x8x8x4xf32> to vector<8x8x4xf32>
    %c1 = arith.constant 1 : index
    %c1_6 = arith.constant 1 : index
    %c0_7 = arith.constant 0 : index
    %4 = vector.load %arg6[%c1, %c1_6, %c0_7] : memref<10x10x4xf32, #tpu.memory_space<vmem>>, vector<8x8x4xf32>
    tpu.vector_store %arg6[%c1, %c1_6, %c0_7], %3 {strides = array<i32>} : memref<10x10x4xf32, #tpu.memory_space<vmem>>, vector<8x8x4xf32>,
    %c0_8 = arith.constant 0 : index
    %c0_9 = arith.constant 0 : index
    %c0_10 = arith.constant 0 : index
    %5 = vector.load %arg6[%c0_8, %c0_9, %c0_10] : memref<10x10x4xf32, #tpu.memory_space<vmem>>, vector<10x10x4xf32>
    %6 = vector.extract_strided_slice %5 {offsets = [0, 0, 0], sizes = [8, 8, 4], strides = [1, 1, 1]} : vector<10x10x4xf32> to vector<8x8x4xf32>
    %7 = vector.shape_cast %6 : vector<8x8x4xf32> to vector<64x4xf32>
    %8 = vector.extract_strided_slice %5 {offsets = [0, 1, 0], sizes = [8, 8, 4], strides = [1, 1, 1]} : vector<10x10x4xf32> to vector<8x8x4xf32>
    %9 = vector.shape_cast %8 : vector<8x8x4xf32> to vector<64x4xf32>
    %10 = vector.extract_strided_slice %5 {offsets = [0, 2, 0], sizes = [8, 8, 4], strides = [1, 1, 1]} : vector<10x10x4xf32> to vector<8x8x4xf32>
    %11 = vector.shape_cast %10 : vector<8x8x4xf32> to vector<64x4xf32>
    %12 = vector.extract_strided_slice %5 {offsets = [1, 0, 0], sizes = [8, 8, 4], strides = [1, 1, 1]} : vector<10x10x4xf32> to vector<8x8x4xf32>
    %13 = vector.shape_cast %12 : vector<8x8x4xf32> to vector<64x4xf32>
    %14 = vector.extract_strided_slice %5 {offsets = [1, 1, 0], sizes = [8, 8, 4], strides = [1, 1, 1]} : vector<10x10x4xf32> to vector<8x8x4xf32>
    %15 = vector.shape_cast %14 : vector<8x8x4xf32> to vector<64x4xf32>
    %16 = vector.extract_strided_slice %5 {offsets = [1, 2, 0], sizes = [8, 8, 4], strides = [1, 1, 1]} : vector<10x10x4xf32> to vector<8x8x4xf32>
    %17 = vector.shape_cast %16 : vector<8x8x4xf32> to vector<64x4xf32>
    %18 = vector.extract_strided_slice %5 {offsets = [2, 0, 0], sizes = [8, 8, 4], strides = [1, 1, 1]} : vector<10x10x4xf32> to vector<8x8x4xf32>
    %19 = vector.shape_cast %18 : vector<8x8x4xf32> to vector<64x4xf32>
    %20 = vector.extract_strided_slice %5 {offsets = [2, 1, 0], sizes = [8, 8, 4], strides = [1, 1, 1]} : vector<10x10x4xf32> to vector<8x8x4xf32>
    %21 = vector.shape_cast %20 : vector<8x8x4xf32> to vector<64x4xf32>
    %22 = vector.extract_strided_slice %5 {offsets = [2, 2, 0], sizes = [8, 8, 4], strides = [1, 1, 1]} : vector<10x10x4xf32> to vector<8x8x4xf32>
    %23 = vector.shape_cast %22 : vector<8x8x4xf32> to vector<64x4xf32>
    %24 = tpu.concatenate %7, %9, %11, %13, %15, %17, %19, %21, %23 in 1 : vector<64x4xf32>, vector<64x4xf32>, vector<64x4xf32>, vector<64x4xf32>, vector<64x4xf32>, vector<64x4xf32>, vector<64x4xf32>, vector<64x4xf32>, vector<64x4xf32> -> vector<64x36xf32>
    %25 = arith.truncf %24 : vector<64x36xf32> to vector<64x36xbf16>
    %c0_11 = arith.constant 0 : index
    %c0_12 = arith.constant 0 : index
    %26 = vector.load %arg2[%c0_11, %c0_12] : memref<36x4xbf16, #tpu.memory_space<vmem>>, vector<36x4xbf16>
    %cst_13 = arith.constant dense<0.000000e+00> : vector<64x4xf32>
    %27 = tpu.matmul %25, %26, %cst_13 {dimension_numbers = #tpu.dot_dimension_numbers<[1], [0], [0], [1], [0, 0, 1, 1], [], []>} : vector<64x36xbf16>, vector<36x4xbf16>, vector<64x4xf32> -> vector<64x4xf32>
    %c0_14 = arith.constant 0 : index
    %c0_15 = arith.constant 0 : index
    %28 = vector.load %arg3[%c0_14, %c0_15] : memref<1x4xf32, #tpu.memory_space<vmem>>, vector<1x4xf32>
    %29 = vector.broadcast %28 : vector<1x4xf32> to vector<64x4xf32>
    %30 = arith.mulf %27, %29 : vector<64x4xf32>
    %c0_16 = arith.constant 0 : index
    %c0_17 = arith.constant 0 : index
    %31 = vector.load %arg4[%c0_16, %c0_17] : memref<1x4xf32, #tpu.memory_space<vmem>>, vector<1x4xf32>
    %32 = vector.broadcast %31 : vector<1x4xf32> to vector<64x4xf32>
    %33 = arith.addf %30, %32 : vector<64x4xf32>
    %cst_18 = arith.constant 0.000000e+00 : f32
    %34 = vector.broadcast %cst_18 : f32 to vector<64x4xf32>
    %35 = arith.maximumf %33, %34 : vector<64x4xf32>
    %c0_19 = arith.constant 0 : index
    %c0_20 = arith.constant 0 : index
    %c0_21 = arith.constant 0 : index
    %36 = vector.load %arg5[%c0_19, %c0_20, %c0_21] : memref<1x64x4xf32, #tpu.memory_space<vmem>>, vector<1x64x4xf32>
    %37 = vector.shape_cast %36 : vector<1x64x4xf32> to vector<64x4xf32>
    %38 = vector.shape_cast %35 : vector<64x4xf32> to vector<1x64x4xf32>
    tpu.vector_store %arg5[%c0_19, %c0_20, %c0_21], %38 {strides = array<i32>} : memref<1x64x4xf32, #tpu.memory_space<vmem>>, vector<1x64x4xf32>,
    return
  }
  func.func @transform_0(%arg0: i32) -> (i32, i32, i32, i32) {
    %c0_i32 = arith.constant 0 : i32
    %c0_i32_0 = arith.constant 0 : i32
    %c0_i32_1 = arith.constant 0 : i32
    %c0_i32_2 = arith.constant 0 : i32
    return %arg0, %c0_i32, %c0_i32_0, %c0_i32_1 : i32, i32, i32, i32
  }
  func.func @transform_1(%arg0: i32) -> (i32, i32) {
    %c0_i32 = arith.constant 0 : i32
    %c0_i32_0 = arith.constant 0 : i32
    %c0_i32_1 = arith.constant 0 : i32
    return %c0_i32, %c0_i32_0 : i32, i32
  }
  func.func @transform_2(%arg0: i32) -> (i32, i32) {
    %c0_i32 = arith.constant 0 : i32
    %c0_i32_0 = arith.constant 0 : i32
    %c0_i32_1 = arith.constant 0 : i32
    return %c0_i32, %c0_i32_0 : i32, i32
  }
  func.func @transform_3(%arg0: i32) -> (i32, i32) {
    %c0_i32 = arith.constant 0 : i32
    %c0_i32_0 = arith.constant 0 : i32
    %c0_i32_1 = arith.constant 0 : i32
    return %c0_i32, %c0_i32_0 : i32, i32
  }
  func.func @transform_4(%arg0: i32) -> (i32, i32, i32) {
    %c0_i32 = arith.constant 0 : i32
    %c0_i32_0 = arith.constant 0 : i32
    %c0_i32_1 = arith.constant 0 : i32
    return %arg0, %c0_i32, %c0_i32_0 : i32, i32, i32
  }
}

module attributes {stable_mosaic.version = 11 : i64} {
  func.func @_resize_bilinear_kernel(%arg0: i32, %arg1: memref<1x8x32xf32, #tpu.memory_space<vmem>>, %arg2: memref<32x8xf32, #tpu.memory_space<vmem>>, %arg3: memref<32x128xf32, #tpu.memory_space<vmem>>, %arg4: memref<1x32x128xf32, #tpu.memory_space<vmem>>) attributes {dimension_semantics = [#tpu.dimension_semantics<parallel>], iteration_bounds = array<i64: 2>, scalar_prefetch = 0 : i64, scratch_operands = 0 : i64, tpu.core_type = #tpu.core_type<tc>, window_params = [{transform_indices = @transform_0, window_bounds = array<i64: 1, 8, 32>}, {pipeline_mode = #tpu.pipeline_mode<synchronous>, transform_indices = @transform_1, window_bounds = array<i64: 32, 8>}, {pipeline_mode = #tpu.pipeline_mode<synchronous>, transform_indices = @transform_2, window_bounds = array<i64: 32, 128>}, {transform_indices = @transform_3, window_bounds = array<i64: 1, 32, 128>}]} {
    %c0 = arith.constant 0 : index
    %c0_0 = arith.constant 0 : index
    %0 = vector.load %arg2[%c0, %c0_0] : memref<32x8xf32, #tpu.memory_space<vmem>>, vector<32x8xf32>
    %c0_1 = arith.constant 0 : index
    %c0_2 = arith.constant 0 : index
    %c0_3 = arith.constant 0 : index
    %1 = vector.load %arg1[%c0_1, %c0_2, %c0_3] : memref<1x8x32xf32, #tpu.memory_space<vmem>>, vector<1x8x32xf32>
    %2 = vector.shape_cast %1 : vector<1x8x32xf32> to vector<8x32xf32>
    %cst = arith.constant dense<0.000000e+00> : vector<32x32xf32>
    %3 = tpu.matmul %0, %2, %cst {dimension_numbers = #tpu.dot_dimension_numbers<[1], [0], [0], [1], [0, 0, 1, 1], [], []>} : vector<32x8xf32>, vector<8x32xf32>, vector<32x32xf32> -> vector<32x32xf32>
    %c0_4 = arith.constant 0 : index
    %c0_5 = arith.constant 0 : index
    %4 = vector.load %arg3[%c0_4, %c0_5] : memref<32x128xf32, #tpu.memory_space<vmem>>, vector<32x128xf32>
    %cst_6 = arith.constant dense<0.000000e+00> : vector<32x128xf32>
    %5 = tpu.matmul %3, %4, %cst_6 {dimension_numbers = #tpu.dot_dimension_numbers<[1], [0], [0], [1], [0, 0, 1, 1], [], []>} : vector<32x32xf32>, vector<32x128xf32>, vector<32x128xf32> -> vector<32x128xf32>
    %c0_7 = arith.constant 0 : index
    %c0_8 = arith.constant 0 : index
    %c0_9 = arith.constant 0 : index
    %6 = vector.load %arg4[%c0_7, %c0_8, %c0_9] : memref<1x32x128xf32, #tpu.memory_space<vmem>>, vector<1x32x128xf32>
    %7 = vector.shape_cast %6 : vector<1x32x128xf32> to vector<32x128xf32>
    %8 = vector.shape_cast %5 : vector<32x128xf32> to vector<1x32x128xf32>
    tpu.vector_store %arg4[%c0_7, %c0_8, %c0_9], %8 {strides = array<i32>} : memref<1x32x128xf32, #tpu.memory_space<vmem>>, vector<1x32x128xf32>,
    return
  }
  func.func @transform_0(%arg0: i32) -> (i32, i32, i32) {
    %c0_i32 = arith.constant 0 : i32
    %c0_i32_0 = arith.constant 0 : i32
    %c0_i32_1 = arith.constant 0 : i32
    return %arg0, %c0_i32, %c0_i32_0 : i32, i32, i32
  }
  func.func @transform_1(%arg0: i32) -> (i32, i32) {
    %c0_i32 = arith.constant 0 : i32
    %c0_i32_0 = arith.constant 0 : i32
    %c0_i32_1 = arith.constant 0 : i32
    return %c0_i32, %c0_i32_0 : i32, i32
  }
  func.func @transform_2(%arg0: i32) -> (i32, i32) {
    %c0_i32 = arith.constant 0 : i32
    %c0_i32_0 = arith.constant 0 : i32
    %c0_i32_1 = arith.constant 0 : i32
    return %c0_i32, %c0_i32_0 : i32, i32
  }
  func.func @transform_3(%arg0: i32) -> (i32, i32, i32) {
    %c0_i32 = arith.constant 0 : i32
    %c0_i32_0 = arith.constant 0 : i32
    %c0_i32_1 = arith.constant 0 : i32
    return %arg0, %c0_i32, %c0_i32_0 : i32, i32, i32
  }
}

</mosaic_0001>

<bundles_post_ra>
// kernel: _lambda_.7
= control target key start
LH: loop header
LB: loop body
LE: loop exit
PB: predicated region body
PF: predicated region fallthrough
CT: control target
= control target key end

     0   :  { %s488_s12 = smov 0   ;;  %s541_s0 = inlined_call_operand.vmem [shape: f32[2,8,64], index: 0, kind: input, shape index: {}]   ;;  %s542_s1 = inlined_call_operand.vmem [shape: f32[16,8], index: 1, kind: input, shape index: {}]   ;;  %s543_s2 = inlined_call_operand.vmem [shape: f32[64,128], index: 2, kind: input, shape index: {}]   ;;  %s544_s3 = inlined_call_operand.vmem [shape: f32[2,16,128], index: 3, kind: output, shape index: {}]  }
   0x1 LB: > { %s400_s13 = sadd.s32 4294967295, %s466_s12   ;;  %p404_p0 = scmp.ge.s32.totalorder %s466_s12, 1  ;;  %s466_s12 = sphi %s488_s12, %s13_s12  }
   0x2   : > { %p136_p1 = scmp.lt.s32.totalorder %s466_s12, 3 }
   0x4   : > { %p137_p2 = pnand %p404_p0, %p136_p1 }
   0x5   : > { %p159_p3 = scmp.lt.s32.totalorder (!%p137_p2), %s400_s13, 1 }
   0x6   : > { %140 = sbr.rel (%p137_p2) target bundleno = 409 (0x199), region = 32 }
   0xb   : > { %v168_v0 = vld [vmem:[%s542_s1] sm:$0xff]  ;;  %vm171_vm0 = vcmask 64512   ;;  %v260_v1 = vld [vmem:[%s543_s2 + $0x38] sm:$0xff]  ;;  %v259_v2 = vld [vmem:[%s543_s2 + $0x30] sm:$0xff]  ;;  %s546_s13 = smov (!%p159_p3, %s400_s13), 1  ;;  %vm261_vm1 = vcmask 523264  }
   0xc   : > { %430 = vmatprep.mubr.msk.f32.mxu0 %vm171_vm0, %v168_v0  ;;  %433 = vmatprep.subr.mxu1 %v260_v1  ;;  %v258_v3 = vld [vmem:[%s543_s2 + $0x28] sm:$0xff]  ;;  %s405_s22 = sshll.u32 %s546_s13, 3  ;;  %v257_v4 = vld [vmem:[%s543_s2 + $0x20] sm:$0xff]  ;;  %v256_v7 = vld [vmem:[%s543_s2 + $0x18] sm:$0xff]  ;;  %s414_s11 = sshll.u32 %s546_s13, 4 }
   0xd   : > { %434 = vmatpush3.msra.mxu1 %v260_v1  ;;  %s162_s27 = scalar_lea.vmem %s541_s0, %s405_s22  ;;  %v169_v6 = vld [vmem:[%s542_s1 + $0x8] sm:$0xff]  ;;  %v255_v8 = vld [vmem:[%s543_s2 + $0x10] sm:$0xff]  ;;  %v253_v10 = vld [vmem:[%s543_s2] sm:$0xff]  ;;  %s167_s16 = scalar_lea.vmem %s544_s3, %s414_s11 }
   0xe   : > { %435 = vmatprep.subr.mxu1 %v259_v2  ;;  %v170_v5 = vld [vmem:[%s162_s27] sm:$0xff]  ;;  %v254_v9 = vld [vmem:[%s543_s2 + $0x8] sm:$0xff] }
   0xf   : > { %436 = vmatpush3.msra.mxu1 %v259_v2  ;;  %428 = vmatprep.subr.mxu0 %v170_v5 }
  0x10   : > { %437 = vmatprep.subr.mxu1 %v258_v3  ;;  %429 = vmatpush3.msra.mxu0 %v170_v5 }
  0x11   : > { %438 = vmatpush3.msra.mxu1 %v258_v3  ;;  %431 = vmatmul.mubr.msk.f32.vlgmr.msra.gmra.mxu0 %vm171_vm0, %v169_v6 }
  0x12   : > { %439 = vmatprep.subr.mxu1 %v257_v4 }
  0x13   : > { %440 = vmatpush3.msra.mxu1 %v257_v4 }
  0x14   : > { %441 = vmatprep.subr.mxu1 %v256_v7 }
  0x15   : > { %442 = vmatpush3.msra.mxu1 %v256_v7 }
  0x16   : > { %443 = vmatprep.subr.mxu1 %v255_v8 }
  0x17   : > { %444 = vmatpush3.msra.mxu1 %v255_v8 }
  0x18   : > { %445 = vmatprep.subr.mxu1 %v254_v9 }
  0x19   : > { %446 = vmatpush3.msra.mxu1 %v254_v9 }
  0x1a   : > { %447 = vmatprep.subr.mxu1 %v253_v10 }
  0x1b   : > { %448 = vmatpush3.msra.mxu1 %v253_v10 }
  0xd1   : > { %v432_v11 = vpop.f32.mrf.mxu0 }
  0xd3   : > { %v244_v12 = vpop.f32.mrf.mxu0 }
  0xd4   : > { %449 = vmatprep.mubr.msk.f32.mxu1 %vm261_vm1, %v244_v12 }
  0xd5   : > { %450 = vmatmul.mubr.msk.f32.vlgmr.msra.gmra.mxu1 %vm261_vm1, %v432_v11 }
 0x195   : > { %v451_v13 = vpop.f32.mrf.mxu1 }
 0x196   : > { %344 = vst [vmem:[%s167_s16 + $0x8] sm:$0xff] %v451_v13 }
 0x197   : > { %v334_v14 = vpop.f32.mrf.mxu1 }
 0x198   : > { %343 = vst [vmem:[%s167_s16] sm:$0xff] %v334_v14 }
 0x199 PF: > { %s13_s12 = sadd.s32 1, %s466_s12  }
 0x19a   : > { %p10_p4 = scmp.ge.s32.totalorder %s13_s12, 4  }
 0x19c   :  { %12 = sbr.rel (!%p10_p4) target bundleno = 1 (0x1), region = 62 }

// kernel: _lambda_.6
= control target key start
LH: loop header
LB: loop body
LE: loop exit
PB: predicated region body
PF: predicated region fallthrough
CT: control target
= control target key end

     0   :  { %s1083_s15 = smov 0   ;;  %s1415_s0 = inlined_call_operand.vmem [shape: f32[2,8,8,4], index: 0, kind: input, shape index: {}]   ;;  %s1416_s1 = inlined_call_operand.vmem [shape: bf16[36,8], index: 1, kind: input, shape index: {}]   ;;  %s1417_s2 = inlined_call_operand.vmem [shape: f32[1,8], index: 2, kind: input, shape index: {}]   ;;  %s1418_s3 = inlined_call_operand.vmem [shape: f32[1,8], index: 3, kind: input, shape index: {}]   ;;  %s1419_s4 = inlined_call_operand.vmem [shape: f32[2,64,8], index: 4, kind: output, shape index: {}]  }
   0x1 LB: > { %s810_s16 = sadd.s32 4294967295, %s1047_s15   ;;  %p814_p0 = scmp.ge.s32.totalorder %s1047_s15, 1  ;;  %s1047_s15 = sphi %s1083_s15, %s14_s15  }
   0x2   : > { %p162_p1 = scmp.lt.s32.totalorder %s1047_s15, 3 }
   0x4   : > { %p163_p2 = pnand %p814_p0, %p162_p1 }
   0x5   : > { %p1091_p3 = scmp.lt.s32.totalorder (!%p163_p2), %s810_s16, 1  ;;  %s1050_s22 = smov (!%p163_p2), 12  }
   0x6   : > { %166 = sbr.rel (%p163_p2) target bundleno = 420 (0x1a4), region = 36  ;;  %s1051_s23 = smov (!%p163_p2), 4  }
   0x7   : > { %s1052_s24 = smov (!%p163_p2), 8   ;;  %s1053_s25 = smov (!%p163_p2), 16  }
   0x8   : > { %s1054_s26 = smov (!%p163_p2), 20   ;;  %s1055_s29 = smov (!%p163_p2), 24  }
   0x9   : > { %s1056_s8 = smov (!%p163_p2), 28   ;;  %s1057_s9 = smov (!%p163_p2), 32  }
   0xb   : > { %vm199_vm0 = vcmask 31744   ;;  %vm201_vm1 = vcmask 25600   ;;  %v1049_v0 = vmov 0.0   ;;  %s1422_s16 = smov (!%p1091_p3, %s810_s16), 1  ;;  %vm274_vm2 = vcmask 1046528  }
   0xc   : > { %211 = vst.msk [vmem:[#allocation2 + $0x50] sm:$0xff] %vm199_vm0, %v1049_v0  ;;  %213 = vst.msk [vmem:[#allocation2 + $0x60] sm:$0xff] %vm199_vm0, %v1049_v0  ;;  %s830_s18 = sshll.u32 %s1422_s16, 6  ;;  %vm299_vm3 = vcmask 1045504   ;;  %vm640_vm4 = vcmask 1041408   ;;  %vm540_vm5 = vcmask 64512  }
   0xd   : > { %212 = vst.msk [vmem:[#allocation2 + $0x58] sm:$0x3] %vm201_vm1, %v1049_v0  ;;  %214 = vst.msk [vmem:[#allocation2 + $0x68] sm:$0x3] %vm201_vm1, %v1049_v0  ;;  %s192_s21 = scalar_lea.vmem %s1415_s0, %s830_s18  ;;  %vm549_vm6 = vcmask 97280   ;;  %vm558_vm7 = vcmask 130048   ;;  %s1394_s19 = scalar_lea.vmem %s1419_s4, %s830_s18 }
   0xe   : > { %200 = vst.msk [vmem:[#allocation2] sm:$0xff] %vm199_vm0, %v1049_v0  ;;  %203 = vst.msk [vmem:[#allocation2 + $0x10] sm:$0xff] %vm199_vm0, %v1049_v0  ;;  %v225_v1 = vld [vmem:[%s192_s21 + $0x20] sm:$0xff]  ;;  %v226_v2 = vld [vmem:[%s192_s21 + $0x28] sm:$0xff]  ;;  %vm567_vm8 = vcmask 162816   ;;  %vm576_vm9 = vcmask 195584  }
   0xf   : > { %202 = vst.msk [vmem:[#allocation2 + $0x8] sm:$0x3] %vm201_vm1, %v1049_v0  ;;  %204 = vst.msk [vmem:[#allocation2 + $0x18] sm:$0x3] %vm201_vm1, %v1049_v0  ;;  %v221_v3 = vld [vmem:[%s192_s21] sm:$0xff]  ;;  %v222_v4 = vld [vmem:[%s192_s21 + $0x8] sm:$0xff] }
  0x10   : > { %205 = vst.msk [vmem:[#allocation2 + $0x20] sm:$0xff] %vm199_vm0, %v1049_v0  ;;  %207 = vst.msk [vmem:[#allocation2 + $0x30] sm:$0xff] %vm199_vm0, %v1049_v0  ;;  %v223_v5 = vld [vmem:[%s192_s21 + $0x10] sm:$0xff]  ;;  %v224_v7 = vld [vmem:[%s192_s21 + $0x18] sm:$0xff]  ;;  %vm585_vm10 = vcmask 228352   ;;  %vm594_vm11 = vcmask 261120  }
  0x11   : > { %206 = vst.msk [vmem:[#allocation2 + $0x28] sm:$0x3] %vm201_vm1, %v1049_v0  ;;  %208 = vst.msk [vmem:[#allocation2 + $0x38] sm:$0x3] %vm201_vm1, %v1049_v0  ;;  %v227_v6 = vld [vmem:[%s192_s21 + $0x30] sm:$0xff]  ;;  %v228_v8 = vld [vmem:[%s192_s21 + $0x38] sm:$0xff] }
  0x12   : > { %209 = vst.msk [vmem:[#allocation2 + $0x40] sm:$0xff] %vm199_vm0, %v1049_v0  ;;  %215 = vst.msk [vmem:[#allocation2 + $0x70] sm:$0xff] %vm199_vm0, %v1049_v0  ;;  %vm627_vm12 = vcmask 293888  }
  0x13   : > { %210 = vst.msk [vmem:[#allocation2 + $0x48] sm:$0x3] %vm201_vm1, %v1049_v0  ;;  %216 = vst.msk [vmem:[#allocation2 + $0x78] sm:$0x3] %vm201_vm1, %v1049_v0 }
  0x14   : > { %217 = vst.msk [vmem:[#allocation2 + $0x80] sm:$0xff] %vm199_vm0, %v1049_v0  ;;  %219 = vst.msk [vmem:[#allocation2 + $0x90] sm:$0xff] %vm199_vm0, %v1049_v0 }
  0x15   : > { %218 = vst.msk [vmem:[#allocation2 + $0x88] sm:$0x3] %vm201_vm1, %v1049_v0  ;;  %220 = vst.msk [vmem:[#allocation2 + $0x98] sm:$0x3] %vm201_vm1, %v1049_v0  ;;  %v1132_v9 = vld [vmem:[#allocation2] sm:$0xff] }
  0x16   : > { %234 = vst.msk [vmem:[#allocation2 + $0x51] sm:$0xff] %vm199_vm0, %v225_v1  ;;  %235 = vst.msk [vmem:[#allocation2 + $0x61] sm:$0xff] %vm199_vm0, %v226_v2  ;;  %v239_v10 = vld [vmem:[#allocation2 + $0x8] sm:$0x3]  ;;  %v275_v11 = vrot.slane %v1132_v9, 1  ;;  %v300_v16 = vrot.slane %v1132_v9, 2 }
  0x17   : > { %230 = vst.msk [vmem:[#allocation2 + $0x11] sm:$0xff] %vm199_vm0, %v221_v3  ;;  %231 = vst.msk [vmem:[#allocation2 + $0x21] sm:$0xff] %vm199_vm0, %v222_v4  ;;  %v276_v12 = vrot.slane %v239_v10, 1  ;;  %v301_v17 = vrot.slane %v239_v10, 2 }
  0x18   : > { %232 = vst.msk [vmem:[#allocation2 + $0x31] sm:$0xff] %vm199_vm0, %v223_v5  ;;  %236 = vst.msk [vmem:[#allocation2 + $0x71] sm:$0xff] %vm199_vm0, %v227_v6 }
  0x19   : > { %233 = vst.msk [vmem:[#allocation2 + $0x41] sm:$0xff] %vm199_vm0, %v224_v7  ;;  %237 = vst.msk [vmem:[#allocation2 + $0x81] sm:$0xff] %vm199_vm0, %v228_v8  ;;  %v277_v32 = vsel %vm274_vm2, %v275_v11, %v276_v12  ;;  %v302_v46 = vsel %vm299_vm3, %v300_v16, %v301_v17 }
  0x1d   : > { %v1136_v13 = vld [vmem:[#allocation2 + $0x50] sm:$0xff]  ;;  %v1138_v14 = vld [vmem:[#allocation2 + $0x60] sm:$0xff]  ;;  %v251_v33 = vld [vmem:[#allocation2 + $0x68] sm:$0x3] }
  0x1e   : > { %v1140_v15 = vld [vmem:[#allocation2 + $0x10] sm:$0xff]  ;;  %v883_v18 = vpack.i.bf16 %v1138_v14, %v1136_v13  ;;  %v1145_v19 = vld [vmem:[#allocation2 + $0x20] sm:$0xff]  ;;  %v1147_v20 = vld [vmem:[#allocation2 + $0x28] sm:$0x3]  ;;  %v293_v23 = vrot.slane %v1138_v14, 1  ;;  %v294_v38 = vrot.slane %v251_v33, 1 }
  0x1f   : > { %v1149_v21 = vld [vmem:[#allocation2 + $0x30] sm:$0xff]  ;;  %v278_v22 = vrot.slane %v1140_v15, 1  ;;  %v878_v24 = vpack.i.bf16 %v1145_v19, %v1140_v15  ;;  %v1155_v25 = vld [vmem:[#allocation2 + $0x38] sm:$0x3]  ;;  %v281_v26 = vrot.slane %v1145_v19, 1  ;;  %v282_v27 = vrot.slane %v1147_v20, 1 }
  0x20   : > { %v284_v28 = vrot.slane %v1149_v21, 1  ;;  %v1160_v29 = vld [vmem:[#allocation2 + $0x70] sm:$0xff]  ;;  %884 = vrot.lane.b32.xlu1 %v883_v18, %s1050_s22  ;;  %v285_v30 = vrot.slane %v1155_v25, 1  ;;  %v241_v31 = vld [vmem:[#allocation2 + $0x18] sm:$0x3]  ;;  %v1170_v39 = vld [vmem:[#allocation2 + $0x40] sm:$0xff]  ;;  %v295_v49 = vsel %vm274_vm2, %v293_v23, %v294_v38 }
  0x21   : > { %v296_v34 = vrot.slane %v1160_v29, 1  ;;  %879 = vrot.lane.b32.xlu0 %v878_v24, %s1050_s22  ;;  %v1168_v35 = vsel %vm274_vm2, %v281_v26, %v282_v27  ;;  %v279_v36 = vrot.slane %v241_v31, 1  ;;  %v253_v37 = vld [vmem:[#allocation2 + $0x78] sm:$0x3]  ;;  %v290_v40 = vrot.slane %v1136_v13, 1  ;;  %v254_v27 = vld [vmem:[#allocation2 + $0x80] sm:$0xff] }
  0x22   : > { %v1174_v41 = vsel %vm274_vm2, %v284_v28, %v285_v30  ;;  %v297_v42 = vrot.slane %v253_v37, 1  ;;  %v247_v43 = vld [vmem:[#allocation2 + $0x48] sm:$0x3]  ;;  %v249_v44 = vld [vmem:[#allocation2 + $0x58] sm:$0x3]  ;;  %v287_v45 = vrot.slane %v1170_v39, 1 }
  0x23   : > { %v1180_v47 = vpack.i.bf16 %v1174_v41, %v1168_v35  ;;  %v280_v48 = vsel %vm274_vm2, %v278_v22, %v279_v36  ;;  %v288_v50 = vrot.slane %v247_v43, 1  ;;  %v291_v53 = vrot.slane %v249_v44, 1  ;;  %v255_v28 = vld [vmem:[#allocation2 + $0x88] sm:$0x3] }
  0x24   : > { %v888_v51 = vpack.i.bf16 %v280_v48, %v277_v32  ;;  %v298_v52 = vsel %vm274_vm2, %v296_v34, %v297_v42  ;;  %v312_v54 = vrot.slane %v1170_v39, 2  ;;  %v313_v57 = vrot.slane %v247_v43, 2 }
  0x25   : > { %899 = vrot.lane.b32.xlu1 %v1180_v47, %s1051_s23  ;;  %v1187_v55 = vpack.i.bf16 %v298_v52, %v295_v49  ;;  %v289_v56 = vsel %vm274_vm2, %v287_v45, %v288_v50  ;;  %v315_v58 = vrot.slane %v1136_v13, 2  ;;  %v292_v59 = vsel %vm274_vm2, %v290_v40, %v291_v53  ;;  %v1038_v50 = vld [vmem:[%s1416_s1 + $0x10] ss:$0 sps:$4 sm:$0x33]  }
  0x26   : > { %889 = vrot.lane.b32.xlu0 %v888_v51, %s1051_s23  ;;  %v316_v60 = vrot.slane %v249_v44, 2  ;;  %v303_v61 = vrot.slane %v1140_v15, 2  ;;  %v304_v62 = vrot.slane %v241_v31, 2  ;;  %v1193_v63 = vpack.i.bf16 %v292_v59, %v289_v56  ;;  %859 = vmatprep.subr.msk.bf16.mxu0 %vm640_vm4, %v1038_v50 }
  0x27   : > { %v314_v0 = vsel %vm299_vm3, %v312_v54, %v313_v57  ;;  %v318_v1 = vrot.slane %v1138_v14, 2  ;;  %v319_v2 = vrot.slane %v251_v33, 2  ;;  %v321_v5 = vrot.slane %v1160_v29, 2  ;;  %860 = vmatprep.subr.msk.bf16.mxu1 %vm640_vm4, %v1038_v50  ;;  %v1039_v57 = vld [vmem:[%s1416_s1 + $0x8] sm:$0xff]  }
  0x28   : > { %v317_v3 = vsel %vm299_vm3, %v315_v58, %v316_v60  ;;  %v305_v4 = vsel %vm299_vm3, %v303_v61, %v304_v62  ;;  %v322_v6 = vrot.slane %v253_v37, 2  ;;  %v306_v11 = vrot.slane %v1145_v19, 2 }
  0x29   : > { %904 = vrot.lane.b32.xlu1 %v1187_v55, %s1051_s23  ;;  %v1201_v7 = vpack.i.bf16 %v317_v3, %v314_v0  ;;  %v908_v8 = vpack.i.bf16 %v305_v4, %v302_v46  ;;  %v320_v10 = vsel %vm299_vm3, %v318_v1, %v319_v2  ;;  %v307_v16 = vrot.slane %v1147_v20, 2 }
  0x2a   : > { %894 = vrot.lane.b32.xlu0 %v1193_v63, %s1051_s23  ;;  %v323_v12 = vsel %vm299_vm3, %v321_v5, %v322_v6  ;;  %v309_v17 = vrot.slane %v1149_v21, 2  ;;  %v310_v18 = vrot.slane %v1155_v25, 2  ;;  %v933_v20 = vpack.i.bf16 %v254_v27, %v1160_v29 }
  0x2b   : > { %v308_v22 = vsel %vm299_vm3, %v306_v11, %v307_v16  ;;  %v1213_v24 = vpack.i.bf16 %v323_v12, %v320_v10  ;;  %v923_v25 = vpack.i.bf16 %v1170_v39, %v1149_v21  ;;  %v326_v30 = vrot.slane %v254_v27, 1 }
  0x2c   : > { %v311_v23 = vsel %vm299_vm3, %v309_v17, %v310_v18  ;;  %v327_v31 = vrot.slane %v255_v28, 1  ;;  %v943_v32 = vpack.i.bf16 %v295_v49, %v292_v59  ;;  %v938_v33 = vpack.i.bf16 %v1168_v35, %v280_v48  ;;  %v256_v48 = vld [vmem:[#allocation2 + $0x90] sm:$0xff]  ;;  %v257_v49 = vld [vmem:[#allocation2 + $0x98] sm:$0x3]  ;;  %v1040_v59 = vld [vmem:[%s1416_s1] sm:$0xff]  }
  0x2d   : > { %914 = vrot.lane.b32.xlu1 %v1201_v7, %s1052_s24  ;;  %v1215_v26 = vpack.i.bf16 %v311_v23, %v308_v22  ;;  %v948_v37 = vpack.i.bf16 %v289_v56, %v1174_v41  ;;  %v329_v38 = vrot.slane %v254_v27, 2  ;;  %v330_v40 = vrot.slane %v255_v28, 2 }
  0x2e   : > { %909 = vrot.lane.b32.xlu0 %v908_v8, %s1052_s24  ;;  %v328_v34 = vsel %vm274_vm2, %v326_v30, %v327_v31  ;;  %v963_v42 = vpack.i.bf16 %v320_v10, %v317_v3  ;;  %v958_v43 = vpack.i.bf16 %v308_v22, %v305_v4  ;;  %v968_v35 = vpack.i.bf16 %v314_v0, %v311_v23 }
  0x2f   : > { %v953_v36 = vpack.i.bf16 %v328_v34, %v298_v52  ;;  %v331_v44 = vsel %vm299_vm3, %v329_v38, %v330_v40  ;;  %v983_v46 = vpack.i.bf16 %v1160_v29, %v1138_v14  ;;  %v978_v41 = vpack.i.bf16 %v1149_v21, %v1145_v19 }
  0x30   : > { %v973_v45 = vpack.i.bf16 %v331_v44, %v323_v12  ;;  %v993_v51 = vpack.i.bf16 %v256_v48, %v254_v27  ;;  %v334_v52 = vrot.slane %v256_v48, 1  ;;  %v988_v53 = vpack.i.bf16 %v1136_v13, %v1170_v39 }
  0x31   : > { %929 = vrot.lane.b32.xlu1 %v1213_v24, %s1052_s24  ;;  %v335_v54 = vrot.slane %v257_v49, 1  ;;  %v642_v56 = vsel %vm640_vm4, %v1038_v50, 0  ;;  %v337_v61 = vrot.slane %v256_v48, 2  ;;  %v338_v62 = vrot.slane %v257_v49, 2 }
  0x32   : > { %919 = vrot.lane.b32.xlu0 %v1215_v26, %s1052_s24  ;;  %840 = vmatpush3.bf16.msra.mxu0 %v642_v56 }
  0x33   : > { %856 = vmatpush3.bf16.msra.mxu1 %v642_v56  ;;  %v336_v58 = vsel %vm274_vm2, %v334_v52, %v335_v54  ;;  %841 = vmatprep.subr.bf16.mxu0 %v1039_v57  ;;  %v339_v0 = vsel %vm299_vm3, %v337_v61, %v338_v62 }
  0x34   : > { %854 = vmatprep.subr.bf16.mxu1 %v1039_v57  ;;  %v1013_v60 = vpack.i.bf16 %v336_v58, %v328_v34  ;;  %v1033_v1 = vpack.i.bf16 %v339_v0, %v331_v44 }
  0x35   : > { %934 = vrot.lane.b32.xlu1 %v933_v20, %s1050_s22 }
  0x36   : > { %924 = vrot.lane.b32.xlu0 %v923_v25, %s1050_s22  ;;  %842 = vmatpush3.bf16.msra.mxu0 %v1039_v57 }
  0x37   : > { %857 = vmatpush3.bf16.msra.mxu1 %v1039_v57  ;;  %843 = vmatprep.subr.bf16.mxu0 %v1040_v59 }
  0x38   : > { %855 = vmatprep.subr.bf16.mxu1 %v1040_v59 }
  0x39   : > { %944 = vrot.lane.b32.xlu1 %v943_v32, %s1053_s25 }
  0x3a   : > { %939 = vrot.lane.b32.xlu0 %v938_v33, %s1053_s25  ;;  %844 = vmatpush3.bf16.msra.mxu0 %v1040_v59 }
  0x3b   : > { %858 = vmatpush3.bf16.msra.mxu1 %v1040_v59 }
  0x3d   : > { %954 = vrot.lane.b32.xlu1 %v953_v36, %s1053_s25 }
  0x3e   : > { %949 = vrot.lane.b32.xlu0 %v948_v37, %s1053_s25 }
  0x41   : > { %964 = vrot.lane.b32.xlu1 %v963_v42, %s1054_s26 }
  0x42   : > { %959 = vrot.lane.b32.xlu0 %v958_v43, %s1054_s26 }
  0x45   : > { %974 = vrot.lane.b32.xlu1 %v973_v45, %s1054_s26 }
  0x46   : > { %969 = vrot.lane.b32.xlu0 %v968_v35, %s1054_s26 }
  0x49   : > { %984 = vrot.lane.b32.xlu1 %v983_v46, %s1055_s29 }
  0x4a   : > { %979 = vrot.lane.b32.xlu0 %v978_v41, %s1055_s29 }
  0x4d   : > { %994 = vrot.lane.b32.xlu1 %v993_v51, %s1055_s29 }
  0x4e   : > { %989 = vrot.lane.b32.xlu0 %v988_v53, %s1055_s29 }
  0x51   : > { %1004 = vrot.lane.b32.xlu1 %v1187_v55, %s1056_s8 }
  0x52   : > { %999 = vrot.lane.b32.xlu0 %v1180_v47, %s1056_s8 }
  0x55   : > { %1014 = vrot.lane.b32.xlu1 %v1013_v60, %s1056_s8 }
  0x56   : > { %1009 = vrot.lane.b32.xlu0 %v1193_v63, %s1056_s8 }
  0x59   : > { %1024 = vrot.lane.b32.xlu1 %v1213_v24, %s1057_s9 }
  0x5a   : > { %1019 = vrot.lane.b32.xlu0 %v1215_v26, %s1057_s9 }
  0x5d   : > { %1034 = vrot.lane.b32.xlu1 %v1033_v1, %s1057_s9 }
  0x5e   : > { %1029 = vrot.lane.b32.xlu0 %v1201_v7, %s1057_s9 }
  0x92   : > { %v885_v47 = vpop.permute.xlu1 %884 }
  0x93   : > { %v880_v55 = vpop.permute.xlu0 %879  ;;  %v887_v32 = vunpack.i.h.bf16 %v885_v47  ;;  %v886_v33 = vunpack.i.l.bf16 %v885_v47 }
  0x94   : > { %v882_v50 = vunpack.i.h.bf16 %v880_v55  ;;  %v881_v51 = vunpack.i.l.bf16 %v880_v55 }
  0x97   : > { %v900_v2 = vpop.permute.xlu1 %899 }
  0x98   : > { %v890_v3 = vpop.permute.xlu0 %889  ;;  %v902_v34 = vunpack.i.h.bf16 %v900_v2  ;;  %v901_v36 = vunpack.i.l.bf16 %v900_v2 }
  0x99   : > { %v892_v24 = vunpack.i.h.bf16 %v890_v3  ;;  %v891_v26 = vunpack.i.l.bf16 %v890_v3 }
  0x9b   : > { %v905_v4 = vpop.permute.xlu1 %904  ;;  %v533_v43 = vsel %vm199_vm0, %v1140_v15, %v892_v24  ;;  %v532_v44 = vsel %vm199_vm0, %v1132_v9, %v891_v26  ;;  %v535_v15 = vsel %vm199_vm0, %v1149_v21, %v902_v34  ;;  %v534_v9 = vsel %vm199_vm0, %v1145_v19, %v901_v36 }
  0x9c   : > { %v895_v5 = vpop.permute.xlu0 %894  ;;  %v907_v37 = vunpack.i.h.bf16 %v905_v4  ;;  %v906_v38 = vunpack.i.l.bf16 %v905_v4 }
  0x9d   : > { %v897_v22 = vunpack.i.h.bf16 %v895_v5  ;;  %v896_v23 = vunpack.i.l.bf16 %v895_v5 }
  0x9e   : > { %v539_v52 = vsel %vm199_vm0, %v1160_v29, %v907_v37  ;;  %v538_v53 = vsel %vm199_vm0, %v1138_v14, %v906_v38 }
  0x9f   : > { %v915_v6 = vpop.permute.xlu1 %914  ;;  %v537_v40 = vsel %vm199_vm0, %v1136_v13, %v897_v22  ;;  %v536_v42 = vsel %vm199_vm0, %v1170_v39, %v896_v23 }
  0xa0   : > { %v910_v8 = vpop.permute.xlu0 %909  ;;  %v917_v27 = vunpack.i.h.bf16 %v915_v6  ;;  %v916_v28 = vunpack.i.l.bf16 %v915_v6 }
  0xa1   : > { %v912_v25 = vunpack.i.h.bf16 %v910_v8  ;;  %v911_v30 = vunpack.i.l.bf16 %v910_v8 }
  0xa2   : > { %v545_v45 = vsel %vm540_vm5, %v536_v42, %v916_v28  ;;  %v546_v35 = vsel %vm540_vm5, %v537_v40, %v917_v27 }
  0xa3   : > { %v930_v63 = vpop.permute.xlu1 %929  ;;  %v541_v41 = vsel %vm540_vm5, %v532_v44, %v911_v30  ;;  %v542_v13 = vsel %vm540_vm5, %v533_v43, %v912_v25  ;;  %v554_v57 = vsel %vm549_vm6, %v545_v45, %v886_v33  ;;  %v555_v58 = vsel %vm549_vm6, %v546_v35, %v887_v32 }
  0xa4   : > { %v1251_v10 = vpop.permute.xlu0 %919  ;;  %v932_v48 = vunpack.i.h.bf16 %v930_v63  ;;  %v931_v49 = vunpack.i.l.bf16 %v930_v63  ;;  %v550_v21 = vsel %vm549_vm6, %v541_v41, %v881_v51  ;;  %v551_v59 = vsel %vm549_vm6, %v542_v13, %v882_v50 }
  0xa5   : > { %v922_v54 = vunpack.i.h.bf16 %v1251_v10  ;;  %v921_v56 = vunpack.i.l.bf16 %v1251_v10 }
  0xa6   : > { %v547_v60 = vsel %vm540_vm5, %v538_v53, %v931_v49  ;;  %v548_v29 = vsel %vm540_vm5, %v539_v52, %v932_v48 }
  0xa7   : > { %v1253_v11 = vpop.permute.xlu1 %934  ;;  %v544_v2 = vsel %vm540_vm5, %v535_v15, %v922_v54  ;;  %v543_v3 = vsel %vm540_vm5, %v534_v9, %v921_v56 }
  0xa8   : > { %v1255_v12 = vpop.permute.xlu0 %924  ;;  %v937_v14 = vunpack.i.h.bf16 %v1253_v11  ;;  %v936_v61 = vunpack.i.l.bf16 %v1253_v11 }
  0xa9   : > { %v927_v0 = vunpack.i.h.bf16 %v1255_v12  ;;  %v926_v1 = vunpack.i.l.bf16 %v1255_v12 }
  0xaa   : > { %v556_v12 = vsel %vm549_vm6, %v547_v60, %v936_v61 }
  0xab   : > { %v1257_v16 = vpop.permute.xlu1 %944 }
  0xac   : > { %v1259_v17 = vpop.permute.xlu0 %939  ;;  %v947_v47 = vunpack.i.h.bf16 %v1257_v16  ;;  %v946_v55 = vunpack.i.l.bf16 %v1257_v16  ;;  %v557_v16 = vsel %vm549_vm6, %v548_v29, %v937_v14 }
  0xad   : > { %v942_v4 = vunpack.i.h.bf16 %v1259_v17  ;;  %v941_v5 = vunpack.i.l.bf16 %v1259_v17  ;;  %v552_v17 = vsel %vm549_vm6, %v543_v3, %v926_v1 }
  0xae   : > { %v563_v26 = vsel %vm558_vm7, %v554_v57, %v946_v55 }
  0xaf   : > { %v1261_v7 = vpop.permute.xlu1 %954  ;;  %v559_v27 = vsel %vm558_vm7, %v550_v21, %v941_v5  ;;  %v560_v28 = vsel %vm558_vm7, %v551_v59, %v942_v4 }
  0xb0   : > { %v1263_v18 = vpop.permute.xlu0 %949  ;;  %v957_v6 = vunpack.i.h.bf16 %v1261_v7  ;;  %v956_v8 = vunpack.i.l.bf16 %v1261_v7  ;;  %v553_v7 = vsel %vm549_vm6, %v544_v2, %v927_v0 }
  0xb1   : > { %v952_v63 = vunpack.i.h.bf16 %v1263_v18  ;;  %v951_v10 = vunpack.i.l.bf16 %v1263_v18  ;;  %v564_v18 = vsel %vm558_vm7, %v555_v58, %v947_v47 }
  0xb2   : > { %v566_v32 = vsel %vm558_vm7, %v557_v16, %v957_v6 }
  0xb3   : > { %v1265_v20 = vpop.permute.xlu1 %964  ;;  %v561_v33 = vsel %vm558_vm7, %v552_v17, %v951_v10  ;;  %v562_v34 = vsel %vm558_vm7, %v553_v7, %v952_v63 }
  0xb4   : > { %v1267_v31 = vpop.permute.xlu0 %959  ;;  %v967_v22 = vunpack.i.h.bf16 %v1265_v20  ;;  %v966_v23 = vunpack.i.l.bf16 %v1265_v20  ;;  %v565_v20 = vsel %vm558_vm7, %v556_v12, %v956_v8 }
  0xb5   : > { %v962_v25 = vunpack.i.h.bf16 %v1267_v31  ;;  %v961_v30 = vunpack.i.l.bf16 %v1267_v31 }
  0xb6   : > { %v572_v37 = vsel %vm567_vm8, %v563_v26, %v966_v23  ;;  %v573_v38 = vsel %vm567_vm8, %v564_v18, %v967_v22 }
  0xb7   : > { %v1279_v46 = vpop.permute.xlu1 %974  ;;  %v568_v41 = vsel %vm567_vm8, %v559_v27, %v961_v30  ;;  %v569_v13 = vsel %vm567_vm8, %v560_v28, %v962_v25 }
  0xb8   : > { %v1283_v39 = vpop.permute.xlu0 %969  ;;  %v977_v40 = vunpack.i.h.bf16 %v1279_v46  ;;  %v976_v42 = vunpack.i.l.bf16 %v1279_v46 }
  0xb9   : > { %v972_v31 = vunpack.i.h.bf16 %v1283_v39  ;;  %v971_v44 = vunpack.i.l.bf16 %v1283_v39 }
  0xba   : > { %v574_v39 = vsel %vm567_vm8, %v565_v20, %v976_v42  ;;  %v575_v52 = vsel %vm567_vm8, %v566_v32, %v977_v40 }
  0xbb   : > { %v1299_v19 = vpop.permute.xlu1 %984  ;;  %v570_v57 = vsel %vm567_vm8, %v561_v33, %v971_v44  ;;  %v571_v58 = vsel %vm567_vm8, %v562_v34, %v972_v31 }
  0xbc   : > { %v1305_v62 = vpop.permute.xlu0 %979  ;;  %v987_v45 = vunpack.i.h.bf16 %v1299_v19  ;;  %v986_v35 = vunpack.i.l.bf16 %v1299_v19 }
  0xbd   : > { %v982_v48 = vunpack.i.h.bf16 %v1305_v62  ;;  %v981_v49 = vunpack.i.l.bf16 %v1305_v62 }
  0xbe   : > { %v581_v21 = vsel %vm576_vm9, %v572_v37, %v986_v35  ;;  %v582_v59 = vsel %vm576_vm9, %v573_v38, %v987_v45  ;;  %v826_v45 = vld [vmem:[%s1417_s2] ss:$0 sm:$0xff] }
  0xbf   : > { %v995_v11 = vpop.permute.xlu1 %994  ;;  %v577_v19 = vsel %vm576_vm9, %v568_v41, %v981_v49  ;;  %v578_v60 = vsel %vm576_vm9, %v569_v13, %v982_v48  ;;  %v827_v35 = vld [vmem:[%s1418_s3] ss:$0 sm:$0xff] }
  0xc0   : > { %v1323_v24 = vpop.permute.xlu0 %989  ;;  %v997_v50 = vunpack.i.h.bf16 %v995_v11  ;;  %v996_v46 = vunpack.i.l.bf16 %v995_v11 }
  0xc1   : > { %v992_v29 = vunpack.i.h.bf16 %v1323_v24  ;;  %v991_v14 = vunpack.i.l.bf16 %v1323_v24 }
  0xc2   : > { %v583_v61 = vsel %vm576_vm9, %v574_v39, %v996_v46  ;;  %v584_v62 = vsel %vm576_vm9, %v575_v52, %v997_v50 }
  0xc3   : > { %v1005_v36 = vpop.permute.xlu1 %1004  ;;  %v579_v23 = vsel %vm576_vm9, %v570_v57, %v991_v14  ;;  %v580_v18 = vsel %vm576_vm9, %v571_v58, %v992_v29 }
  0xc4   : > { %v1000_v43 = vpop.permute.xlu0 %999  ;;  %v1007_v51 = vunpack.i.h.bf16 %v1005_v36  ;;  %v1006_v15 = vunpack.i.l.bf16 %v1005_v36 }
  0xc5   : > { %v1002_v53 = vunpack.i.h.bf16 %v1000_v43  ;;  %v1001_v54 = vunpack.i.l.bf16 %v1000_v43 }
  0xc6   : > { %v590_v1 = vsel %vm585_vm10, %v581_v21, %v1006_v15  ;;  %v591_v47 = vsel %vm585_vm10, %v582_v59, %v1007_v51 }
  0xc7   : > { %v1015_v9 = vpop.permute.xlu1 %1014  ;;  %v586_v4 = vsel %vm585_vm10, %v577_v19, %v1001_v54  ;;  %v587_v5 = vsel %vm585_vm10, %v578_v60, %v1002_v53 }
  0xc8   : > { %v1010_v56 = vpop.permute.xlu0 %1009  ;;  %v1017_v6 = vunpack.i.h.bf16 %v1015_v9  ;;  %v1016_v8 = vunpack.i.l.bf16 %v1015_v9 }
  0xc9   : > { %v1012_v11 = vunpack.i.h.bf16 %v1010_v56  ;;  %v1011_v12 = vunpack.i.l.bf16 %v1010_v56 }
  0xca   : > { %v592_v20 = vsel %vm585_vm10, %v583_v61, %v1016_v8  ;;  %v593_v32 = vsel %vm585_vm10, %v584_v62, %v1017_v6 }
  0xcb   : > { %v1025_v0 = vpop.permute.xlu1 %1024  ;;  %v588_v36 = vsel %vm585_vm10, %v579_v23, %v1011_v12  ;;  %v589_v37 = vsel %vm585_vm10, %v580_v18, %v1012_v11 }
  0xcc   : > { %v1027_v55 = vunpack.i.h.bf16 %v1025_v0  ;;  %v1026_v2 = vunpack.i.l.bf16 %v1025_v0  ;;  %v1020_v3 = vpop.permute.xlu0 %1019 }
  0xcd   : > { %v1022_v63 = vunpack.i.h.bf16 %v1020_v3  ;;  %v1021_v10 = vunpack.i.l.bf16 %v1020_v3 }
  0xce   : > { %v599_v16 = vsel %vm594_vm11, %v590_v1, %v1026_v2  ;;  %v600_v22 = vsel %vm594_vm11, %v591_v47, %v1027_v55 }
  0xcf   : > { %v1035_v24 = vpop.permute.xlu1 %1034  ;;  %v595_v17 = vsel %vm594_vm11, %v586_v4, %v1021_v10  ;;  %v596_v7 = vsel %vm594_vm11, %v587_v5, %v1022_v63  ;;  %v605_v26 = vpack.c.bf16 %v600_v22, %v599_v16 }
  0xd0   : > { %v1037_v27 = vunpack.i.h.bf16 %v1035_v24  ;;  %v1036_v28 = vunpack.i.l.bf16 %v1035_v24  ;;  %v1030_v25 = vpop.permute.xlu0 %1029  ;;  %v603_v30 = vpack.c.bf16 %v596_v7, %v595_v17 }
  0xd1   : > { %v1032_v33 = vunpack.i.h.bf16 %v1030_v25  ;;  %v1031_v34 = vunpack.i.l.bf16 %v1030_v25  ;;  %849 = vmatprep.mubr.msk.bf16.mxu1 %vm627_vm12, %v605_v26 }
  0xd2   : > { %v601_v38 = vsel %vm594_vm11, %v592_v20, %v1036_v28  ;;  %v602_v40 = vsel %vm594_vm11, %v593_v32, %v1037_v27  ;;  %845 = vmatprep.mubr.msk.bf16.mxu0 %vm627_vm12, %v603_v30 }
  0xd3   : > { %v606_v42 = vpack.c.bf16 %v602_v40, %v601_v38  ;;  %v597_v43 = vsel %vm594_vm11, %v588_v36, %v1031_v34  ;;  %v598_v31 = vsel %vm594_vm11, %v589_v37, %v1032_v33 }
  0xd4   : > { %v604_v44 = vpack.c.bf16 %v598_v31, %v597_v43 }
  0xd5   : > { %850 = vmatmul.mubr.msk.bf16.vlgmr.msra.gmra.mxu1 %vm627_vm12, %v606_v42 }
  0xd6   : > { %846 = vmatmul.mubr.msk.bf16.vlgmr.msra.gmra.mxu0 %vm627_vm12, %v604_v44 }
 0x195   : > { %v851_v41 = vpop.f32.mrf.mxu1 }
 0x196   : > { %v847_v13 = vpop.f32.mrf.mxu0  ;;  %v722_v48 = vmul.f32 %v851_v41, %v826_v45 }
 0x197   : > { %v718_v49 = vmul.f32 %v847_v13, %v826_v45  ;;  %v694_v50 = vpop.f32.mrf.mxu1 }
 0x198   : > { %v737_v46 = vadd.f32 %v827_v35, %v722_v48  ;;  %v678_v51 = vpop.f32.mrf.mxu0  ;;  %v720_v15 = vmul.f32 %v826_v45, %v694_v50 }
 0x199   : > { %v733_v9 = vadd.f32 %v827_v35, %v718_v49  ;;  %v716_v39 = vmul.f32 %v826_v45, %v678_v51  ;;  %v852_v52 = vpop.f32.mrf.mxu1 }
 0x19a   : > { %v745_v53 = vmax.f32 %v737_v46, 0.0  ;;  %v735_v54 = vadd.f32 %v827_v35, %v720_v15  ;;  %v848_v56 = vpop.f32.mrf.mxu0  ;;  %v723_v57 = vmul.f32 %v852_v52, %v826_v45 }
 0x19b   : > { %v741_v58 = vmax.f32 %v733_v9, 0.0  ;;  %v731_v21 = vadd.f32 %v827_v35, %v716_v39  ;;  %v719_v59 = vmul.f32 %v848_v56, %v826_v45  ;;  %v697_v19 = vpop.f32.mrf.mxu1 }
 0x19c   : > { %753 = vst.msk [vmem:[%s1394_s19 + $0x30] sm:$0xff] %vm540_vm5, %v745_v53  ;;  %v743_v60 = vmax.f32 %v735_v54, 0.0  ;;  %v738_v29 = vadd.f32 %v827_v35, %v723_v57  ;;  %v681_v14 = vpop.f32.mrf.mxu0  ;;  %v721_v61 = vmul.f32 %v826_v45, %v697_v19 }
 0x19d   : > { %749 = vst.msk [vmem:[%s1394_s19 + $0x10] sm:$0xff] %vm540_vm5, %v741_v58  ;;  %v739_v62 = vmax.f32 %v731_v21, 0.0  ;;  %v734_v0 = vadd.f32 %v827_v35, %v719_v59  ;;  %v717_v1 = vmul.f32 %v826_v45, %v681_v14 }
 0x19e   : > { %751 = vst.msk [vmem:[%s1394_s19 + $0x20] sm:$0xff] %vm540_vm5, %v743_v60  ;;  %v746_v47 = vmax.f32 %v738_v29, 0.0  ;;  %v736_v55 = vadd.f32 %v827_v35, %v721_v61 }
 0x19f   : > { %747 = vst.msk [vmem:[%s1394_s19] sm:$0xff] %vm540_vm5, %v739_v62  ;;  %v742_v2 = vmax.f32 %v734_v0, 0.0  ;;  %v732_v3 = vadd.f32 %v827_v35, %v717_v1 }
 0x1a0   : > { %754 = vst.msk [vmem:[%s1394_s19 + $0x38] sm:$0xff] %vm540_vm5, %v746_v47  ;;  %v744_v4 = vmax.f32 %v736_v55, 0.0 }
 0x1a1   : > { %750 = vst.msk [vmem:[%s1394_s19 + $0x18] sm:$0xff] %vm540_vm5, %v742_v2  ;;  %v740_v5 = vmax.f32 %v732_v3, 0.0 }
 0x1a2   : > { %752 = vst.msk [vmem:[%s1394_s19 + $0x28] sm:$0xff] %vm540_vm5, %v744_v4 }
 0x1a3   : > { %748 = vst.msk [vmem:[%s1394_s19 + $0x8] sm:$0xff] %vm540_vm5, %v740_v5 }
 0x1a4 PF: > { %s14_s15 = sadd.s32 1, %s1047_s15  }
 0x1a5   : > { %p11_p4 = scmp.ge.s32.totalorder %s14_s15, 4  }
 0x1a7   :  { %13 = sbr.rel (!%p11_p4) target bundleno = 1 (0x1), region = 67 }

// kernel: _lambda_.9
= control target key start
LH: loop header
LB: loop body
LE: loop exit
PB: predicated region body
PF: predicated region fallthrough
CT: control target
= control target key end

     0   :  { %8 = vsyncpa [#allocation3], 0  ;;  %s761_s0 = inlined_call_operand.vmem [shape: f32[2,16,16], index: 0, kind: input, shape index: {}]   ;;  %s762_s1 = inlined_call_operand.vmem [shape: f32[32,16], index: 1, kind: input, shape index: {}]   ;;  %s763_s2 = inlined_call_operand.vmem [shape: f32[16,32], index: 2, kind: input, shape index: {}]   ;;  %s764_s3 = inlined_call_operand.hbm [shape: f32[2,32,32], index: 3, kind: output, shape index: {}]  }
   0x1   :  { %10 = vsyncpa [#allocation3 + $0x1], 0  ;;  %s633_s12 = smov 0   ;;  %s635_s13 = smov 0  }
   0x2   :  { %s637_s14 = smov 0   ;;  %s639_s15 = smov 0  }
   0x3 LB: > { %s654_s16 = sadd.s32 4294967295, %s608_s15   ;;  %s453_s17 = sadd.s32 4294967294, %s608_s15   ;;  %s608_s15 = sphi %s639_s15, %s770_s15   ;;  %s604_s14 = sphi %s637_s14, %s769_s14   ;;  %s600_s13 = sphi %s635_s13, %s768_s13   ;;  %s596_s12 = sphi %s633_s12, %s767_s12  }
   0x4   : > { %s658_s18 = sadd.s32 1, %s608_s15   ;;  %s91_s19 = sadd.s32 1, %s604_s14 }
   0x5   : > { %s88_s20 = ssub.s32 %s608_s15, %s658_s18  ;;  %p101_p0 = scmp.ne.s32.totalorder %s604_s14, %s600_s13 }
   0x6   : > { %p89_p1 = scmp.eq.s32.totalorder %s88_s20, 0  ;;  %p102_p2 = scmp.eq.s32.totalorder %s654_s16, 1 }
   0x7   : > { %p107_p3 = scmp.ne.s32.totalorder %s600_s13, %s596_s12  ;;  %p108_p4 = scmp.eq.s32.totalorder %s453_s17, 1 }
   0x8   : > { %s669_s21 = scalar_select %p89_p1, %s604_s14, %s91_s19  }
   0x9   : > { %p671_p5 = por %p102_p2, %p101_p0  ;;  %p675_p6 = por %p108_p4, %p107_p3 }
   0xa   : > { %p456_p7 = scmp.ge.s32.totalorder %s608_s15, 1  ;;  %p140_p8 = scmp.lt.s32.totalorder %s608_s15, 3 }
   0xc   : > { %p141_p9 = pnand %p456_p7, %p140_p8 }
   0xd   : > { %p164_p10 = scmp.lt.s32.totalorder (!%p141_p9), %s654_s16, 1  ;;  %s161_s20 = sand.u32 (!%p141_p9), 1, %s600_s13  }
   0xe   : > { %144 = sbr.rel (%p141_p9) target bundleno = 437 (0x1b5), region = 32  ;;  %s457_s24 = sshll.u32 (!%p141_p9), %s161_s20, 5 }
   0xf   : > { %s163_s25 = scalar_lea.vmem (!%p141_p9), [#allocation2], %s457_s24  ;;  %s721_s4 = scalar_lea.sflag (!%p141_p9), [#allocation3], %s161_s20 }
  0x13   : > { %v169_v0 = vld [vmem:[%s762_s1] sm:$0xff]  ;;  %vm175_vm0 = vcmask 130048   ;;  %s165_s26 = scalar_select %p164_p10, %s654_s16, 1  ;;  %v170_v3 = vld [vmem:[%s762_s1 + $0x8] sm:$0xff]  ;;  %v171_v4 = vld [vmem:[%s762_s1 + $0x10] sm:$0xff]  ;;  %vm372_vm1 = vcmask 261120  }
  0x14   : > { %491 = vmatprep.mubr.msk.f32.mxu0 %vm175_vm0, %v169_v0  ;;  %v172_v5 = vld [vmem:[%s762_s1 + $0x18] sm:$0xff]  ;;  %v274_v6 = vld [vmem:[%s763_s2 + $0x8] sm:$0xff]  ;;  %v273_v7 = vld [vmem:[%s763_s2] sm:$0xff] }
  0x15   : > { %s473_s27 = sshll.u32 %s165_s26, 4  ;;  %497 = vmatprep.subr.mxu1 %v274_v6  ;;  %s391_s26 = sshll.u32 %s163_s25, 4  ;;  %s714_s26 = int_to_ptr.vmem [resolvable:$true] %s391_s26 }
  0x16   : > { %s168_s30 = scalar_lea.vmem %s761_s0, %s473_s27  ;;  %498 = vmatpush3.msra.mxu1 %v274_v6  ;;  %s474_s27 = sshll.u32 %s654_s16, 9 }
  0x17   : > { %v174_v1 = vld [vmem:[%s168_s30 + $0x8] sm:$0xff]  ;;  %v173_v2 = vld [vmem:[%s168_s30] sm:$0xff]  ;;  %499 = vmatprep.subr.mxu1 %v273_v7  ;;  %s719_s30 = scalar_lea.hbm %s764_s3, %s474_s27  ;;  %s548_s5 = scalar_lea.vmem %s714_s26, 512 }
  0x18   : > { %487 = vmatprep.subr.mxu0 %v174_v1  ;;  %500 = vmatpush3.msra.mxu1 %v273_v7  ;;  %p549_p11 = scmp.ne.s32.totalorder %s714_s26, %s548_s5  ;;  %s610_s16 = smov [#allocation2]  }
  0x19   : > { %488 = vmatpush3.msra.mxu0 %v174_v1  ;;  %s552_s6 = sshll.u32 %s610_s16, 4  ;;  %s553_s6 = int_to_ptr.vmem [resolvable:$false] %s552_s6 }
  0x1a   : > { %489 = vmatprep.subr.mxu0 %v173_v2  ;;  %p550_p12 = pnand %p549_p11, %p671_p5  ;;  %s554_s7 = scalar_lea.vmem %s553_s6, 1024 }
  0x1b   : > { %490 = vmatpush3.msra.mxu0 %v173_v2  ;;  %p555_p0 = scmp.lt.s32.totalorder %s714_s26, %s553_s6  ;;  %p556_p1 = scmp.lt.s32.totalorder %s554_s7, %s548_s5 }
  0x1c   : > { %492 = vmatmul.mubr.msk.f32.vlgmr.msra.gmra.mxu0 %vm175_vm0, %v170_v3  ;;  %p551_p13 = pneg %p550_p12 }
  0x1d   : > { %494 = vmatprep.mubr.msk.f32.mxu0 %vm175_vm0, %v171_v4  ;;  %p557_p2 = por %p556_p1, %p555_p0 }
  0x1f   : > { %p558_p3 = pnand %p557_p2, %p551_p13 }
  0x20   : > { %495 = vmatmul.mubr.msk.f32.gmra.mxu0 %vm175_vm0, %v172_v5 }
  0xdc   : > { %v493_v8 = vpop.f32.mrf.mxu0 }
  0xde   : > { %v254_v9 = vpop.f32.mrf.mxu0 }
  0xdf   : > { %501 = vmatprep.mubr.msk.f32.mxu1 %vm175_vm0, %v254_v9 }
  0xe0   : > { %v496_v10 = vpop.f32.mrf.mxu0  ;;  %502 = vmatmul.mubr.msk.f32.vlgmr.msra.gmra.mxu1 %vm175_vm0, %v493_v8 }
  0xe2   : > { %v264_v11 = vpop.f32.mrf.mxu0 }
  0xe3   : > { %504 = vmatprep.mubr.msk.f32.mxu1 %vm175_vm0, %v264_v11 }
  0xe4   : > { %505 = vmatmul.mubr.msk.f32.gmra.mxu1 %vm175_vm0, %v496_v10 }
 0x1a0   : > { %v503_v12 = vpop.f32.mrf.mxu1 }
 0x1a1   : > { %374 = vst.msk [vmem:[%s163_s25 + $0x8] sm:$0xff] %vm372_vm1, %v503_v12 }
 0x1a2   : > { %v353_v13 = vpop.f32.mrf.mxu1 }
 0x1a3   : > { %373 = vst.msk [vmem:[%s163_s25] sm:$0xff] %vm372_vm1, %v353_v13 }
 0x1a4   : > { %v506_v14 = vpop.f32.mrf.mxu1 }
 0x1a5   : > { %376 = vst.msk [vmem:[%s163_s25 + $0x18] sm:$0xff] %vm372_vm1, %v506_v14 }
 0x1a6   : > { %v363_v15 = vpop.f32.mrf.mxu1 }
 0x1a7   : > { %375 = vst.msk [vmem:[%s163_s25 + $0x10] sm:$0xff] %vm372_vm1, %v363_v15 }
 0x1a8   : > { %561 = shalt.err (!%p558_p3)
}
 0x1a9   : > { %s562_s8 = scalar_lea.hbm %s719_s30, 512  ;;  %s566_s11 = scalar_lea.hbm %s764_s3, 1024 }
 0x1aa   : > { %p563_p4 = scmp.ne.s32.totalorder %s719_s30, %s562_s8  ;;  %p567_p9 = scmp.lt.s32.totalorder %s719_s30, %s764_s3 }
 0x1ab   : > { %p568_p10 = scmp.lt.s32.totalorder %s566_s11, %s562_s8 }
 0x1ac   : > { %p564_p7 = pnand %p563_p4, %p671_p5 }
 0x1ad   : > { %p569_p11 = por %p568_p10, %p567_p9 }
 0x1ae   : > { %p565_p8 = pneg %p564_p7 }
 0x1b0   : > { %p570_p12 = pnand %p569_p11, %p565_p8 }
 0x1b2   : > { %573 = shalt.err (!%p570_p12)
}
 0x1b3   : > { %s611_s20 = smov 128   ;;  %s612_s24 = smov 8  }
 0x1b4   : > { %507 = dma.vmem_to_hbm [thread:$0]  (%p671_p5), %s714_s26, 512, %s719_s30, %s721_s4, %s611_s20, %s611_s20, %s612_s24  }
 0x1b5 PF: > { %p513_p13 = scmp.ge.s32.totalorder %s608_s15, 2  ;;  %s406_s25 = sand.u32 1, %s596_s12  }
 0x1b6   : > { %s407_s27 = scalar_lea.sflag [#allocation3], %s406_s25 }
 0x1b7   : > { %p510_p0 = pnand %p513_p13, %p675_p6 }
 0x1b9   : > { %p511_p1 = pneg %p510_p0 }
 0x1bb   : > { %591 = dma.done.wait (%p511_p1), %s407_s27, 512  }
 0x1bc   : > { %593 = vsyncadd (%p511_p1), %s407_s27, 4294966784  ;;  %p13_p2 = scmp.ge.s32.totalorder %s658_s18, 4   ;;  %s767_s12 = smov %s600_s13 }
 0x1bd   : > { %s768_s13 = smov %s604_s14  ;;  %s769_s14 = smov %s669_s21 }
 0x1be   : > { %s770_s15 = smov %s658_s18  ;;  %15 = sbr.rel (!%p13_p2) target bundleno = 3 (0x3), region = 67 }
 0x1c3   :  { %412 = vsyncpa [#allocation3], 1 }
 0x1c4   :  { %414 = vsyncpa [#allocation3 + $0x1], 1 }

// kernel: _lambda_.11
= control target key start
LH: loop header
LB: loop body
LE: loop exit
PB: predicated region body
PF: predicated region fallthrough
CT: control target
= control target key end

     0   :  { %s530_s12 = smov 0   ;;  %s579_s0 = inlined_call_operand.vmem [shape: f32[2,8,32], index: 0, kind: input, shape index: {}]   ;;  %s580_s1 = inlined_call_operand.vmem [shape: f32[32,8], index: 1, kind: input, shape index: {}]   ;;  %s581_s2 = inlined_call_operand.vmem [shape: f32[32,128], index: 2, kind: input, shape index: {}]   ;;  %s582_s3 = inlined_call_operand.vmem [shape: f32[2,32,128], index: 3, kind: output, shape index: {}]  }
   0x1 LB: > { %s432_s13 = sadd.s32 4294967295, %s508_s12   ;;  %p436_p0 = scmp.ge.s32.totalorder %s508_s12, 1  ;;  %s508_s12 = sphi %s530_s12, %s13_s12  }
   0x2   : > { %p136_p1 = scmp.lt.s32.totalorder %s508_s12, 3 }
   0x4   : > { %p137_p2 = pnand %p436_p0, %p136_p1 }
   0x5   : > { %p159_p3 = scmp.lt.s32.totalorder (!%p137_p2), %s432_s13, 1 }
   0x6   : > { %140 = sbr.rel (%p137_p2) target bundleno = 413 (0x19d), region = 32 }
   0xb   : > { %v168_v0 = vld [vmem:[%s580_s1] sm:$0xff]  ;;  %vm173_vm0 = vcmask 64512   ;;  %v274_v1 = vld [vmem:[%s581_s2 + $0x18] sm:$0xff]  ;;  %s584_s13 = smov (!%p159_p3, %s432_s13), 1  ;;  %v273_v2 = vld [vmem:[%s581_s2 + $0x10] sm:$0xff]  ;;  %vm275_vm1 = vcmask 261120  }
   0xc   : > { %466 = vmatprep.mubr.msk.f32.mxu0 %vm173_vm0, %v168_v0  ;;  %486 = vmatprep.subr.mxu1 %v274_v1  ;;  %s437_s20 = sshll.u32 %s584_s13, 3  ;;  %v169_v4 = vld [vmem:[%s580_s1 + $0x8] sm:$0xff]  ;;  %v170_v5 = vld [vmem:[%s580_s1 + $0x10] sm:$0xff]  ;;  %v171_v6 = vld [vmem:[%s580_s1 + $0x18] sm:$0xff]  ;;  %s450_s7 = sshll.u32 %s584_s13, 5 }
   0xd   : > { %490 = vmatpush3.msra.mxu1 %v274_v1  ;;  %s162_s23 = scalar_lea.vmem %s579_s0, %s437_s20  ;;  %v272_v7 = vld [vmem:[%s581_s2 + $0x8] sm:$0xff]  ;;  %v271_v8 = vld [vmem:[%s581_s2] sm:$0xff]  ;;  %s167_s10 = scalar_lea.vmem %s582_s3, %s450_s7 }
   0xe   : > { %487 = vmatprep.subr.mxu1 %v273_v2  ;;  %v172_v3 = vld [vmem:[%s162_s23] sm:$0xff] }
   0xf   : > { %491 = vmatpush3.msra.mxu1 %v273_v2  ;;  %464 = vmatprep.subr.mxu0 %v172_v3 }
  0x10   : > { %465 = vmatpush3.msra.mxu0 %v172_v3  ;;  %488 = vmatprep.subr.mxu1 %v272_v7 }
  0x11   : > { %467 = vmatmul.mubr.msk.f32.vlgmr.msra.gmra.mxu0 %vm173_vm0, %v169_v4  ;;  %472 = vmatprep.subr.mxu0 %v274_v1 }
  0x12   : > { %469 = vmatprep.mubr.msk.f32.mxu0 %vm173_vm0, %v170_v5  ;;  %473 = vmatpush3.msra.mxu0 %v274_v1 }
  0x13   : > { %474 = vmatprep.subr.mxu0 %v273_v2  ;;  %492 = vmatpush3.msra.mxu1 %v272_v7 }
  0x14   : > { %475 = vmatpush3.msra.mxu0 %v273_v2  ;;  %489 = vmatprep.subr.mxu1 %v271_v8 }
  0x15   : > { %470 = vmatmul.mubr.msk.f32.gmra.mxu0 %vm173_vm0, %v171_v6  ;;  %476 = vmatprep.subr.mxu0 %v272_v7 }
  0x16   : > { %477 = vmatpush3.msra.mxu0 %v272_v7  ;;  %493 = vmatpush3.msra.mxu1 %v271_v8 }
  0x17   : > { %478 = vmatprep.subr.mxu0 %v271_v8 }
  0x18   : > { %479 = vmatpush3.msra.mxu0 %v271_v8 }
  0xd1   : > { %v468_v9 = vpop.f32.mrf.mxu0 }
  0xd3   : > { %v252_v10 = vpop.f32.mrf.mxu0 }
  0xd4   : > { %480 = vmatprep.mubr.msk.f32.mxu0 %vm275_vm1, %v252_v10 }
  0xd5   : > { %v471_v11 = vpop.f32.mrf.mxu0  ;;  %481 = vmatmul.mubr.msk.f32.vlgmr.msra.gmra.mxu0 %vm275_vm1, %v468_v9 }
  0xd7   : > { %v262_v12 = vpop.f32.mrf.mxu0 }
  0xd8   : > { %483 = vmatprep.mubr.msk.f32.mxu1 %vm275_vm1, %v262_v12 }
  0xd9   : > { %484 = vmatmul.mubr.msk.f32.vlgmr.msra.gmra.mxu1 %vm275_vm1, %v471_v11 }
 0x195   : > { %v482_v13 = vpop.f32.mrf.mxu0 }
 0x196   : > { %374 = vst [vmem:[%s167_s10 + $0x8] sm:$0xff] %v482_v13 }
 0x197   : > { %v354_v14 = vpop.f32.mrf.mxu0 }
 0x198   : > { %373 = vst [vmem:[%s167_s10] sm:$0xff] %v354_v14 }
 0x199   : > { %v485_v15 = vpop.f32.mrf.mxu1 }
 0x19a   : > { %376 = vst [vmem:[%s167_s10 + $0x18] sm:$0xff] %v485_v15 }
 0x19b   : > { %v364_v16 = vpop.f32.mrf.mxu1 }
 0x19c   : > { %375 = vst [vmem:[%s167_s10 + $0x10] sm:$0xff] %v364_v16 }
 0x19d PF: > { %s13_s12 = sadd.s32 1, %s508_s12  }
 0x19e   : > { %p10_p4 = scmp.ge.s32.totalorder %s13_s12, 4  }
 0x1a0   :  { %12 = sbr.rel (!%p10_p4) target bundleno = 1 (0x1), region = 62 }

// kernel: _lambda_.10
= control target key start
LH: loop header
LB: loop body
LE: loop exit
PB: predicated region body
PF: predicated region fallthrough
CT: control target
= control target key end

     0   :  { %s1083_s15 = smov 0   ;;  %s1415_s0 = inlined_call_operand.vmem [shape: f32[2,8,8,4], index: 0, kind: input, shape index: {}]   ;;  %s1416_s1 = inlined_call_operand.vmem [shape: bf16[36,4], index: 1, kind: input, shape index: {}]   ;;  %s1417_s2 = inlined_call_operand.vmem [shape: f32[1,4], index: 2, kind: input, shape index: {}]   ;;  %s1418_s3 = inlined_call_operand.vmem [shape: f32[1,4], index: 3, kind: input, shape index: {}]   ;;  %s1419_s4 = inlined_call_operand.vmem [shape: f32[2,64,4], index: 4, kind: output, shape index: {}]  }
   0x1 LB: > { %s810_s16 = sadd.s32 4294967295, %s1047_s15   ;;  %p814_p0 = scmp.ge.s32.totalorder %s1047_s15, 1  ;;  %s1047_s15 = sphi %s1083_s15, %s14_s15  }
   0x2   : > { %p162_p1 = scmp.lt.s32.totalorder %s1047_s15, 3 }
   0x4   : > { %p163_p2 = pnand %p814_p0, %p162_p1 }
   0x5   : > { %p1091_p3 = scmp.lt.s32.totalorder (!%p163_p2), %s810_s16, 1  ;;  %s1050_s22 = smov (!%p163_p2), 12  }
   0x6   : > { %166 = sbr.rel (%p163_p2) target bundleno = 420 (0x1a4), region = 36  ;;  %s1051_s23 = smov (!%p163_p2), 4  }
   0x7   : > { %s1052_s24 = smov (!%p163_p2), 8   ;;  %s1053_s25 = smov (!%p163_p2), 16  }
   0x8   : > { %s1054_s26 = smov (!%p163_p2), 20   ;;  %s1055_s29 = smov (!%p163_p2), 24  }
   0x9   : > { %s1056_s8 = smov (!%p163_p2), 28   ;;  %s1057_s9 = smov (!%p163_p2), 32  }
   0xb   : > { %vm199_vm0 = vcmask 31744   ;;  %vm201_vm1 = vcmask 25600   ;;  %v1049_v0 = vmov 0.0   ;;  %s1422_s16 = smov (!%p1091_p3, %s810_s16), 1  ;;  %vm274_vm2 = vcmask 1046528  }
   0xc   : > { %211 = vst.msk [vmem:[#allocation2 + $0x50] sm:$0xff] %vm199_vm0, %v1049_v0  ;;  %213 = vst.msk [vmem:[#allocation2 + $0x60] sm:$0xff] %vm199_vm0, %v1049_v0  ;;  %s830_s18 = sshll.u32 %s1422_s16, 6  ;;  %vm299_vm3 = vcmask 1045504   ;;  %vm640_vm4 = vcmask 1041408   ;;  %vm540_vm5 = vcmask 64512  }
   0xd   : > { %212 = vst.msk [vmem:[#allocation2 + $0x58] sm:$0x3] %vm201_vm1, %v1049_v0  ;;  %214 = vst.msk [vmem:[#allocation2 + $0x68] sm:$0x3] %vm201_vm1, %v1049_v0  ;;  %s192_s21 = scalar_lea.vmem %s1415_s0, %s830_s18  ;;  %vm549_vm6 = vcmask 97280   ;;  %vm558_vm7 = vcmask 130048   ;;  %s1394_s19 = scalar_lea.vmem %s1419_s4, %s830_s18 }
   0xe   : > { %200 = vst.msk [vmem:[#allocation2] sm:$0xff] %vm199_vm0, %v1049_v0  ;;  %203 = vst.msk [vmem:[#allocation2 + $0x10] sm:$0xff] %vm199_vm0, %v1049_v0  ;;  %v225_v1 = vld [vmem:[%s192_s21 + $0x20] sm:$0xff]  ;;  %v226_v2 = vld [vmem:[%s192_s21 + $0x28] sm:$0xff]  ;;  %vm567_vm8 = vcmask 162816   ;;  %vm576_vm9 = vcmask 195584  }
   0xf   : > { %202 = vst.msk [vmem:[#allocation2 + $0x8] sm:$0x3] %vm201_vm1, %v1049_v0  ;;  %204 = vst.msk [vmem:[#allocation2 + $0x18] sm:$0x3] %vm201_vm1, %v1049_v0  ;;  %v221_v3 = vld [vmem:[%s192_s21] sm:$0xff]  ;;  %v222_v4 = vld [vmem:[%s192_s21 + $0x8] sm:$0xff] }
  0x10   : > { %205 = vst.msk [vmem:[#allocation2 + $0x20] sm:$0xff] %vm199_vm0, %v1049_v0  ;;  %207 = vst.msk [vmem:[#allocation2 + $0x30] sm:$0xff] %vm199_vm0, %v1049_v0  ;;  %v223_v5 = vld [vmem:[%s192_s21 + $0x10] sm:$0xff]  ;;  %v224_v7 = vld [vmem:[%s192_s21 + $0x18] sm:$0xff]  ;;  %vm585_vm10 = vcmask 228352   ;;  %vm594_vm11 = vcmask 261120  }
  0x11   : > { %206 = vst.msk [vmem:[#allocation2 + $0x28] sm:$0x3] %vm201_vm1, %v1049_v0  ;;  %208 = vst.msk [vmem:[#allocation2 + $0x38] sm:$0x3] %vm201_vm1, %v1049_v0  ;;  %v227_v6 = vld [vmem:[%s192_s21 + $0x30] sm:$0xff]  ;;  %v228_v8 = vld [vmem:[%s192_s21 + $0x38] sm:$0xff] }
  0x12   : > { %209 = vst.msk [vmem:[#allocation2 + $0x40] sm:$0xff] %vm199_vm0, %v1049_v0  ;;  %215 = vst.msk [vmem:[#allocation2 + $0x70] sm:$0xff] %vm199_vm0, %v1049_v0  ;;  %vm627_vm12 = vcmask 293888  }
  0x13   : > { %210 = vst.msk [vmem:[#allocation2 + $0x48] sm:$0x3] %vm201_vm1, %v1049_v0  ;;  %216 = vst.msk [vmem:[#allocation2 + $0x78] sm:$0x3] %vm201_vm1, %v1049_v0 }
  0x14   : > { %217 = vst.msk [vmem:[#allocation2 + $0x80] sm:$0xff] %vm199_vm0, %v1049_v0  ;;  %219 = vst.msk [vmem:[#allocation2 + $0x90] sm:$0xff] %vm199_vm0, %v1049_v0 }
  0x15   : > { %218 = vst.msk [vmem:[#allocation2 + $0x88] sm:$0x3] %vm201_vm1, %v1049_v0  ;;  %220 = vst.msk [vmem:[#allocation2 + $0x98] sm:$0x3] %vm201_vm1, %v1049_v0  ;;  %v1132_v9 = vld [vmem:[#allocation2] sm:$0xff] }
  0x16   : > { %234 = vst.msk [vmem:[#allocation2 + $0x51] sm:$0xff] %vm199_vm0, %v225_v1  ;;  %235 = vst.msk [vmem:[#allocation2 + $0x61] sm:$0xff] %vm199_vm0, %v226_v2  ;;  %v239_v10 = vld [vmem:[#allocation2 + $0x8] sm:$0x3]  ;;  %v275_v11 = vrot.slane %v1132_v9, 1  ;;  %v300_v16 = vrot.slane %v1132_v9, 2 }
  0x17   : > { %230 = vst.msk [vmem:[#allocation2 + $0x11] sm:$0xff] %vm199_vm0, %v221_v3  ;;  %231 = vst.msk [vmem:[#allocation2 + $0x21] sm:$0xff] %vm199_vm0, %v222_v4  ;;  %v276_v12 = vrot.slane %v239_v10, 1  ;;  %v301_v17 = vrot.slane %v239_v10, 2 }
  0x18   : > { %232 = vst.msk [vmem:[#allocation2 + $0x31] sm:$0xff] %vm199_vm0, %v223_v5  ;;  %236 = vst.msk [vmem:[#allocation2 + $0x71] sm:$0xff] %vm199_vm0, %v227_v6 }
  0x19   : > { %233 = vst.msk [vmem:[#allocation2 + $0x41] sm:$0xff] %vm199_vm0, %v224_v7  ;;  %237 = vst.msk [vmem:[#allocation2 + $0x81] sm:$0xff] %vm199_vm0, %v228_v8  ;;  %v277_v32 = vsel %vm274_vm2, %v275_v11, %v276_v12  ;;  %v302_v46 = vsel %vm299_vm3, %v300_v16, %v301_v17 }
  0x1d   : > { %v1136_v13 = vld [vmem:[#allocation2 + $0x50] sm:$0xff]  ;;  %v1138_v14 = vld [vmem:[#allocation2 + $0x60] sm:$0xff]  ;;  %v251_v33 = vld [vmem:[#allocation2 + $0x68] sm:$0x3] }
  0x1e   : > { %v1140_v15 = vld [vmem:[#allocation2 + $0x10] sm:$0xff]  ;;  %v883_v18 = vpack.i.bf16 %v1138_v14, %v1136_v13  ;;  %v1145_v19 = vld [vmem:[#allocation2 + $0x20] sm:$0xff]  ;;  %v1147_v20 = vld [vmem:[#allocation2 + $0x28] sm:$0x3]  ;;  %v293_v23 = vrot.slane %v1138_v14, 1  ;;  %v294_v38 = vrot.slane %v251_v33, 1 }
  0x1f   : > { %v1149_v21 = vld [vmem:[#allocation2 + $0x30] sm:$0xff]  ;;  %v278_v22 = vrot.slane %v1140_v15, 1  ;;  %v878_v24 = vpack.i.bf16 %v1145_v19, %v1140_v15  ;;  %v1155_v25 = vld [vmem:[#allocation2 + $0x38] sm:$0x3]  ;;  %v281_v26 = vrot.slane %v1145_v19, 1  ;;  %v282_v27 = vrot.slane %v1147_v20, 1 }
  0x20   : > { %v284_v28 = vrot.slane %v1149_v21, 1  ;;  %v1160_v29 = vld [vmem:[#allocation2 + $0x70] sm:$0xff]  ;;  %884 = vrot.lane.b32.xlu1 %v883_v18, %s1050_s22  ;;  %v285_v30 = vrot.slane %v1155_v25, 1  ;;  %v241_v31 = vld [vmem:[#allocation2 + $0x18] sm:$0x3]  ;;  %v1170_v39 = vld [vmem:[#allocation2 + $0x40] sm:$0xff]  ;;  %v295_v49 = vsel %vm274_vm2, %v293_v23, %v294_v38 }
  0x21   : > { %v296_v34 = vrot.slane %v1160_v29, 1  ;;  %879 = vrot.lane.b32.xlu0 %v878_v24, %s1050_s22  ;;  %v1168_v35 = vsel %vm274_vm2, %v281_v26, %v282_v27  ;;  %v279_v36 = vrot.slane %v241_v31, 1  ;;  %v253_v37 = vld [vmem:[#allocation2 + $0x78] sm:$0x3]  ;;  %v290_v40 = vrot.slane %v1136_v13, 1  ;;  %v254_v27 = vld [vmem:[#allocation2 + $0x80] sm:$0xff] }
  0x22   : > { %v1174_v41 = vsel %vm274_vm2, %v284_v28, %v285_v30  ;;  %v297_v42 = vrot.slane %v253_v37, 1  ;;  %v247_v43 = vld [vmem:[#allocation2 + $0x48] sm:$0x3]  ;;  %v249_v44 = vld [vmem:[#allocation2 + $0x58] sm:$0x3]  ;;  %v287_v45 = vrot.slane %v1170_v39, 1 }
  0x23   : > { %v1180_v47 = vpack.i.bf16 %v1174_v41, %v1168_v35  ;;  %v280_v48 = vsel %vm274_vm2, %v278_v22, %v279_v36  ;;  %v288_v50 = vrot.slane %v247_v43, 1  ;;  %v291_v53 = vrot.slane %v249_v44, 1  ;;  %v255_v28 = vld [vmem:[#allocation2 + $0x88] sm:$0x3] }
  0x24   : > { %v888_v51 = vpack.i.bf16 %v280_v48, %v277_v32  ;;  %v298_v52 = vsel %vm274_vm2, %v296_v34, %v297_v42  ;;  %v312_v54 = vrot.slane %v1170_v39, 2  ;;  %v313_v57 = vrot.slane %v247_v43, 2 }
  0x25   : > { %899 = vrot.lane.b32.xlu1 %v1180_v47, %s1051_s23  ;;  %v1187_v55 = vpack.i.bf16 %v298_v52, %v295_v49  ;;  %v289_v56 = vsel %vm274_vm2, %v287_v45, %v288_v50  ;;  %v315_v58 = vrot.slane %v1136_v13, 2  ;;  %v292_v59 = vsel %vm274_vm2, %v290_v40, %v291_v53  ;;  %v1038_v50 = vld [vmem:[%s1416_s1 + $0x10] ss:$0 sps:$4 sm:$0x33]  }
  0x26   : > { %889 = vrot.lane.b32.xlu0 %v888_v51, %s1051_s23  ;;  %v316_v60 = vrot.slane %v249_v44, 2  ;;  %v303_v61 = vrot.slane %v1140_v15, 2  ;;  %v304_v62 = vrot.slane %v241_v31, 2  ;;  %v1193_v63 = vpack.i.bf16 %v292_v59, %v289_v56  ;;  %859 = vmatprep.subr.msk.bf16.mxu0 %vm640_vm4, %v1038_v50 }
  0x27   : > { %v314_v0 = vsel %vm299_vm3, %v312_v54, %v313_v57  ;;  %v318_v1 = vrot.slane %v1138_v14, 2  ;;  %v319_v2 = vrot.slane %v251_v33, 2  ;;  %v321_v5 = vrot.slane %v1160_v29, 2  ;;  %860 = vmatprep.subr.msk.bf16.mxu1 %vm640_vm4, %v1038_v50  ;;  %v1039_v57 = vld [vmem:[%s1416_s1 + $0x8] sm:$0xff]  }
  0x28   : > { %v317_v3 = vsel %vm299_vm3, %v315_v58, %v316_v60  ;;  %v305_v4 = vsel %vm299_vm3, %v303_v61, %v304_v62  ;;  %v322_v6 = vrot.slane %v253_v37, 2  ;;  %v306_v11 = vrot.slane %v1145_v19, 2 }
  0x29   : > { %904 = vrot.lane.b32.xlu1 %v1187_v55, %s1051_s23  ;;  %v1201_v7 = vpack.i.bf16 %v317_v3, %v314_v0  ;;  %v908_v8 = vpack.i.bf16 %v305_v4, %v302_v46  ;;  %v320_v10 = vsel %vm299_vm3, %v318_v1, %v319_v2  ;;  %v307_v16 = vrot.slane %v1147_v20, 2 }
  0x2a   : > { %894 = vrot.lane.b32.xlu0 %v1193_v63, %s1051_s23  ;;  %v323_v12 = vsel %vm299_vm3, %v321_v5, %v322_v6  ;;  %v309_v17 = vrot.slane %v1149_v21, 2  ;;  %v310_v18 = vrot.slane %v1155_v25, 2  ;;  %v933_v20 = vpack.i.bf16 %v254_v27, %v1160_v29 }
  0x2b   : > { %v308_v22 = vsel %vm299_vm3, %v306_v11, %v307_v16  ;;  %v1213_v24 = vpack.i.bf16 %v323_v12, %v320_v10  ;;  %v923_v25 = vpack.i.bf16 %v1170_v39, %v1149_v21  ;;  %v326_v30 = vrot.slane %v254_v27, 1 }
  0x2c   : > { %v311_v23 = vsel %vm299_vm3, %v309_v17, %v310_v18  ;;  %v327_v31 = vrot.slane %v255_v28, 1  ;;  %v943_v32 = vpack.i.bf16 %v295_v49, %v292_v59  ;;  %v938_v33 = vpack.i.bf16 %v1168_v35, %v280_v48  ;;  %v256_v48 = vld [vmem:[#allocation2 + $0x90] sm:$0xff]  ;;  %v257_v49 = vld [vmem:[#allocation2 + $0x98] sm:$0x3]  ;;  %v1040_v59 = vld [vmem:[%s1416_s1] sm:$0xff]  }
  0x2d   : > { %914 = vrot.lane.b32.xlu1 %v1201_v7, %s1052_s24  ;;  %v1215_v26 = vpack.i.bf16 %v311_v23, %v308_v22  ;;  %v948_v37 = vpack.i.bf16 %v289_v56, %v1174_v41  ;;  %v329_v38 = vrot.slane %v254_v27, 2  ;;  %v330_v40 = vrot.slane %v255_v28, 2 }
  0x2e   : > { %909 = vrot.lane.b32.xlu0 %v908_v8, %s1052_s24  ;;  %v328_v34 = vsel %vm274_vm2, %v326_v30, %v327_v31  ;;  %v963_v42 = vpack.i.bf16 %v320_v10, %v317_v3  ;;  %v958_v43 = vpack.i.bf16 %v308_v22, %v305_v4  ;;  %v968_v35 = vpack.i.bf16 %v314_v0, %v311_v23 }
  0x2f   : > { %v953_v36 = vpack.i.bf16 %v328_v34, %v298_v52  ;;  %v331_v44 = vsel %vm299_vm3, %v329_v38, %v330_v40  ;;  %v983_v46 = vpack.i.bf16 %v1160_v29, %v1138_v14  ;;  %v978_v41 = vpack.i.bf16 %v1149_v21, %v1145_v19 }
  0x30   : > { %v973_v45 = vpack.i.bf16 %v331_v44, %v323_v12  ;;  %v993_v51 = vpack.i.bf16 %v256_v48, %v254_v27  ;;  %v334_v52 = vrot.slane %v256_v48, 1  ;;  %v988_v53 = vpack.i.bf16 %v1136_v13, %v1170_v39 }
  0x31   : > { %929 = vrot.lane.b32.xlu1 %v1213_v24, %s1052_s24  ;;  %v335_v54 = vrot.slane %v257_v49, 1  ;;  %v642_v56 = vsel %vm640_vm4, %v1038_v50, 0  ;;  %v337_v61 = vrot.slane %v256_v48, 2  ;;  %v338_v62 = vrot.slane %v257_v49, 2 }
  0x32   : > { %919 = vrot.lane.b32.xlu0 %v1215_v26, %s1052_s24  ;;  %840 = vmatpush3.bf16.msra.mxu0 %v642_v56 }
  0x33   : > { %856 = vmatpush3.bf16.msra.mxu1 %v642_v56  ;;  %v336_v58 = vsel %vm274_vm2, %v334_v52, %v335_v54  ;;  %841 = vmatprep.subr.bf16.mxu0 %v1039_v57  ;;  %v339_v0 = vsel %vm299_vm3, %v337_v61, %v338_v62 }
  0x34   : > { %854 = vmatprep.subr.bf16.mxu1 %v1039_v57  ;;  %v1013_v60 = vpack.i.bf16 %v336_v58, %v328_v34  ;;  %v1033_v1 = vpack.i.bf16 %v339_v0, %v331_v44 }
  0x35   : > { %934 = vrot.lane.b32.xlu1 %v933_v20, %s1050_s22 }
  0x36   : > { %924 = vrot.lane.b32.xlu0 %v923_v25, %s1050_s22  ;;  %842 = vmatpush3.bf16.msra.mxu0 %v1039_v57 }
  0x37   : > { %857 = vmatpush3.bf16.msra.mxu1 %v1039_v57  ;;  %843 = vmatprep.subr.bf16.mxu0 %v1040_v59 }
  0x38   : > { %855 = vmatprep.subr.bf16.mxu1 %v1040_v59 }
  0x39   : > { %944 = vrot.lane.b32.xlu1 %v943_v32, %s1053_s25 }
  0x3a   : > { %939 = vrot.lane.b32.xlu0 %v938_v33, %s1053_s25  ;;  %844 = vmatpush3.bf16.msra.mxu0 %v1040_v59 }
  0x3b   : > { %858 = vmatpush3.bf16.msra.mxu1 %v1040_v59 }
  0x3d   : > { %954 = vrot.lane.b32.xlu1 %v953_v36, %s1053_s25 }
  0x3e   : > { %949 = vrot.lane.b32.xlu0 %v948_v37, %s1053_s25 }
  0x41   : > { %964 = vrot.lane.b32.xlu1 %v963_v42, %s1054_s26 }
  0x42   : > { %959 = vrot.lane.b32.xlu0 %v958_v43, %s1054_s26 }
  0x45   : > { %974 = vrot.lane.b32.xlu1 %v973_v45, %s1054_s26 }
  0x46   : > { %969 = vrot.lane.b32.xlu0 %v968_v35, %s1054_s26 }
  0x49   : > { %984 = vrot.lane.b32.xlu1 %v983_v46, %s1055_s29 }
  0x4a   : > { %979 = vrot.lane.b32.xlu0 %v978_v41, %s1055_s29 }
  0x4d   : > { %994 = vrot.lane.b32.xlu1 %v993_v51, %s1055_s29 }
  0x4e   : > { %989 = vrot.lane.b32.xlu0 %v988_v53, %s1055_s29 }
  0x51   : > { %1004 = vrot.lane.b32.xlu1 %v1187_v55, %s1056_s8 }
  0x52   : > { %999 = vrot.lane.b32.xlu0 %v1180_v47, %s1056_s8 }
  0x55   : > { %1014 = vrot.lane.b32.xlu1 %v1013_v60, %s1056_s8 }
  0x56   : > { %1009 = vrot.lane.b32.xlu0 %v1193_v63, %s1056_s8 }
  0x59   : > { %1024 = vrot.lane.b32.xlu1 %v1213_v24, %s1057_s9 }
  0x5a   : > { %1019 = vrot.lane.b32.xlu0 %v1215_v26, %s1057_s9 }
  0x5d   : > { %1034 = vrot.lane.b32.xlu1 %v1033_v1, %s1057_s9 }
  0x5e   : > { %1029 = vrot.lane.b32.xlu0 %v1201_v7, %s1057_s9 }
  0x92   : > { %v885_v47 = vpop.permute.xlu1 %884 }
  0x93   : > { %v880_v55 = vpop.permute.xlu0 %879  ;;  %v887_v32 = vunpack.i.h.bf16 %v885_v47  ;;  %v886_v33 = vunpack.i.l.bf16 %v885_v47 }
  0x94   : > { %v882_v50 = vunpack.i.h.bf16 %v880_v55  ;;  %v881_v51 = vunpack.i.l.bf16 %v880_v55 }
  0x97   : > { %v900_v2 = vpop.permute.xlu1 %899 }
  0x98   : > { %v890_v3 = vpop.permute.xlu0 %889  ;;  %v902_v34 = vunpack.i.h.bf16 %v900_v2  ;;  %v901_v36 = vunpack.i.l.bf16 %v900_v2 }
  0x99   : > { %v892_v24 = vunpack.i.h.bf16 %v890_v3  ;;  %v891_v26 = vunpack.i.l.bf16 %v890_v3 }
  0x9b   : > { %v905_v4 = vpop.permute.xlu1 %904  ;;  %v533_v43 = vsel %vm199_vm0, %v1140_v15, %v892_v24  ;;  %v532_v44 = vsel %vm199_vm0, %v1132_v9, %v891_v26  ;;  %v535_v15 = vsel %vm199_vm0, %v1149_v21, %v902_v34  ;;  %v534_v9 = vsel %vm199_vm0, %v1145_v19, %v901_v36 }
  0x9c   : > { %v895_v5 = vpop.permute.xlu0 %894  ;;  %v907_v37 = vunpack.i.h.bf16 %v905_v4  ;;  %v906_v38 = vunpack.i.l.bf16 %v905_v4 }
  0x9d   : > { %v897_v22 = vunpack.i.h.bf16 %v895_v5  ;;  %v896_v23 = vunpack.i.l.bf16 %v895_v5 }
  0x9e   : > { %v539_v52 = vsel %vm199_vm0, %v1160_v29, %v907_v37  ;;  %v538_v53 = vsel %vm199_vm0, %v1138_v14, %v906_v38 }
  0x9f   : > { %v915_v6 = vpop.permute.xlu1 %914  ;;  %v537_v40 = vsel %vm199_vm0, %v1136_v13, %v897_v22  ;;  %v536_v42 = vsel %vm199_vm0, %v1170_v39, %v896_v23 }
  0xa0   : > { %v910_v8 = vpop.permute.xlu0 %909  ;;  %v917_v27 = vunpack.i.h.bf16 %v915_v6  ;;  %v916_v28 = vunpack.i.l.bf16 %v915_v6 }
  0xa1   : > { %v912_v25 = vunpack.i.h.bf16 %v910_v8  ;;  %v911_v30 = vunpack.i.l.bf16 %v910_v8 }
  0xa2   : > { %v545_v45 = vsel %vm540_vm5, %v536_v42, %v916_v28  ;;  %v546_v35 = vsel %vm540_vm5, %v537_v40, %v917_v27 }
  0xa3   : > { %v930_v63 = vpop.permute.xlu1 %929  ;;  %v541_v41 = vsel %vm540_vm5, %v532_v44, %v911_v30  ;;  %v542_v13 = vsel %vm540_vm5, %v533_v43, %v912_v25  ;;  %v554_v57 = vsel %vm549_vm6, %v545_v45, %v886_v33  ;;  %v555_v58 = vsel %vm549_vm6, %v546_v35, %v887_v32 }
  0xa4   : > { %v1251_v10 = vpop.permute.xlu0 %919  ;;  %v932_v48 = vunpack.i.h.bf16 %v930_v63  ;;  %v931_v49 = vunpack.i.l.bf16 %v930_v63  ;;  %v550_v21 = vsel %vm549_vm6, %v541_v41, %v881_v51  ;;  %v551_v59 = vsel %vm549_vm6, %v542_v13, %v882_v50 }
  0xa5   : > { %v922_v54 = vunpack.i.h.bf16 %v1251_v10  ;;  %v921_v56 = vunpack.i.l.bf16 %v1251_v10 }
  0xa6   : > { %v547_v60 = vsel %vm540_vm5, %v538_v53, %v931_v49  ;;  %v548_v29 = vsel %vm540_vm5, %v539_v52, %v932_v48 }
  0xa7   : > { %v1253_v11 = vpop.permute.xlu1 %934  ;;  %v544_v2 = vsel %vm540_vm5, %v535_v15, %v922_v54  ;;  %v543_v3 = vsel %vm540_vm5, %v534_v9, %v921_v56 }
  0xa8   : > { %v1255_v12 = vpop.permute.xlu0 %924  ;;  %v937_v14 = vunpack.i.h.bf16 %v1253_v11  ;;  %v936_v61 = vunpack.i.l.bf16 %v1253_v11 }
  0xa9   : > { %v927_v0 = vunpack.i.h.bf16 %v1255_v12  ;;  %v926_v1 = vunpack.i.l.bf16 %v1255_v12 }
  0xaa   : > { %v556_v12 = vsel %vm549_vm6, %v547_v60, %v936_v61 }
  0xab   : > { %v1257_v16 = vpop.permute.xlu1 %944 }
  0xac   : > { %v1259_v17 = vpop.permute.xlu0 %939  ;;  %v947_v47 = vunpack.i.h.bf16 %v1257_v16  ;;  %v946_v55 = vunpack.i.l.bf16 %v1257_v16  ;;  %v557_v16 = vsel %vm549_vm6, %v548_v29, %v937_v14 }
  0xad   : > { %v942_v4 = vunpack.i.h.bf16 %v1259_v17  ;;  %v941_v5 = vunpack.i.l.bf16 %v1259_v17  ;;  %v552_v17 = vsel %vm549_vm6, %v543_v3, %v926_v1 }
  0xae   : > { %v563_v26 = vsel %vm558_vm7, %v554_v57, %v946_v55 }
  0xaf   : > { %v1261_v7 = vpop.permute.xlu1 %954  ;;  %v559_v27 = vsel %vm558_vm7, %v550_v21, %v941_v5  ;;  %v560_v28 = vsel %vm558_vm7, %v551_v59, %v942_v4 }
  0xb0   : > { %v1263_v18 = vpop.permute.xlu0 %949  ;;  %v957_v6 = vunpack.i.h.bf16 %v1261_v7  ;;  %v956_v8 = vunpack.i.l.bf16 %v1261_v7  ;;  %v553_v7 = vsel %vm549_vm6, %v544_v2, %v927_v0 }
  0xb1   : > { %v952_v63 = vunpack.i.h.bf16 %v1263_v18  ;;  %v951_v10 = vunpack.i.l.bf16 %v1263_v18  ;;  %v564_v18 = vsel %vm558_vm7, %v555_v58, %v947_v47 }
  0xb2   : > { %v566_v32 = vsel %vm558_vm7, %v557_v16, %v957_v6 }
  0xb3   : > { %v1265_v20 = vpop.permute.xlu1 %964  ;;  %v561_v33 = vsel %vm558_vm7, %v552_v17, %v951_v10  ;;  %v562_v34 = vsel %vm558_vm7, %v553_v7, %v952_v63 }
  0xb4   : > { %v1267_v31 = vpop.permute.xlu0 %959  ;;  %v967_v22 = vunpack.i.h.bf16 %v1265_v20  ;;  %v966_v23 = vunpack.i.l.bf16 %v1265_v20  ;;  %v565_v20 = vsel %vm558_vm7, %v556_v12, %v956_v8 }
  0xb5   : > { %v962_v25 = vunpack.i.h.bf16 %v1267_v31  ;;  %v961_v30 = vunpack.i.l.bf16 %v1267_v31 }
  0xb6   : > { %v572_v37 = vsel %vm567_vm8, %v563_v26, %v966_v23  ;;  %v573_v38 = vsel %vm567_vm8, %v564_v18, %v967_v22 }
  0xb7   : > { %v1279_v46 = vpop.permute.xlu1 %974  ;;  %v568_v41 = vsel %vm567_vm8, %v559_v27, %v961_v30  ;;  %v569_v13 = vsel %vm567_vm8, %v560_v28, %v962_v25 }
  0xb8   : > { %v1283_v39 = vpop.permute.xlu0 %969  ;;  %v977_v40 = vunpack.i.h.bf16 %v1279_v46  ;;  %v976_v42 = vunpack.i.l.bf16 %v1279_v46 }
  0xb9   : > { %v972_v31 = vunpack.i.h.bf16 %v1283_v39  ;;  %v971_v44 = vunpack.i.l.bf16 %v1283_v39 }
  0xba   : > { %v574_v39 = vsel %vm567_vm8, %v565_v20, %v976_v42  ;;  %v575_v52 = vsel %vm567_vm8, %v566_v32, %v977_v40 }
  0xbb   : > { %v1299_v19 = vpop.permute.xlu1 %984  ;;  %v570_v57 = vsel %vm567_vm8, %v561_v33, %v971_v44  ;;  %v571_v58 = vsel %vm567_vm8, %v562_v34, %v972_v31 }
  0xbc   : > { %v1305_v62 = vpop.permute.xlu0 %979  ;;  %v987_v45 = vunpack.i.h.bf16 %v1299_v19  ;;  %v986_v35 = vunpack.i.l.bf16 %v1299_v19 }
  0xbd   : > { %v982_v48 = vunpack.i.h.bf16 %v1305_v62  ;;  %v981_v49 = vunpack.i.l.bf16 %v1305_v62 }
  0xbe   : > { %v581_v21 = vsel %vm576_vm9, %v572_v37, %v986_v35  ;;  %v582_v59 = vsel %vm576_vm9, %v573_v38, %v987_v45  ;;  %v826_v45 = vld [vmem:[%s1417_s2] ss:$0 sm:$0xff] }
  0xbf   : > { %v995_v11 = vpop.permute.xlu1 %994  ;;  %v577_v19 = vsel %vm576_vm9, %v568_v41, %v981_v49  ;;  %v578_v60 = vsel %vm576_vm9, %v569_v13, %v982_v48  ;;  %v827_v35 = vld [vmem:[%s1418_s3] ss:$0 sm:$0xff] }
  0xc0   : > { %v1323_v24 = vpop.permute.xlu0 %989  ;;  %v997_v50 = vunpack.i.h.bf16 %v995_v11  ;;  %v996_v46 = vunpack.i.l.bf16 %v995_v11 }
  0xc1   : > { %v992_v29 = vunpack.i.h.bf16 %v1323_v24  ;;  %v991_v14 = vunpack.i.l.bf16 %v1323_v24 }
  0xc2   : > { %v583_v61 = vsel %vm576_vm9, %v574_v39, %v996_v46  ;;  %v584_v62 = vsel %vm576_vm9, %v575_v52, %v997_v50 }
  0xc3   : > { %v1005_v36 = vpop.permute.xlu1 %1004  ;;  %v579_v23 = vsel %vm576_vm9, %v570_v57, %v991_v14  ;;  %v580_v18 = vsel %vm576_vm9, %v571_v58, %v992_v29 }
  0xc4   : > { %v1000_v43 = vpop.permute.xlu0 %999  ;;  %v1007_v51 = vunpack.i.h.bf16 %v1005_v36  ;;  %v1006_v15 = vunpack.i.l.bf16 %v1005_v36 }
  0xc5   : > { %v1002_v53 = vunpack.i.h.bf16 %v1000_v43  ;;  %v1001_v54 = vunpack.i.l.bf16 %v1000_v43 }
  0xc6   : > { %v590_v1 = vsel %vm585_vm10, %v581_v21, %v1006_v15  ;;  %v591_v47 = vsel %vm585_vm10, %v582_v59, %v1007_v51 }
  0xc7   : > { %v1015_v9 = vpop.permute.xlu1 %1014  ;;  %v586_v4 = vsel %vm585_vm10, %v577_v19, %v1001_v54  ;;  %v587_v5 = vsel %vm585_vm10, %v578_v60, %v1002_v53 }
  0xc8   : > { %v1010_v56 = vpop.permute.xlu0 %1009  ;;  %v1017_v6 = vunpack.i.h.bf16 %v1015_v9  ;;  %v1016_v8 = vunpack.i.l.bf16 %v1015_v9 }
  0xc9   : > { %v1012_v11 = vunpack.i.h.bf16 %v1010_v56  ;;  %v1011_v12 = vunpack.i.l.bf16 %v1010_v56 }
  0xca   : > { %v592_v20 = vsel %vm585_vm10, %v583_v61, %v1016_v8  ;;  %v593_v32 = vsel %vm585_vm10, %v584_v62, %v1017_v6 }
  0xcb   : > { %v1025_v0 = vpop.permute.xlu1 %1024  ;;  %v588_v36 = vsel %vm585_vm10, %v579_v23, %v1011_v12  ;;  %v589_v37 = vsel %vm585_vm10, %v580_v18, %v1012_v11 }
  0xcc   : > { %v1027_v55 = vunpack.i.h.bf16 %v1025_v0  ;;  %v1026_v2 = vunpack.i.l.bf16 %v1025_v0  ;;  %v1020_v3 = vpop.permute.xlu0 %1019 }
  0xcd   : > { %v1022_v63 = vunpack.i.h.bf16 %v1020_v3  ;;  %v1021_v10 = vunpack.i.l.bf16 %v1020_v3 }
  0xce   : > { %v599_v16 = vsel %vm594_vm11, %v590_v1, %v1026_v2  ;;  %v600_v22 = vsel %vm594_vm11, %v591_v47, %v1027_v55 }
  0xcf   : > { %v1035_v24 = vpop.permute.xlu1 %1034  ;;  %v595_v17 = vsel %vm594_vm11, %v586_v4, %v1021_v10  ;;  %v596_v7 = vsel %vm594_vm11, %v587_v5, %v1022_v63  ;;  %v605_v26 = vpack.c.bf16 %v600_v22, %v599_v16 }
  0xd0   : > { %v1037_v27 = vunpack.i.h.bf16 %v1035_v24  ;;  %v1036_v28 = vunpack.i.l.bf16 %v1035_v24  ;;  %v1030_v25 = vpop.permute.xlu0 %1029  ;;  %v603_v30 = vpack.c.bf16 %v596_v7, %v595_v17 }
  0xd1   : > { %v1032_v33 = vunpack.i.h.bf16 %v1030_v25  ;;  %v1031_v34 = vunpack.i.l.bf16 %v1030_v25  ;;  %849 = vmatprep.mubr.msk.bf16.mxu1 %vm627_vm12, %v605_v26 }
  0xd2   : > { %v601_v38 = vsel %vm594_vm11, %v592_v20, %v1036_v28  ;;  %v602_v40 = vsel %vm594_vm11, %v593_v32, %v1037_v27  ;;  %845 = vmatprep.mubr.msk.bf16.mxu0 %vm627_vm12, %v603_v30 }
  0xd3   : > { %v606_v42 = vpack.c.bf16 %v602_v40, %v601_v38  ;;  %v597_v43 = vsel %vm594_vm11, %v588_v36, %v1031_v34  ;;  %v598_v31 = vsel %vm594_vm11, %v589_v37, %v1032_v33 }
  0xd4   : > { %v604_v44 = vpack.c.bf16 %v598_v31, %v597_v43 }
  0xd5   : > { %850 = vmatmul.mubr.msk.bf16.vlgmr.msra.gmra.mxu1 %vm627_vm12, %v606_v42 }
  0xd6   : > { %846 = vmatmul.mubr.msk.bf16.vlgmr.msra.gmra.mxu0 %vm627_vm12, %v604_v44 }
 0x195   : > { %v851_v41 = vpop.f32.mrf.mxu1 }
 0x196   : > { %v847_v13 = vpop.f32.mrf.mxu0  ;;  %v722_v48 = vmul.f32 %v851_v41, %v826_v45 }
 0x197   : > { %v718_v49 = vmul.f32 %v847_v13, %v826_v45  ;;  %v694_v50 = vpop.f32.mrf.mxu1 }
 0x198   : > { %v737_v46 = vadd.f32 %v827_v35, %v722_v48  ;;  %v678_v51 = vpop.f32.mrf.mxu0  ;;  %v720_v15 = vmul.f32 %v826_v45, %v694_v50 }
 0x199   : > { %v733_v9 = vadd.f32 %v827_v35, %v718_v49  ;;  %v716_v39 = vmul.f32 %v826_v45, %v678_v51  ;;  %v852_v52 = vpop.f32.mrf.mxu1 }
 0x19a   : > { %v745_v53 = vmax.f32 %v737_v46, 0.0  ;;  %v735_v54 = vadd.f32 %v827_v35, %v720_v15  ;;  %v848_v56 = vpop.f32.mrf.mxu0  ;;  %v723_v57 = vmul.f32 %v852_v52, %v826_v45 }
 0x19b   : > { %v741_v58 = vmax.f32 %v733_v9, 0.0  ;;  %v731_v21 = vadd.f32 %v827_v35, %v716_v39  ;;  %v719_v59 = vmul.f32 %v848_v56, %v826_v45  ;;  %v697_v19 = vpop.f32.mrf.mxu1 }
 0x19c   : > { %753 = vst.msk [vmem:[%s1394_s19 + $0x30] sm:$0xff] %vm199_vm0, %v745_v53  ;;  %v743_v60 = vmax.f32 %v735_v54, 0.0  ;;  %v738_v29 = vadd.f32 %v827_v35, %v723_v57  ;;  %v681_v14 = vpop.f32.mrf.mxu0  ;;  %v721_v61 = vmul.f32 %v826_v45, %v697_v19 }
 0x19d   : > { %749 = vst.msk [vmem:[%s1394_s19 + $0x10] sm:$0xff] %vm199_vm0, %v741_v58  ;;  %v739_v62 = vmax.f32 %v731_v21, 0.0  ;;  %v734_v0 = vadd.f32 %v827_v35, %v719_v59  ;;  %v717_v1 = vmul.f32 %v826_v45, %v681_v14 }
 0x19e   : > { %751 = vst.msk [vmem:[%s1394_s19 + $0x20] sm:$0xff] %vm199_vm0, %v743_v60  ;;  %v746_v47 = vmax.f32 %v738_v29, 0.0  ;;  %v736_v55 = vadd.f32 %v827_v35, %v721_v61 }
 0x19f   : > { %747 = vst.msk [vmem:[%s1394_s19] sm:$0xff] %vm199_vm0, %v739_v62  ;;  %v742_v2 = vmax.f32 %v734_v0, 0.0  ;;  %v732_v3 = vadd.f32 %v827_v35, %v717_v1 }
 0x1a0   : > { %754 = vst.msk [vmem:[%s1394_s19 + $0x38] sm:$0xff] %vm199_vm0, %v746_v47  ;;  %v744_v4 = vmax.f32 %v736_v55, 0.0 }
 0x1a1   : > { %750 = vst.msk [vmem:[%s1394_s19 + $0x18] sm:$0xff] %vm199_vm0, %v742_v2  ;;  %v740_v5 = vmax.f32 %v732_v3, 0.0 }
 0x1a2   : > { %752 = vst.msk [vmem:[%s1394_s19 + $0x28] sm:$0xff] %vm199_vm0, %v744_v4 }
 0x1a3   : > { %748 = vst.msk [vmem:[%s1394_s19 + $0x8] sm:$0xff] %vm199_vm0, %v740_v5 }
 0x1a4 PF: > { %s14_s15 = sadd.s32 1, %s1047_s15  }
 0x1a5   : > { %p11_p4 = scmp.ge.s32.totalorder %s14_s15, 4  }
 0x1a7   :  { %13 = sbr.rel (!%p11_p4) target bundleno = 1 (0x1), region = 67 }

// kernel: _lambda_.8
= control target key start
LH: loop header
LB: loop body
LE: loop exit
PB: predicated region body
PF: predicated region fallthrough
CT: control target
= control target key end

     0   :  { %s5098_s29 = smov 0   ;;  %s6760_s0 = inlined_call_operand.vmem [shape: f32[2,16,16,8], index: 0, kind: input, shape index: {}]   ;;  %s6761_s1 = inlined_call_operand.vmem [shape: f32[8,4], index: 1, kind: input, shape index: {}]   ;;  %s6762_s2 = inlined_call_operand.vmem [shape: f32[1,4], index: 2, kind: input, shape index: {}]   ;;  %s6763_s3 = inlined_call_operand.vmem [shape: f32[4,8], index: 3, kind: input, shape index: {}]   ;;  %s6764_s4 = inlined_call_operand.vmem [shape: f32[1,8], index: 4, kind: input, shape index: {}]   ;;  %s6765_s5 = inlined_call_operand.vmem [shape: f32[8,1], index: 5, kind: input, shape index: {}]   ;;  %s6766_s6 = inlined_call_operand.<no memory space> [shape: f32[1,1], index: 6, kind: input, shape index: {}]   ;;  %s6767_s7 = inlined_call_operand.vmem [shape: bf16[72,4], index: 7, kind: input, shape index: {}]   ;;  %s6768_s8 = inlined_call_operand.vmem [shape: f32[1,4], index: 8, kind: input, shape index: {}]   ;;  %s6769_s9 = inlined_call_operand.vmem [shape: f32[1,4], index: 9, kind: input, shape index: {}]   ;;  %s6770_s10 = inlined_call_operand.vmem [shape: f32[4,1], index: 10, kind: input, shape index: {}]   ;;  %s6771_s12 = inlined_call_operand.vmem [shape: f32[2,256,8], index: 12, kind: output, shape index: {0}]   ;;  %s6772_s13 = inlined_call_operand.vmem [shape: f32[2,256,1], index: 13, kind: output, shape index: {1}]   ;;  %s6773_s11 = inlined_call_operand.<no memory space> [shape: f32[1,1], index: 11, kind: input, shape index: {}]  }
   0x1   :  { %v19_v0 = vstv %s6766_s6  ;;  %v21_v1 = vstv %s6773_s11 }
   0x2   :  { %20 = vst [vmem:[#allocation3] sm:$0x1] %v19_v0  ;;  %22 = vst [vmem:[#allocation4] sm:$0x1] %v21_v1 }
   0x3 LB: > { %s3775_s30 = sadd.s32 4294967295, %s5009_s29   ;;  %p3779_p0 = scmp.ge.s32.totalorder %s5009_s29, 1  ;;  %s5009_s29 = sphi %s5098_s29, %s28_s29  }
   0x4   : > { %p394_p1 = scmp.lt.s32.totalorder %s5009_s29, 3 }
   0x6   : > { %p395_p2 = pnand %p3779_p0, %p394_p1 }
   0x7   : > { %p5111_p3 = scmp.lt.s32.totalorder (!%p395_p2), %s3775_s30, 1  ;;  %s5013_s23 = smov (!%p395_p2), 48  }
   0x8   : > { %398 = sbr.rel (%p395_p2) target bundleno = 1401 (0x579), region = 68  ;;  %s5015_s24 = smov (!%p395_p2), 8  }
   0x9   : > { %s5016_s25 = smov (!%p395_p2), 56   ;;  %s5017_s26 = smov (!%p395_p2), 16  }
   0xa   : > { %s5018_s16 = smov (!%p395_p2), 24   ;;  %s5019_s21 = smov (!%p395_p2), 32  }
   0xb   : > { %s5020_s28 = smov (!%p395_p2), 40   ;;  %s5021_s18 = smov (!%p395_p2), 64  }
   0xd   : > { %v563_v2 = vld [vmem:[%s6761_s1] sm:$0xff]  ;;  %vm491_vm0 = vcmask 64512   ;;  %v5011_v4 = vmov 0.0   ;;  %vm5012_vm1 = vmmov 0   ;;  %s6776_s30 = smov (!%p5111_p3, %s3775_s30), 1  ;;  %vm645_vm2 = vcmask 1043456  }
   0xe   : > { %v5118_v3 = vld [vmem:[%s6765_s5] sm:$0xff]  ;;  %4008 = vmatprep.subr.mxu0 %v5011_v4  ;;  %4010 = vmatprep.mubr.msk.f32.mxu0 %vm5012_vm1, %v5011_v4  ;;  %1538 = vst.msk [vmem:[#allocation2] sm:$0xff] %vm491_vm0, %v5011_v4  ;;  %1539 = vst.msk [vmem:[#allocation2 + $0x8] sm:$0xff] %vm491_vm0, %v5011_v4  ;;  %s5203_s17 = sshll.u32 %s6776_s30, 8  ;;  %vm1540_vm3 = vcmask 58368   ;;  %vm1728_vm4 = vcmask 1046528  }
   0xf   : > { %1542 = vst.msk [vmem:[#allocation2 + $0x18] sm:$0xff] %vm491_vm0, %v5011_v4  ;;  %1543 = vst.msk [vmem:[#allocation2 + $0x20] sm:$0xff] %vm491_vm0, %v5011_v4  ;;  %4009 = vmatpush3.msra.mxu0 %v563_v2  ;;  %4013 = vmatprep.subr.mxu1 %v5011_v4  ;;  %s5209_s20 = scalar_lea.vmem %s6760_s0, %s5203_s17  ;;  %vm1809_vm5 = vcmask 1045504   ;;  %vm641_vm6 = vcmask 31744   ;;  %s5574_s15 = scalar_lea.vmem %s6771_s12, %s5203_s17  ;;  %vm2716_vm7 = vcmask 130048   ;;  %vm2749_vm8 = vcmask 195584  }
  0x10   : > { %1545 = vst.msk [vmem:[#allocation2 + $0x30] sm:$0xff] %vm491_vm0, %v5011_v4  ;;  %1546 = vst.msk [vmem:[#allocation2 + $0x38] sm:$0xff] %vm491_vm0, %v5011_v4  ;;  %4018 = vmatprep.subr.mxu0 %v5118_v3  ;;  %4015 = vmatprep.mubr.msk.f32.mxu1 %vm5012_vm1, %v5011_v4  ;;  %v5212_v5 = vld [vmem:[%s5209_s20] sm:$0xff]  ;;  %v5215_v6 = vld [vmem:[%s5209_s20 + $0x8] sm:$0xff]  ;;  %vm2782_vm9 = vcmask 261120   ;;  %vm2815_vm10 = vcmask 326656  }
  0x11   : > { %1548 = vst.msk [vmem:[#allocation2 + $0x48] sm:$0xff] %vm491_vm0, %v5011_v4  ;;  %1549 = vst.msk [vmem:[#allocation2 + $0x50] sm:$0xff] %vm491_vm0, %v5011_v4  ;;  %v5218_v7 = vld [vmem:[%s5209_s20 + $0x10] sm:$0xff]  ;;  %v5221_v8 = vld [vmem:[%s5209_s20 + $0x18] sm:$0xff]  ;;  %v492_v9 = vsel %vm491_vm0, %v5212_v5, 0.0  ;;  %v493_v10 = vsel %vm491_vm0, %v5215_v6, 0.0 }
  0x12   : > { %1551 = vst.msk [vmem:[#allocation2 + $0x60] sm:$0xff] %vm491_vm0, %v5011_v4  ;;  %1552 = vst.msk [vmem:[#allocation2 + $0x68] sm:$0xff] %vm491_vm0, %v5011_v4  ;;  %v495_v11 = vsel %vm491_vm0, %v5218_v7, 0.0  ;;  %v5230_v12 = vld [vmem:[%s5209_s20 + $0x20] sm:$0xff]  ;;  %v494_v13 = vadd.f32 %v493_v10, %v492_v9  ;;  %v497_v14 = vsel %vm491_vm0, %v5221_v8, 0.0  ;;  %v5235_v15 = vld [vmem:[%s5209_s20 + $0x28] sm:$0xff] }
  0x13   : > { %1554 = vst.msk [vmem:[#allocation2 + $0x78] sm:$0xff] %vm491_vm0, %v5011_v4  ;;  %1555 = vst.msk [vmem:[#allocation2 + $0x80] sm:$0xff] %vm491_vm0, %v5011_v4  ;;  %v499_v17 = vsel %vm491_vm0, %v5230_v12, 0.0  ;;  %v5240_v18 = vld [vmem:[%s5209_s20 + $0x30] sm:$0xff]  ;;  %v501_v20 = vsel %vm491_vm0, %v5235_v15, 0.0  ;;  %v5245_v21 = vld [vmem:[%s5209_s20 + $0x38] sm:$0xff] }
  0x14   : > { %1557 = vst.msk [vmem:[#allocation2 + $0x90] sm:$0xff] %vm491_vm0, %v5011_v4  ;;  %1558 = vst.msk [vmem:[#allocation2 + $0x98] sm:$0xff] %vm491_vm0, %v5011_v4  ;;  %v496_v16 = vadd.f32 %v495_v11, %v494_v13  ;;  %v503_v23 = vsel %vm491_vm0, %v5240_v18, 0.0  ;;  %v5250_v24 = vld [vmem:[%s5209_s20 + $0x40] sm:$0xff]  ;;  %v505_v26 = vsel %vm491_vm0, %v5245_v21, 0.0  ;;  %v5255_v27 = vld [vmem:[%s5209_s20 + $0x48] sm:$0xff] }
  0x15   : > { %1560 = vst.msk [vmem:[#allocation2 + $0xa8] sm:$0xff] %vm491_vm0, %v5011_v4  ;;  %1561 = vst.msk [vmem:[#allocation2 + $0xb0] sm:$0xff] %vm491_vm0, %v5011_v4  ;;  %v507_v29 = vsel %vm491_vm0, %v5250_v24, 0.0  ;;  %v5260_v30 = vld [vmem:[%s5209_s20 + $0x50] sm:$0xff]  ;;  %v509_v32 = vsel %vm491_vm0, %v5255_v27, 0.0  ;;  %v5265_v33 = vld [vmem:[%s5209_s20 + $0x58] sm:$0xff] }
  0x16   : > { %1563 = vst.msk [vmem:[#allocation2 + $0xc0] sm:$0xff] %vm491_vm0, %v5011_v4  ;;  %1564 = vst.msk [vmem:[#allocation2 + $0xc8] sm:$0xff] %vm491_vm0, %v5011_v4  ;;  %v498_v19 = vadd.f32 %v497_v14, %v496_v16  ;;  %v511_v35 = vsel %vm491_vm0, %v5260_v30, 0.0  ;;  %v5270_v36 = vld [vmem:[%s5209_s20 + $0x60] sm:$0xff]  ;;  %v513_v38 = vsel %vm491_vm0, %v5265_v33, 0.0  ;;  %v5275_v39 = vld [vmem:[%s5209_s20 + $0x68] sm:$0xff] }
  0x17   : > { %1566 = vst.msk [vmem:[#allocation2 + $0xd8] sm:$0xff] %vm491_vm0, %v5011_v4  ;;  %1567 = vst.msk [vmem:[#allocation2 + $0xe0] sm:$0xff] %vm491_vm0, %v5011_v4  ;;  %v515_v41 = vsel %vm491_vm0, %v5270_v36, 0.0  ;;  %v5280_v42 = vld [vmem:[%s5209_s20 + $0x70] sm:$0xff]  ;;  %v517_v44 = vsel %vm491_vm0, %v5275_v39, 0.0  ;;  %v5285_v45 = vld [vmem:[%s5209_s20 + $0x78] sm:$0xff] }
  0x18   : > { %1569 = vst.msk [vmem:[#allocation2 + $0xf0] sm:$0xff] %vm491_vm0, %v5011_v4  ;;  %1570 = vst.msk [vmem:[#allocation2 + $0xf8] sm:$0xff] %vm491_vm0, %v5011_v4  ;;  %v500_v22 = vadd.f32 %v499_v17, %v498_v19  ;;  %v519_v47 = vsel %vm491_vm0, %v5280_v42, 0.0  ;;  %v5290_v48 = vld [vmem:[%s5209_s20 + $0x80] sm:$0xff]  ;;  %v521_v50 = vsel %vm491_vm0, %v5285_v45, 0.0  ;;  %v5295_v51 = vld [vmem:[%s5209_s20 + $0x88] sm:$0xff] }
  0x19   : > { %1572 = vst.msk [vmem:[#allocation2 + $0x108] sm:$0xff] %vm491_vm0, %v5011_v4  ;;  %1573 = vst.msk [vmem:[#allocation2 + $0x110] sm:$0xff] %vm491_vm0, %v5011_v4  ;;  %v523_v53 = vsel %vm491_vm0, %v5290_v48, 0.0  ;;  %v5300_v54 = vld [vmem:[%s5209_s20 + $0x90] sm:$0xff]  ;;  %v525_v56 = vsel %vm491_vm0, %v5295_v51, 0.0  ;;  %v5305_v57 = vld [vmem:[%s5209_s20 + $0x98] sm:$0xff] }
  0x1a   : > { %1575 = vst.msk [vmem:[#allocation2 + $0x120] sm:$0xff] %vm491_vm0, %v5011_v4  ;;  %1576 = vst.msk [vmem:[#allocation2 + $0x128] sm:$0xff] %vm491_vm0, %v5011_v4  ;;  %v502_v25 = vadd.f32 %v501_v20, %v500_v22  ;;  %v527_v59 = vsel %vm491_vm0, %v5300_v54, 0.0  ;;  %v5310_v60 = vld [vmem:[%s5209_s20 + $0xa0] sm:$0xff]  ;;  %v529_v62 = vsel %vm491_vm0, %v5305_v57, 0.0  ;;  %v5315_v63 = vld [vmem:[%s5209_s20 + $0xa8] sm:$0xff] }
  0x1b   : > { %1578 = vst.msk [vmem:[#allocation2 + $0x138] sm:$0xff] %vm491_vm0, %v5011_v4  ;;  %1579 = vst.msk [vmem:[#allocation2 + $0x140] sm:$0xff] %vm491_vm0, %v5011_v4  ;;  %v531_v1 = vsel %vm491_vm0, %v5310_v60, 0.0  ;;  %v5320_v2 = vld [vmem:[%s5209_s20 + $0xb0] sm:$0xff]  ;;  %v533_v10 = vsel %vm491_vm0, %v5315_v63, 0.0  ;;  %v5325_v11 = vld [vmem:[%s5209_s20 + $0xb8] sm:$0xff] }
  0x1c   : > { %1581 = vst.msk [vmem:[#allocation2 + $0x150] sm:$0xff] %vm491_vm0, %v5011_v4  ;;  %1582 = vst.msk [vmem:[#allocation2 + $0x158] sm:$0xff] %vm491_vm0, %v5011_v4  ;;  %v504_v28 = vadd.f32 %v503_v23, %v502_v25  ;;  %v535_v14 = vsel %vm491_vm0, %v5320_v2, 0.0  ;;  %v5330_v16 = vld [vmem:[%s5209_s20 + $0xc0] sm:$0xff]  ;;  %v537_v19 = vsel %vm491_vm0, %v5325_v11, 0.0  ;;  %v5335_v20 = vld [vmem:[%s5209_s20 + $0xc8] sm:$0xff] }
  0x1d   : > { %1584 = vst.msk [vmem:[#allocation2 + $0x168] sm:$0xff] %vm491_vm0, %v5011_v4  ;;  %1585 = vst.msk [vmem:[#allocation2 + $0x170] sm:$0xff] %vm491_vm0, %v5011_v4  ;;  %v539_v23 = vsel %vm491_vm0, %v5330_v16, 0.0  ;;  %v5340_v25 = vld [vmem:[%s5209_s20 + $0xd0] sm:$0xff]  ;;  %vm2848_vm11 = vcmask 392192   ;;  %vm2881_vm12 = vcmask 457728  }
  0x1e   : > { %1587 = vst.msk [vmem:[#allocation2 + $0x180] sm:$0xff] %vm491_vm0, %v5011_v4  ;;  %1588 = vst.msk [vmem:[#allocation2 + $0x188] sm:$0xff] %vm491_vm0, %v5011_v4  ;;  %v506_v31 = vadd.f32 %v505_v26, %v504_v28  ;;  %v541_v28 = vsel %vm491_vm0, %v5335_v20, 0.0  ;;  %vm2914_vm13 = vcmask 523264   ;;  %vm2999_vm14 = vcmask 588800  }
  0x1f   : > { %1590 = vst.msk [vmem:[#allocation2 + $0x198] sm:$0xff] %vm491_vm0, %v5011_v4  ;;  %1591 = vst.msk [vmem:[#allocation2 + $0x1a0] sm:$0xff] %vm491_vm0, %v5011_v4  ;;  %vm3654_vm15 = vcmask 7168  }
  0x20   : > { %v508_v34 = vadd.f32 %v507_v29, %v506_v31  ;;  %v5345_v29 = vld [vmem:[%s5209_s20 + $0xd8] sm:$0xff]  ;;  %1541 = vst.msk [vmem:[#allocation2 + $0x10] sm:$0x3] %vm1540_vm3, %v5011_v4  ;;  %1544 = vst.msk [vmem:[#allocation2 + $0x28] sm:$0x3] %vm1540_vm3, %v5011_v4 }
  0x21   : > { %1547 = vst.msk [vmem:[#allocation2 + $0x40] sm:$0x3] %vm1540_vm3, %v5011_v4  ;;  %1550 = vst.msk [vmem:[#allocation2 + $0x58] sm:$0x3] %vm1540_vm3, %v5011_v4 }
  0x22   : > { %v510_v37 = vadd.f32 %v509_v32, %v508_v34  ;;  %v543_v32 = vsel %vm491_vm0, %v5340_v25, 0.0  ;;  %v5350_v34 = vld [vmem:[%s5209_s20 + $0xe0] sm:$0xff]  ;;  %1553 = vst.msk [vmem:[#allocation2 + $0x70] sm:$0x3] %vm1540_vm3, %v5011_v4  ;;  %1556 = vst.msk [vmem:[#allocation2 + $0x88] sm:$0x3] %vm1540_vm3, %v5011_v4 }
  0x23   : > { %1559 = vst.msk [vmem:[#allocation2 + $0xa0] sm:$0x3] %vm1540_vm3, %v5011_v4  ;;  %1562 = vst.msk [vmem:[#allocation2 + $0xb8] sm:$0x3] %vm1540_vm3, %v5011_v4 }
  0x24   : > { %v512_v40 = vadd.f32 %v511_v35, %v510_v37  ;;  %v545_v37 = vsel %vm491_vm0, %v5345_v29, 0.0  ;;  %1565 = vst.msk [vmem:[#allocation2 + $0xd0] sm:$0x3] %vm1540_vm3, %v5011_v4  ;;  %1568 = vst.msk [vmem:[#allocation2 + $0xe8] sm:$0x3] %vm1540_vm3, %v5011_v4 }
  0x25   : > { %1571 = vst.msk [vmem:[#allocation2 + $0x100] sm:$0x3] %vm1540_vm3, %v5011_v4  ;;  %1574 = vst.msk [vmem:[#allocation2 + $0x118] sm:$0x3] %vm1540_vm3, %v5011_v4 }
  0x26   : > { %v514_v43 = vadd.f32 %v513_v38, %v512_v40  ;;  %v5355_v38 = vld [vmem:[%s5209_s20 + $0xe8] sm:$0xff]  ;;  %1577 = vst.msk [vmem:[#allocation2 + $0x130] sm:$0x3] %vm1540_vm3, %v5011_v4  ;;  %1580 = vst.msk [vmem:[#allocation2 + $0x148] sm:$0x3] %vm1540_vm3, %v5011_v4 }
  0x27   : > { %1583 = vst.msk [vmem:[#allocation2 + $0x160] sm:$0x3] %vm1540_vm3, %v5011_v4  ;;  %1586 = vst.msk [vmem:[#allocation2 + $0x178] sm:$0x3] %vm1540_vm3, %v5011_v4 }
  0x28   : > { %v516_v46 = vadd.f32 %v515_v41, %v514_v43  ;;  %v547_v41 = vsel %vm491_vm0, %v5350_v34, 0.0  ;;  %v5360_v43 = vld [vmem:[%s5209_s20 + $0xf0] sm:$0xff]  ;;  %1589 = vst.msk [vmem:[#allocation2 + $0x190] sm:$0x3] %vm1540_vm3, %v5011_v4  ;;  %1592 = vst.msk [vmem:[#allocation2 + $0x1a8] sm:$0x3] %vm1540_vm3, %v5011_v4 }
  0x2a   : > { %v518_v49 = vadd.f32 %v517_v44, %v516_v46  ;;  %v549_v46 = vsel %vm491_vm0, %v5355_v38, 0.0 }
  0x2c   : > { %v520_v52 = vadd.f32 %v519_v47, %v518_v49  ;;  %v5365_v47 = vld [vmem:[%s5209_s20 + $0xf8] sm:$0xff] }
  0x2e   : > { %v522_v55 = vadd.f32 %v521_v50, %v520_v52  ;;  %v551_v50 = vsel %vm491_vm0, %v5360_v43, 0.0 }
  0x2f   : > { %v1679_v4 = vld [vmem:[#allocation2 + $0x1a8] sm:$0x3] }
  0x30   : > { %v524_v58 = vadd.f32 %v523_v53, %v522_v55  ;;  %v553_v53 = vsel %vm491_vm0, %v5365_v47, 0.0 }
  0x32   : > { %v526_v61 = vadd.f32 %v525_v56, %v524_v58 }
  0x34   : > { %v528_v0 = vadd.f32 %v527_v59, %v526_v61 }
  0x36   : > { %v530_v9 = vadd.f32 %v529_v62, %v528_v0 }
  0x38   : > { %v532_v13 = vadd.f32 %v531_v1, %v530_v9 }
  0x3a   : > { %v534_v17 = vadd.f32 %v533_v10, %v532_v13  ;;  %v639_v10 = vld [vmem:[%s6763_s3] sm:$0xf] }
  0x3b   : > { %4014 = vmatpush3.msk.msra.mxu1 %vm645_vm2, %v639_v10  ;;  %v1626_v13 = vld [vmem:[#allocation2] sm:$0xff]  ;;  %v5459_v10 = vld [vmem:[#allocation3] ss:$0 sm:$0xff] }
  0x3c   : > { %v536_v22 = vadd.f32 %v535_v14, %v534_v17  ;;  %4160 = vmatprep.subr.mxu1 %v5118_v3  ;;  %v1627_v14 = vld [vmem:[#allocation2 + $0x8] sm:$0xff]  ;;  %v1677_v17 = vld [vmem:[#allocation2 + $0x198] sm:$0xff] }
  0x3e   : > { %v538_v26 = vadd.f32 %v537_v19, %v536_v22  ;;  %v1678_v19 = vld [vmem:[#allocation2 + $0x1a0] sm:$0xff] }
  0x3f   : > { %v4182_v22 = vpack.i.bf16 %v1678_v19, %v1677_v17 }
  0x40   : > { %v540_v31 = vadd.f32 %v539_v23, %v538_v26  ;;  %v1729_v23 = vrot.slane %v1626_v13, 1  ;;  %v1730_v26 = vrot.slane %v1627_v14, 1 }
  0x41   : > { %4183 = vrot.lane.b32.xlu1 %v4182_v22, %s5013_s23 }
  0x42   : > { %v542_v35 = vadd.f32 %v541_v28, %v540_v31  ;;  %v1907_v28 = vrot.slane %v1678_v19, 1  ;;  %v1906_v31 = vrot.slane %v1677_v17, 1 }
  0x44   : > { %v544_v40 = vadd.f32 %v543_v32, %v542_v35  ;;  %v5014_v32 = vmov 0   ;;  %v1810_v35 = vrot.slane %v1626_v13, 2 }
  0x45   : > { %4202 = vset.pattern.permute.xlu0 %v5014_v32  ;;  %4203 = vset.pattern.permute.xlu1 %v5014_v32 }
  0x46   : > { %v546_v44 = vadd.f32 %v545_v37, %v544_v40  ;;  %v1811_v37 = vrot.slane %v1627_v14, 2  ;;  %v1628_v40 = vld [vmem:[#allocation2 + $0x10] sm:$0x3] }
  0x48   : > { %v548_v49 = vadd.f32 %v547_v41, %v546_v44  ;;  %v1731_v41 = vsel %vm1728_vm4, %v1729_v23, %v1730_v26  ;;  %v1732_v44 = vrot.slane %v1628_v40, 1 }
  0x4a   : > { %v550_v52 = vadd.f32 %v549_v46, %v548_v49  ;;  %v1813_v46 = vrot.slane %v1628_v40, 2  ;;  %v1908_v49 = vsel %vm1728_vm4, %v1906_v31, %v1907_v28 }
  0x4c   : > { %v552_v55 = vadd.f32 %v551_v50, %v550_v52  ;;  %v1909_v50 = vrot.slane %v1679_v4, 1  ;;  %v1733_v52 = vsel %vm1728_vm4, %v1730_v26, %v1732_v44 }
  0x4e   : > { %v554_v56 = vadd.f32 %v553_v53, %v552_v55  ;;  %v1812_v53 = vsel %vm1809_vm5, %v1810_v35, %v1811_v37  ;;  %v1814_v55 = vsel %vm1809_vm5, %v1811_v37, %v1813_v46 }
  0x50   : > { %v555_v58 = vrot.slane %v554_v56, 4 }
  0x52   : > { %v556_v59 = vadd.f32 %v555_v58, %v554_v56  ;;  %v1910_v56 = vsel %vm1728_vm4, %v1907_v28, %v1909_v50  ;;  %v4187_v58 = vpack.i.bf16 %v1733_v52, %v1731_v41 }
  0x54   : > { %v557_v61 = vrot.slane %v556_v59, 2  ;;  %4188 = vrot.lane.b32.xlu0 %v4187_v58, %s5015_s24 }
  0x56   : > { %v558_v62 = vadd.f32 %v557_v61, %v556_v59  ;;  %v4197_v59 = vpack.i.bf16 %v1910_v56, %v1908_v49  ;;  %v4192_v61 = vpack.i.bf16 %v1814_v55, %v1812_v53 }
  0x58   : > { %v559_v0 = vrot.slane %v558_v62, 1  ;;  %4198 = vrot.lane.b32.xlu1 %v4197_v59, %s5016_s25  ;;  %4193 = vrot.lane.b32.xlu0 %v4192_v61, %s5017_s26 }
  0x5a   : > { %v560_v1 = vadd.f32 %v559_v0, %v558_v62  ;;  %v564_v62 = vld [vmem:[%s6762_s2] sm:$0x1] }
  0x5c   : > { %v562_v9 = vmul.f32 0.00390625, %v560_v1 }
  0x5e   : > { %4011 = vmatmul.mubr.msk.f32.vlgmr.msra.gmra.mxu0 %vm491_vm0, %v562_v9 }
  0x5f   : > { %4019 = vmatpush3.msra.mxu0 %v5118_v3  ;;  %4020 = vmatprep.mubr.msk.f32.mxu0 %vm491_vm0, %v5212_v5 }
  0x62   : > { %4021 = vmatmul.mubr.msk.f32.vlgmr.msra.gmra.mxu0 %vm491_vm0, %v5215_v6 }
  0x63   : > { %4023 = vmatprep.mubr.msk.f32.mxu0 %vm491_vm0, %v5218_v7 }
  0x66   : > { %4024 = vmatmul.mubr.msk.f32.gmra.mxu0 %vm491_vm0, %v5221_v8 }
  0x67   : > { %4026 = vmatprep.mubr.msk.f32.mxu0 %vm491_vm0, %v5230_v12 }
  0x6a   : > { %4027 = vmatmul.mubr.msk.f32.gmra.mxu0 %vm491_vm0, %v5235_v15 }
  0x6b   : > { %4029 = vmatprep.mubr.msk.f32.mxu0 %vm491_vm0, %v5240_v18 }
  0x6e   : > { %4030 = vmatmul.mubr.msk.f32.gmra.mxu0 %vm491_vm0, %v5245_v21 }
  0x6f   : > { %4032 = vmatprep.mubr.msk.f32.mxu0 %vm491_vm0, %v5250_v24 }
  0x72   : > { %4033 = vmatmul.mubr.msk.f32.gmra.mxu0 %vm491_vm0, %v5255_v27 }
  0x73   : > { %4035 = vmatprep.mubr.msk.f32.mxu0 %vm491_vm0, %v5260_v30 }
  0x76   : > { %4036 = vmatmul.mubr.msk.f32.gmra.mxu0 %vm491_vm0, %v5265_v33 }
  0x77   : > { %4038 = vmatprep.mubr.msk.f32.mxu0 %vm491_vm0, %v5270_v36 }
  0x7a   : > { %4039 = vmatmul.mubr.msk.f32.gmra.mxu0 %vm491_vm0, %v5275_v39 }
  0x7b   : > { %4041 = vmatprep.mubr.msk.f32.mxu0 %vm491_vm0, %v5280_v42 }
  0x7e   : > { %4042 = vmatmul.mubr.msk.f32.gmra.mxu0 %vm491_vm0, %v5285_v45 }
 0x11e   : > { %v634_v0 = vpop.f32.mrf.mxu0 }
 0x11f   : > { %v635_v1 = vadd.f32 %v634_v0, %v564_v62 }
 0x120   : > { %v4012_v9 = vpop.f32.mrf.mxu0 }
 0x121   : > { %v638_v13 = vmax.f32 %v635_v1, 0.0 }
 0x122   : > { %v4022_v14 = vpop.f32.mrf.mxu0 }
 0x123   : > { %4016 = vmatmul.mubr.msk.f32.vlgmr.msra.gmra.mxu1 %vm641_vm6, %v638_v13  ;;  %v901_v17 = vadd.f32 %v4022_v14, %v5459_v10 }
 0x124   : > { %4161 = vmatpush3.msra.mxu1 %v5118_v3  ;;  %4044 = vmatprep.mubr.msk.f32.mxu1 %vm491_vm0, %v5290_v48  ;;  %v895_v19 = vpop.f32.mrf.mxu0 }
 0x125   : > { %v3824_v22 = vmul.f32 -1.442695, %v901_v17  ;;  %v896_v23 = vadd.f32 %v5459_v10, %v895_v19 }
 0x126   : > { %v4025_v26 = vpop.f32.mrf.mxu0 }
 0x127   : > { %4045 = vmatmul.mubr.msk.f32.vlgmr.msra.gmra.mxu1 %vm491_vm0, %v5295_v51  ;;  %4829 = vpow2.f32 %v3824_v22  ;;  %v3823_v28 = vmul.f32 -1.442695, %v896_v23  ;;  %v911_v31 = vadd.f32 %v4025_v26, %v5459_v10 }
 0x128   : > { %4047 = vmatprep.mubr.msk.f32.mxu1 %vm491_vm0, %v5300_v54  ;;  %v905_v32 = vpop.f32.mrf.mxu0 }
 0x129   : > { %4831 = vpow2.f32 %v3823_v28  ;;  %v3826_v3 = vmul.f32 -1.442695, %v911_v31  ;;  %v906_v48 = vadd.f32 %v5459_v10, %v905_v32 }
 0x12a   : > { %v4028_v35 = vpop.f32.mrf.mxu0 }
 0x12b   : > { %4048 = vmatmul.mubr.msk.f32.gmra.mxu1 %vm491_vm0, %v5305_v57  ;;  %4833 = vpow2.f32 %v3826_v3  ;;  %v3825_v37 = vmul.f32 -1.442695, %v906_v48  ;;  %v921_v51 = vadd.f32 %v4028_v35, %v5459_v10 }
 0x12c   : > { %4050 = vmatprep.mubr.msk.f32.mxu1 %vm491_vm0, %v5310_v60  ;;  %v915_v40 = vpop.f32.mrf.mxu0 }
 0x12d   : > { %4835 = vpow2.f32 %v3825_v37  ;;  %v3828_v41 = vmul.f32 -1.442695, %v921_v51  ;;  %v916_v54 = vadd.f32 %v5459_v10, %v915_v40 }
 0x12e   : > { %v4031_v4 = vpop.f32.mrf.mxu0 }
 0x12f   : > { %4051 = vmatmul.mubr.msk.f32.gmra.mxu1 %vm491_vm0, %v5315_v63  ;;  %4837 = vpow2.f32 %v3828_v41  ;;  %v3827_v44 = vmul.f32 -1.442695, %v916_v54  ;;  %v931_v57 = vadd.f32 %v4031_v4, %v5459_v10 }
 0x130   : > { %4053 = vmatprep.mubr.msk.f32.mxu1 %vm491_vm0, %v5320_v2  ;;  %v925_v46 = vpop.f32.mrf.mxu0 }
 0x131   : > { %4839 = vpow2.f32 %v3827_v44  ;;  %v3830_v49 = vmul.f32 -1.442695, %v931_v57  ;;  %v926_v60 = vadd.f32 %v5459_v10, %v925_v46 }
 0x132   : > { %v4034_v50 = vpop.f32.mrf.mxu0 }
 0x133   : > { %4054 = vmatmul.mubr.msk.f32.gmra.mxu1 %vm491_vm0, %v5325_v11  ;;  %4841 = vpow2.f32 %v3830_v49  ;;  %v3829_v52 = vmul.f32 -1.442695, %v926_v60  ;;  %v941_v63 = vadd.f32 %v4034_v50, %v5459_v10 }
 0x134   : > { %v4830_v53 = vpop.eup %4829  ;;  %v935_v55 = vpop.f32.mrf.mxu0  ;;  %4056 = vmatprep.mubr.msk.f32.mxu1 %vm491_vm0, %v5330_v16 }
 0x135   : > { %v1151_v56 = vadd.f32 1.0, %v4830_v53  ;;  %4843 = vpow2.f32 %v3829_v52  ;;  %v3832_v2 = vmul.f32 -1.442695, %v941_v63  ;;  %v936_v58 = vadd.f32 %v5459_v10, %v935_v55 }
 0x136   : > { %v4832_v59 = vpop.eup %4831  ;;  %v4037_v61 = vpop.f32.mrf.mxu0 }
 0x137   : > { %4845 = vrcp.f32 %v1151_v56  ;;  %v1150_v62 = vadd.f32 1.0, %v4832_v59  ;;  %v3831_v0 = vmul.f32 -1.442695, %v936_v58  ;;  %v951_v11 = vadd.f32 %v4037_v61, %v5459_v10  ;;  %4057 = vmatmul.mubr.msk.f32.gmra.mxu1 %vm491_vm0, %v5335_v20 }
 0x138   : > { %v4834_v1 = vpop.eup %4833  ;;  %4847 = vpow2.f32 %v3832_v2  ;;  %v945_v9 = vpop.f32.mrf.mxu0  ;;  %4059 = vmatprep.mubr.msk.f32.mxu1 %vm491_vm0, %v5340_v25 }
 0x139   : > { %4849 = vrcp.f32 %v1150_v62  ;;  %v1153_v16 = vadd.f32 1.0, %v4834_v1  ;;  %v3834_v13 = vmul.f32 -1.442695, %v951_v11  ;;  %v946_v14 = vadd.f32 %v5459_v10, %v945_v9 }
 0x13a   : > { %v4836_v17 = vpop.eup %4835  ;;  %4851 = vpow2.f32 %v3831_v0  ;;  %v4040_v19 = vpop.f32.mrf.mxu0 }
 0x13b   : > { %4853 = vrcp.f32 %v1153_v16  ;;  %v1152_v22 = vadd.f32 1.0, %v4836_v17  ;;  %v3833_v23 = vmul.f32 -1.442695, %v946_v14  ;;  %v961_v26 = vadd.f32 %v4040_v19, %v5459_v10  ;;  %4060 = vmatmul.mubr.msk.f32.gmra.mxu1 %vm491_vm0, %v5345_v29 }
 0x13c   : > { %v4838_v20 = vpop.eup %4837  ;;  %4855 = vpow2.f32 %v3834_v13  ;;  %v955_v28 = vpop.f32.mrf.mxu0  ;;  %4062 = vmatprep.mubr.msk.f32.mxu1 %vm491_vm0, %v5350_v34 }
 0x13d   : > { %4857 = vrcp.f32 %v1152_v22  ;;  %v1155_v25 = vadd.f32 1.0, %v4838_v20  ;;  %v3836_v31 = vmul.f32 -1.442695, %v961_v26  ;;  %v956_v32 = vadd.f32 %v5459_v10, %v955_v28 }
 0x13e   : > { %v4840_v3 = vpop.eup %4839  ;;  %4859 = vpow2.f32 %v3833_v23  ;;  %v4043_v48 = vpop.f32.mrf.mxu0 }
 0x13f   : > { %4861 = vrcp.f32 %v1155_v25  ;;  %v1154_v35 = vadd.f32 1.0, %v4840_v3  ;;  %v3835_v37 = vmul.f32 -1.442695, %v956_v32  ;;  %v971_v51 = vadd.f32 %v4043_v48, %v5459_v10  ;;  %4063 = vmatmul.mubr.msk.f32.gmra.mxu1 %vm491_vm0, %v5355_v38  ;;  %v5513_v32 = vpop.permute.xlu1 %4183 }
 0x140   : > { %v4842_v29 = vpop.eup %4841  ;;  %4863 = vpow2.f32 %v3836_v31  ;;  %v965_v40 = vpop.f32.mrf.mxu0  ;;  %4065 = vmatprep.mubr.msk.f32.mxu1 %vm491_vm0, %v5360_v43 }
 0x141   : > { %4865 = vrcp.f32 %v1154_v35  ;;  %v1157_v34 = vadd.f32 1.0, %v4842_v29  ;;  %v3838_v41 = vmul.f32 -1.442695, %v971_v51  ;;  %v966_v54 = vadd.f32 %v5459_v10, %v965_v40  ;;  %v5511_v31 = vpop.permute.xlu0 %4188  ;;  %v640_v40 = vld [vmem:[%s6764_s4] sm:$0x1] }
 0x142   : > { %v4844_v4 = vpop.eup %4843  ;;  %4867 = vpow2.f32 %v3835_v37 }
 0x143   : > { %4869 = vrcp.f32 %v1157_v34  ;;  %v1156_v44 = vadd.f32 1.0, %v4844_v4  ;;  %v3837_v57 = vmul.f32 -1.442695, %v966_v54  ;;  %4066 = vmatmul.mubr.msk.f32.gmra.mxu1 %vm491_vm0, %v5365_v47  ;;  %v5517_v48 = vpop.permute.xlu1 %4198 }
 0x144   : > { %v4846_v38 = vpop.eup %4845  ;;  %4871 = vpow2.f32 %v3838_v41 }
 0x145   : > { %v4848_v46 = vpop.eup %4847  ;;  %4873 = vrcp.f32 %v1156_v44  ;;  %1289 = vperm.xlu0 %4202, %v4846_v38   ;;  %v5515_v3 = vpop.permute.xlu0 %4193 }
 0x146   : > { %v4850_v49 = vpop.eup %4849  ;;  %v1159_v43 = vadd.f32 1.0, %v4848_v46  ;;  %4875 = vpow2.f32 %v3837_v57 }
 0x147   : > { %v4852_v60 = vpop.eup %4851 }
 0x148   : > { %v4854_v50 = vpop.eup %4853  ;;  %v1158_v52 = vadd.f32 1.0, %v4852_v60  ;;  %4877 = vrcp.f32 %v1159_v43 }
 0x149   : > { %v4856_v63 = vpop.eup %4855  ;;  %1299 = vperm.xlu1 %4203, %v4854_v50   ;;  %1284 = vperm.xlu0 %4202, %v4850_v49  }
 0x14a   : > { %v4858_v53 = vpop.eup %4857  ;;  %4879 = vrcp.f32 %v1158_v52  ;;  %v1161_v55 = vadd.f32 1.0, %v4856_v63 }
 0x14b   : > { %v4860_v56 = vpop.eup %4859 }
 0x14c   : > { %v4862_v47 = vpop.eup %4861  ;;  %v1160_v2 = vadd.f32 1.0, %v4860_v56  ;;  %4881 = vrcp.f32 %v1161_v55 }
 0x14d   : > { %v4864_v58 = vpop.eup %4863  ;;  %1294 = vperm.xlu1 %4203, %v4858_v53  }
 0x14e   : > { %v4866_v59 = vpop.eup %4865  ;;  %4883 = vrcp.f32 %v1160_v2  ;;  %v1163_v61 = vadd.f32 1.0, %v4864_v58 }
 0x14f   : > { %v4868_v62 = vpop.eup %4867  ;;  %1304 = vperm.xlu0 %4202, %v4866_v59  }
 0x150   : > { %v4870_v0 = vpop.eup %4869  ;;  %v1162_v11 = vadd.f32 1.0, %v4868_v62  ;;  %4885 = vrcp.f32 %v1163_v61 }
 0x151   : > { %v4872_v1 = vpop.eup %4871  ;;  %1309 = vperm.xlu1 %4203, %v4862_v47  }
 0x152   : > { %v4874_v9 = vpop.eup %4873  ;;  %4887 = vrcp.f32 %v1162_v11  ;;  %v1165_v16 = vadd.f32 1.0, %v4872_v1 }
 0x153   : > { %v4876_v13 = vpop.eup %4875  ;;  %1314 = vperm.xlu0 %4202, %v4874_v9  }
 0x154   : > { %v1164_v14 = vadd.f32 1.0, %v4876_v13  ;;  %4889 = vrcp.f32 %v1165_v16 }
 0x155   : > { %1319 = vperm.xlu1 %4203, %v4870_v0   ;;  %v4878_v17 = vpop.eup %4877 }
 0x156   : > { %4891 = vrcp.f32 %v1164_v14 }
 0x157   : > { %v4880_v19 = vpop.eup %4879 }
 0x158   : > { %1324 = vperm.xlu0 %4202, %v4880_v19  }
 0x159   : > { %1329 = vperm.xlu1 %4203, %v4878_v17   ;;  %v4882_v22 = vpop.eup %4881 }
 0x15b   : > { %v4884_v23 = vpop.eup %4883 }
 0x15c   : > { %1334 = vperm.xlu0 %4202, %v4884_v23   ;;  %v1246_v23 = vlaneseq }
 0x15d   : > { %1339 = vperm.xlu1 %4203, %v4882_v22   ;;  %v4886_v26 = vpop.eup %4885 }
 0x15f   : > { %v4888_v20 = vpop.eup %4887 }
 0x160   : > { %1344 = vperm.xlu0 %4202, %v4888_v20  }
 0x161   : > { %1349 = vperm.xlu1 %4203, %v4886_v26   ;;  %v4890_v28 = vpop.eup %4889 }
 0x163   : > { %v4892_v25 = vpop.eup %4891 }
 0x164   : > { %1354 = vperm.xlu0 %4202, %v4892_v25  }
 0x165   : > { %1359 = vperm.xlu1 %4203, %v4890_v28  }
 0x1c0   : > { %v5519_v35 = vpop.permute.xlu0 %1289 }
 0x1c4   : > { %v5521_v37 = vpop.permute.xlu1 %1299  ;;  %v5523_v51 = vpop.permute.xlu0 %1284 }
 0x1c8   : > { %v5525_v29 = vpop.permute.xlu1 %1294 }
 0x1ca   : > { %v1305_v44 = vpop.permute.xlu0 %1304 }
 0x1cc   : > { %v5530_v57 = vpop.permute.xlu1 %1309 }
 0x1ce   : > { %v1315_v53 = vpop.permute.xlu0 %1314 }
 0x1d0   : > { %v1320_v55 = vpop.permute.xlu1 %1319 }
 0x1d3   : > { %v1325_v1 = vpop.permute.xlu0 %1324 }
 0x1d4   : > { %v1330_v9 = vpop.permute.xlu1 %1329 }
 0x1d7   : > { %v1335_v17 = vpop.permute.xlu0 %1334 }
 0x1d8   : > { %v1340_v19 = vpop.permute.xlu1 %1339 }
 0x1e3   : > { %v715_v34 = vpop.f32.mrf.mxu1 }
 0x1e4   : > { %v716_v41 = vadd.f32 %v715_v34, %v640_v40  ;;  %v1247_v34 = vshrl.u32 %v1246_v23, 7 }
 0x1e5   : > { %v4017_v54 = vpop.f32.mrf.mxu1 }
 0x1e6   : > { %v3789_v4 = vmul.f32 -1.442695, %v716_v41  ;;  %v1345_v54 = vpop.permute.xlu0 %1344 }
 0x1e7   : > { %v4046_v38 = vpop.f32.mrf.mxu1 }
 0x1e8   : > { %4893 = vpow2.f32 %v3789_v4  ;;  %v981_v46 = vadd.f32 %v4046_v38, %v5459_v10  ;;  %v1350_v4 = vpop.permute.xlu1 %1349 }
 0x1e9   : > { %v975_v49 = vpop.f32.mrf.mxu1 }
 0x1ea   : > { %v3840_v43 = vmul.f32 -1.442695, %v981_v46  ;;  %v976_v60 = vadd.f32 %v5459_v10, %v975_v49 }
 0x1eb   : > { %v4049_v50 = vpop.f32.mrf.mxu1 }
 0x1ec   : > { %4895 = vpow2.f32 %v3840_v43  ;;  %v3839_v52 = vmul.f32 -1.442695, %v976_v60  ;;  %v991_v63 = vadd.f32 %v4049_v50, %v5459_v10  ;;  %v1248_v60 = vsub.s32 0, %v1247_v34 }
 0x1ed   : > { %v985_v56 = vpop.f32.mrf.mxu1  ;;  %v1443_v50 = vmul.f32 %v5519_v35, %v5215_v6  ;;  %v1447_v35 = vmul.f32 %v5530_v57, %v5235_v15  ;;  %v1454_v57 = vmul.f32 %v1345_v54, %v5270_v36 }
 0x1ee   : > { %4897 = vpow2.f32 %v3839_v52  ;;  %v3842_v47 = vmul.f32 -1.442695, %v991_v63  ;;  %v986_v2 = vadd.f32 %v5459_v10, %v985_v56  ;;  %v1445_v52 = vmul.f32 %v5521_v37, %v5221_v8  ;;  %v1355_v37 = vpop.permute.xlu0 %1354 }
 0x1ef   : > { %v4052_v58 = vpop.f32.mrf.mxu1 }
 0x1f0   : > { %4899 = vpow2.f32 %v3842_v47  ;;  %v3841_v59 = vmul.f32 -1.442695, %v986_v2  ;;  %v1001_v61 = vadd.f32 %v4052_v58, %v5459_v10  ;;  %v1442_v47 = vmul.f32 %v5523_v51, %v5212_v5 }
 0x1f1   : > { %v995_v62 = vpop.f32.mrf.mxu1  ;;  %v1444_v2 = vmul.f32 %v5525_v29, %v5218_v7  ;;  %v1450_v51 = vmul.f32 %v1325_v1, %v5250_v24  ;;  %v1451_v29 = vmul.f32 %v1330_v9, %v5255_v27 }
 0x1f2   : > { %4901 = vpow2.f32 %v3841_v59  ;;  %v3844_v0 = vmul.f32 -1.442695, %v1001_v61  ;;  %v996_v11 = vadd.f32 %v5459_v10, %v995_v62  ;;  %v1448_v61 = vmul.f32 %v1315_v53, %v5240_v18  ;;  %v1360_v62 = vpop.permute.xlu1 %1359 }
 0x1f3   : > { %v4055_v25 = vpop.f32.mrf.mxu1  ;;  %v1455_v53 = vmul.f32 %v1350_v4, %v5275_v39 }
 0x1f4   : > { %4903 = vpow2.f32 %v3844_v0  ;;  %v3843_v16 = vmul.f32 -1.442695, %v996_v11  ;;  %v1011_v46 = vadd.f32 %v4055_v25, %v5459_v10  ;;  %v1446_v10 = vmul.f32 %v1305_v44, %v5230_v12 }
 0x1f5   : > { %v4894_v13 = vpop.eup %4893  ;;  %v1449_v11 = vmul.f32 %v1320_v55, %v5245_v21  ;;  %v1452_v44 = vmul.f32 %v1335_v17, %v5260_v30  ;;  %v1457_v55 = vmul.f32 %v1360_v62, %v5285_v45 }
 0x1f6   : > { %v722_v14 = vadd.f32 1.0, %v4894_v13  ;;  %4905 = vpow2.f32 %v3843_v16  ;;  %v3846_v58 = vmul.f32 -1.442695, %v1011_v46  ;;  %v1453_v13 = vmul.f32 %v1340_v19, %v5265_v33 }
 0x1f8   : > { %4907 = vrcp.f32 %v722_v14  ;;  %v1456_v14 = vmul.f32 %v1355_v37, %v5280_v42 }
 0x1f9   : > { %v4896_v22 = vpop.eup %4895 }
 0x1fa   : > { %v1167_v26 = vadd.f32 1.0, %v4896_v22 }
 0x1fb   : > { %v4898_v20 = vpop.eup %4897 }
 0x1fc   : > { %4909 = vrcp.f32 %v1167_v26  ;;  %v1166_v28 = vadd.f32 1.0, %v4898_v20 }
 0x1fd   : > { %v4900_v40 = vpop.eup %4899 }
 0x1fe   : > { %4911 = vrcp.f32 %v1166_v28  ;;  %v1169_v41 = vadd.f32 1.0, %v4900_v40 }
 0x1ff   : > { %v4902_v38 = vpop.eup %4901 }
 0x200   : > { %4913 = vrcp.f32 %v1169_v41  ;;  %v1168_v49 = vadd.f32 1.0, %v4902_v38 }
 0x201   : > { %v4904_v43 = vpop.eup %4903 }
 0x202   : > { %4915 = vrcp.f32 %v1168_v49  ;;  %v1171_v63 = vadd.f32 1.0, %v4904_v43 }
 0x203   : > { %v4906_v56 = vpop.eup %4905 }
 0x204   : > { %4917 = vrcp.f32 %v1171_v63  ;;  %v1170_v59 = vadd.f32 1.0, %v4906_v56 }
 0x205   : > { %v4908_v0 = vpop.eup %4907 }
 0x206   : > { %v5555_v16 = vrot.slane %v4908_v0, %v1248_v60  ;;  %4919 = vrcp.f32 %v1170_v59 }
 0x207   : > { %4921 = vpow2.f32 %v3846_v58 }
 0x208   : > { %v1251_v1 = vmul.f32 %v5555_v16, %v5215_v6  ;;  %v1253_v9 = vmul.f32 %v5555_v16, %v5221_v8  ;;  %v1250_v17 = vmul.f32 %v5555_v16, %v5212_v5  ;;  %v1252_v19 = vmul.f32 %v5555_v16, %v5218_v7 }
 0x209   : > { %v4910_v22 = vpop.eup %4909  ;;  %v1254_v23 = vmul.f32 %v5555_v16, %v5230_v12  ;;  %v1255_v6 = vmul.f32 %v5555_v16, %v5235_v15  ;;  %v1256_v5 = vmul.f32 %v5555_v16, %v5240_v18  ;;  %v1257_v7 = vmul.f32 %v5555_v16, %v5245_v21 }
 0x20a   : > { %v1475_v8 = vadd.f32 %v1443_v50, %v1251_v1  ;;  %v1477_v26 = vadd.f32 %v1445_v52, %v1253_v9  ;;  %v1474_v20 = vadd.f32 %v1442_v47, %v1250_v17  ;;  %v1476_v28 = vadd.f32 %v1444_v2, %v1252_v19  ;;  %1369 = vperm.xlu1 %4203, %v4910_v22  }
 0x20b   : > { %v4912_v25 = vpop.eup %4911  ;;  %v1478_v40 = vadd.f32 %v1446_v10, %v1254_v23  ;;  %v1479_v12 = vadd.f32 %v1447_v35, %v1255_v6  ;;  %v1480_v34 = vadd.f32 %v1448_v61, %v1256_v5  ;;  %v1481_v41 = vadd.f32 %v1449_v11, %v1257_v7 }
 0x20c   : > { %1507 = vst.msk [vmem:[%s5574_s15 + $0x8] sm:$0xff] %vm491_vm0, %v1475_v8  ;;  %1595 = vst.msk [vmem:[#allocation2 + $0x21] sm:$0xff] %vm491_vm0, %v1475_v8  ;;  %v1258_v15 = vmul.f32 %v5555_v16, %v5250_v24  ;;  %v1259_v18 = vmul.f32 %v5555_v16, %v5255_v27  ;;  %v1260_v21 = vmul.f32 %v5555_v16, %v5260_v30  ;;  %1364 = vperm.xlu0 %4202, %v4912_v25  }
 0x20d   : > { %1509 = vst.msk [vmem:[%s5574_s15 + $0x18] sm:$0xff] %vm491_vm0, %v1477_v26  ;;  %1597 = vst.msk [vmem:[#allocation2 + $0x39] sm:$0xff] %vm491_vm0, %v1477_v26  ;;  %v1261_v54 = vmul.f32 %v5555_v16, %v5265_v33  ;;  %v4914_v4 = vpop.eup %4913  ;;  %v1262_v24 = vmul.f32 %v5555_v16, %v5270_v36  ;;  %v1263_v27 = vmul.f32 %v5555_v16, %v5275_v39 }
 0x20e   : > { %1506 = vst.msk [vmem:[%s5574_s15] sm:$0xff] %vm491_vm0, %v1474_v20  ;;  %1594 = vst.msk [vmem:[#allocation2 + $0x19] sm:$0xff] %vm491_vm0, %v1474_v20  ;;  %v1264_v30 = vmul.f32 %v5555_v16, %v5280_v42  ;;  %v1265_v33 = vmul.f32 %v5555_v16, %v5285_v45  ;;  %v1482_v38 = vadd.f32 %v1450_v51, %v1258_v15  ;;  %1379 = vperm.xlu1 %4203, %v4914_v4   ;;  %v4824_v4 = vld [vmem:[%s6767_s7 + $0x20] ss:$0 sps:$4 sm:$0xff]  }
 0x20f   : > { %1508 = vst.msk [vmem:[%s5574_s15 + $0x10] sm:$0xff] %vm491_vm0, %v1476_v28  ;;  %1596 = vst.msk [vmem:[#allocation2 + $0x31] sm:$0xff] %vm491_vm0, %v1476_v28  ;;  %v1483_v46 = vadd.f32 %v1451_v29, %v1259_v18  ;;  %v1484_v49 = vadd.f32 %v1452_v44, %v1260_v21  ;;  %v1485_v43 = vadd.f32 %v1453_v13, %v1261_v54  ;;  %v4916_v60 = vpop.eup %4915  ;;  %4162 = vmatprep.subr.msk.bf16.mxu1 %vm645_vm2, %v4824_v4 }
 0x210   : > { %1510 = vst.msk [vmem:[%s5574_s15 + $0x20] sm:$0xff] %vm491_vm0, %v1478_v40  ;;  %1598 = vst.msk [vmem:[#allocation2 + $0x49] sm:$0xff] %vm491_vm0, %v1478_v40  ;;  %v1486_v36 = vadd.f32 %v1454_v57, %v1262_v24  ;;  %v1487_v50 = vadd.f32 %v1455_v53, %v1263_v27  ;;  %v1488_v52 = vadd.f32 %v1456_v14, %v1264_v30  ;;  %1374 = vperm.xlu0 %4202, %v4916_v60   ;;  %v4825_v60 = vld [vmem:[%s6767_s7 + $0x18] sm:$0xff]  }
 0x211   : > { %1511 = vst.msk [vmem:[%s5574_s15 + $0x28] sm:$0xff] %vm491_vm0, %v1479_v12  ;;  %1599 = vst.msk [vmem:[#allocation2 + $0x51] sm:$0xff] %vm491_vm0, %v1479_v12  ;;  %v1489_v39 = vadd.f32 %v1457_v55, %v1265_v33  ;;  %v4918_v42 = vpop.eup %4917 }
 0x212   : > { %1512 = vst.msk [vmem:[%s5574_s15 + $0x30] sm:$0xff] %vm491_vm0, %v1480_v34  ;;  %1600 = vst.msk [vmem:[#allocation2 + $0x61] sm:$0xff] %vm491_vm0, %v1480_v34  ;;  %1389 = vperm.xlu1 %4203, %v4918_v42  }
 0x213   : > { %1513 = vst.msk [vmem:[%s5574_s15 + $0x38] sm:$0xff] %vm491_vm0, %v1481_v41  ;;  %1601 = vst.msk [vmem:[#allocation2 + $0x69] sm:$0xff] %vm491_vm0, %v1481_v41  ;;  %v4920_v45 = vpop.eup %4919  ;;  %v1631_v22 = vld [vmem:[#allocation2 + $0x28] sm:$0x3] }
 0x214   : > { %1514 = vst.msk [vmem:[%s5574_s15 + $0x40] sm:$0xff] %vm491_vm0, %v1482_v38  ;;  %1602 = vst.msk [vmem:[#allocation2 + $0x79] sm:$0xff] %vm491_vm0, %v1482_v38  ;;  %v4922_v2 = vpop.eup %4921  ;;  %1384 = vperm.xlu0 %4202, %v4920_v45   ;;  %v1737_v7 = vrot.slane %v1631_v22, 1  ;;  %v1818_v40 = vrot.slane %v1631_v22, 2  ;;  %v1634_v12 = vld [vmem:[#allocation2 + $0x40] sm:$0x3] }
 0x215   : > { %1515 = vst.msk [vmem:[%s5574_s15 + $0x48] sm:$0xff] %vm491_vm0, %v1483_v46  ;;  %1603 = vst.msk [vmem:[#allocation2 + $0x81] sm:$0xff] %vm491_vm0, %v1483_v46  ;;  %v5652_v47 = vld [vmem:[#allocation2 + $0x18] sm:$0xff]  ;;  %v5656_v58 = vld [vmem:[#allocation2 + $0x20] sm:$0xff]  ;;  %v1173_v44 = vadd.f32 1.0, %v4922_v2  ;;  %v1742_v54 = vrot.slane %v1634_v12, 1 }
 0x216   : > { %1516 = vst.msk [vmem:[%s5574_s15 + $0x50] sm:$0xff] %vm491_vm0, %v1484_v49  ;;  %1604 = vst.msk [vmem:[#allocation2 + $0x91] sm:$0xff] %vm491_vm0, %v1484_v49  ;;  %v5648_v63 = vld [vmem:[#allocation2 + $0x30] sm:$0xff]  ;;  %v5650_v56 = vld [vmem:[#allocation2 + $0x38] sm:$0xff]  ;;  %v4204_v61 = vpack.i.bf16 %v5656_v58, %v5652_v47  ;;  %v1734_v6 = vrot.slane %v5652_v47, 1  ;;  %v1735_v5 = vrot.slane %v5656_v58, 1 }
 0x217   : > { %1517 = vst.msk [vmem:[%s5574_s15 + $0x58] sm:$0xff] %vm491_vm0, %v1485_v43  ;;  %1605 = vst.msk [vmem:[#allocation2 + $0x99] sm:$0xff] %vm491_vm0, %v1485_v43  ;;  %v4209_v10 = vpack.i.bf16 %v5650_v56, %v5648_v63  ;;  %v5658_v59 = vld [vmem:[#allocation2 + $0x48] sm:$0xff]  ;;  %4923 = vrcp.f32 %v1173_v44  ;;  %v1815_v26 = vrot.slane %v5652_v47, 2  ;;  %v1816_v25 = vrot.slane %v5656_v58, 2 }
 0x218   : > { %1518 = vst.msk [vmem:[%s5574_s15 + $0x60] sm:$0xff] %vm491_vm0, %v1486_v36  ;;  %1606 = vst.msk [vmem:[#allocation2 + $0xa9] sm:$0xff] %vm491_vm0, %v1486_v36  ;;  %v5660_v35 = vld [vmem:[#allocation2 + $0x50] sm:$0xff]  ;;  %4205 = vrot.lane.b32.xlu0 %v4204_v61, %s5018_s16  ;;  %v1736_v20 = vsel %vm1728_vm4, %v1734_v6, %v1735_v5  ;;  %v1738_v28 = vsel %vm1728_vm4, %v1735_v5, %v1737_v7  ;;  %v1739_v41 = vrot.slane %v5648_v63, 1  ;;  %v1740_v15 = vrot.slane %v5650_v56, 1  ;;  %v4827_v44 = vld [vmem:[%s6767_s7 + $0x8] sm:$0xff]  }
 0x219   : > { %1519 = vst.msk [vmem:[%s5574_s15 + $0x68] sm:$0xff] %vm491_vm0, %v1487_v50  ;;  %1607 = vst.msk [vmem:[#allocation2 + $0xb1] sm:$0xff] %vm491_vm0, %v1487_v50  ;;  %4210 = vrot.lane.b32.xlu1 %v4209_v10, %s5018_s16  ;;  %v4219_v37 = vpack.i.bf16 %v5660_v35, %v5658_v59  ;;  %v5668_v62 = vld [vmem:[#allocation2 + $0x60] sm:$0xff]  ;;  %v4279_v34 = vpack.i.bf16 %v1738_v28, %v1736_v20  ;;  %v1817_v18 = vsel %vm1809_vm5, %v1815_v26, %v1816_v25  ;;  %v1637_v49 = vld [vmem:[#allocation2 + $0x58] sm:$0x3] }
 0x21a   : > { %1520 = vst.msk [vmem:[%s5574_s15 + $0x70] sm:$0xff] %vm491_vm0, %v1488_v52  ;;  %1608 = vst.msk [vmem:[#allocation2 + $0xc1] sm:$0xff] %vm491_vm0, %v1488_v52  ;;  %v5670_v0 = vld [vmem:[#allocation2 + $0x68] sm:$0xff]  ;;  %v1819_v21 = vsel %vm1809_vm5, %v1816_v25, %v1818_v40  ;;  %v1741_v27 = vsel %vm1728_vm4, %v1739_v41, %v1740_v15  ;;  %v1743_v30 = vsel %vm1728_vm4, %v1740_v15, %v1742_v54  ;;  %v1820_v33 = vrot.slane %v5648_v63, 2  ;;  %v4826_v63 = vld [vmem:[%s6767_s7 + $0x10] sm:$0xff]  }
 0x21b   : > { %1521 = vst.msk [vmem:[%s5574_s15 + $0x78] sm:$0xff] %vm491_vm0, %v1489_v39  ;;  %1609 = vst.msk [vmem:[#allocation2 + $0xc9] sm:$0xff] %vm491_vm0, %v1489_v39  ;;  %v4229_v11 = vpack.i.bf16 %v5670_v0, %v5668_v62  ;;  %v5676_v51 = vld [vmem:[#allocation2 + $0x78] sm:$0xff]  ;;  %v4284_v24 = vpack.i.bf16 %v1819_v21, %v1817_v18  ;;  %v1821_v38 = vrot.slane %v5650_v56, 2  ;;  %v1823_v46 = vrot.slane %v1634_v12, 2 }
 0x21c   : > { %4215 = vrot.lane.b32.xlu0 %v4209_v10, %s5013_s23  ;;  %v5678_v29 = vld [vmem:[#allocation2 + $0x80] sm:$0xff]  ;;  %v3049_v43 = vsel %vm645_vm2, %v4824_v4, 0  ;;  %v4294_v36 = vpack.i.bf16 %v1743_v30, %v1741_v27  ;;  %v1744_v50 = vrot.slane %v5658_v59, 1  ;;  %v1745_v42 = vrot.slane %v5660_v35, 1  ;;  %v1640_v22 = vld [vmem:[#allocation2 + $0x70] sm:$0x3] }
 0x21d   : > { %4220 = vrot.lane.b32.xlu1 %v4219_v37, %s5013_s23  ;;  %v4239_v13 = vpack.i.bf16 %v5678_v29, %v5676_v51  ;;  %v5684_v57 = vld [vmem:[#allocation2 + $0x90] sm:$0xff]  ;;  %4069 = vmatpush3.bf16.msra.mxu1 %v3049_v43  ;;  %v1822_v52 = vsel %vm1809_vm5, %v1820_v33, %v1821_v38  ;;  %v1824_v39 = vsel %vm1809_vm5, %v1821_v38, %v1823_v46  ;;  %v1747_v45 = vrot.slane %v1637_v49, 1  ;;  %v1643_v25 = vld [vmem:[#allocation2 + $0x88] sm:$0x3] }
 0x21e   : > { %v5686_v53 = vld [vmem:[#allocation2 + $0x98] sm:$0xff]  ;;  %4070 = vmatprep.subr.bf16.mxu1 %v4825_v60  ;;  %v1825_v56 = vrot.slane %v5658_v59, 2  ;;  %v1826_v2 = vrot.slane %v5660_v35, 2  ;;  %v1828_v10 = vrot.slane %v1637_v49, 2  ;;  %v4304_v61 = vpack.i.bf16 %v1824_v39, %v1822_v52  ;;  %v1646_v43 = vld [vmem:[#allocation2 + $0xa0] sm:$0x3] }
 0x21f   : > { %v4249_v14 = vpack.i.bf16 %v5686_v53, %v5684_v57  ;;  %v5692_v55 = vld [vmem:[#allocation2 + $0xa8] sm:$0xff]  ;;  %v1750_v6 = vrot.slane %v5670_v0, 1  ;;  %v1752_v5 = vrot.slane %v1640_v22, 1  ;;  %v1830_v26 = vrot.slane %v5668_v62, 2  ;;  %v4961_v39 = vld [vmem:[#allocation3] ss:$0 sm:$0xff] }
 0x220   : > { %4225 = vrot.lane.b32.xlu0 %v4219_v37, %s5018_s16  ;;  %v5694_v1 = vld [vmem:[#allocation2 + $0xb0] sm:$0xff]  ;;  %v1746_v37 = vsel %vm1728_vm4, %v1744_v50, %v1745_v42  ;;  %v1827_v59 = vsel %vm1809_vm5, %v1825_v56, %v1826_v2  ;;  %v1829_v35 = vsel %vm1809_vm5, %v1826_v2, %v1828_v10  ;;  %v1831_v20 = vrot.slane %v5670_v0, 2 }
 0x221   : > { %4230 = vrot.lane.b32.xlu1 %v4229_v11, %s5018_s16  ;;  %v4259_v9 = vpack.i.bf16 %v5694_v1, %v5692_v55  ;;  %v5700_v17 = vld [vmem:[#allocation2 + $0xc0] sm:$0xff]  ;;  %4071 = vmatpush3.bf16.msra.mxu1 %v4825_v60  ;;  %v1833_v28 = vrot.slane %v1640_v22, 2  ;;  %v1754_v12 = vrot.slane %v5676_v51, 1  ;;  %v1755_v18 = vrot.slane %v5678_v29, 1 }
 0x222   : > { %v5702_v19 = vld [vmem:[#allocation2 + $0xc8] sm:$0xff]  ;;  %4072 = vmatprep.subr.bf16.mxu1 %v4826_v63  ;;  %v1832_v41 = vsel %vm1809_vm5, %v1830_v26, %v1831_v20  ;;  %v1757_v21 = vrot.slane %v1643_v25, 1  ;;  %v1836_v0 = vrot.slane %v5678_v29, 2  ;;  %v1838_v54 = vrot.slane %v1643_v25, 2 }
 0x223   : > { %v4269_v23 = vpack.i.bf16 %v5702_v19, %v5700_v17  ;;  %v1834_v15 = vsel %vm1809_vm5, %v1831_v20, %v1833_v28  ;;  %v1756_v27 = vsel %vm1728_vm4, %v1754_v12, %v1755_v18  ;;  %v1760_v50 = vrot.slane %v5686_v53, 1 }
 0x224   : > { %4235 = vrot.lane.b32.xlu0 %v4229_v11, %s5013_s23  ;;  %v4924_v8 = vpop.eup %4923  ;;  %v1748_v11 = vsel %vm1728_vm4, %v1745_v42, %v1747_v45  ;;  %v1758_v30 = vsel %vm1728_vm4, %v1755_v18, %v1757_v21  ;;  %v1839_v38 = vsel %vm1809_vm5, %v1836_v0, %v1838_v54  ;;  %v1762_v52 = vrot.slane %v1646_v43, 1 }
 0x225   : > { %4240 = vrot.lane.b32.xlu1 %v4239_v13, %s5013_s23  ;;  %4073 = vmatpush3.bf16.msra.mxu1 %v4826_v63  ;;  %v1840_v10 = vrot.slane %v5684_v57, 2  ;;  %v1764_v22 = vrot.slane %v5692_v55, 1  ;;  %v1845_v26 = vrot.slane %v5692_v55, 2  ;;  %v1846_v20 = vrot.slane %v5694_v1, 2 }
 0x226   : > { %4074 = vmatprep.subr.bf16.mxu1 %v4827_v44  ;;  %v1763_v2 = vsel %vm1728_vm4, %v1760_v50, %v1762_v52  ;;  %v1850_v52 = vrot.slane %v5700_v17, 2 }
 0x227   : > { %v1847_v55 = vsel %vm1809_vm5, %v1845_v26, %v1846_v20  ;;  %v4964_v26 = vld [vmem:[%s5209_s20 + $0x98] sm:$0xff] }
 0x228   : > { %4245 = vrot.lane.b32.xlu0 %v4239_v13, %s5018_s16  ;;  %v4314_v13 = vpack.i.bf16 %v1748_v11, %v1746_v37  ;;  %v1843_v37 = vrot.slane %v1646_v43, 2 }
 0x229   : > { %4250 = vrot.lane.b32.xlu1 %v4249_v14, %s5018_s16  ;;  %4075 = vmatpush3.bf16.msra.mxu1 %v4827_v44 }
 0x22c   : > { %4255 = vrot.lane.b32.xlu0 %v4249_v14, %s5013_s23  ;;  %v4329_v14 = vpack.i.bf16 %v1829_v35, %v1827_v59  ;;  %v1649_v59 = vld [vmem:[#allocation2 + $0xb8] sm:$0x3] }
 0x22d   : > { %4260 = vrot.lane.b32.xlu1 %v4259_v9, %s5013_s23  ;;  %v1848_v28 = vrot.slane %v1649_v59, 2 }
 0x230   : > { %4265 = vrot.lane.b32.xlu0 %v4259_v9, %s5018_s16  ;;  %v4828_v9 = vld [vmem:[%s6767_s7] sm:$0xff]  }
 0x231   : > { %4270 = vrot.lane.b32.xlu1 %v4269_v23, %s5018_s16  ;;  %4076 = vmatprep.subr.bf16.mxu1 %v4828_v9 }
 0x232   : > { %4077 = vmatpush3.bf16.msra.mxu1 %v4828_v9 }
 0x234   : > { %4275 = vrot.lane.b32.xlu0 %v4269_v23, %s5013_s23  ;;  %v1749_v23 = vrot.slane %v5668_v62, 1  ;;  %v1835_v62 = vrot.slane %v5676_v51, 2  ;;  %v4374_v51 = vpack.i.bf16 %v1758_v30, %v1756_v27 }
 0x235   : > { %1399 = vperm.xlu1 %4203, %v4924_v8   ;;  %v1753_v8 = vsel %vm1728_vm4, %v1750_v6, %v1752_v5  ;;  %v1767_v5 = vrot.slane %v1649_v59, 1 }
 0x236   : > { %v1751_v7 = vsel %vm1728_vm4, %v1749_v23, %v1750_v6  ;;  %v1837_v33 = vsel %vm1809_vm5, %v1835_v62, %v1836_v0 }
 0x237   : > { %v4354_v40 = vpack.i.bf16 %v1753_v8, %v1751_v7  ;;  %v4389_v29 = vpack.i.bf16 %v1839_v38, %v1837_v33  ;;  %v1652_v33 = vld [vmem:[#allocation2 + $0xd0] sm:$0x3] }
 0x238   : > { %4290 = vrot.lane.b32.xlu0 %v4279_v34, %s5019_s21  ;;  %v1772_v43 = vrot.slane %v1652_v33, 1 }
 0x239   : > { %4280 = vrot.lane.b32.xlu1 %v4279_v34, %s5015_s24  ;;  %v1005_v34 = vpop.f32.mrf.mxu1 }
 0x23a   : > { %v1006_v45 = vadd.f32 %v4961_v39, %v1005_v34 }
 0x23b   : > { %v4058_v4 = vpop.f32.mrf.mxu1 }
 0x23c   : > { %4300 = vrot.lane.b32.xlu0 %v4284_v24, %s5020_s28  ;;  %v1021_v42 = vadd.f32 %v4961_v39, %v4058_v4  ;;  %v3845_v35 = vmul.f32 -1.442695, %v1006_v45 }
 0x23d   : > { %4285 = vrot.lane.b32.xlu1 %v4284_v24, %s5017_s26  ;;  %v4364_v24 = vpack.i.bf16 %v1834_v15, %v1832_v41  ;;  %v1015_v46 = vpop.f32.mrf.mxu1 }
 0x23e   : > { %v3848_v11 = vmul.f32 -1.442695, %v1021_v42  ;;  %v1016_v9 = vadd.f32 %v4961_v39, %v1015_v46 }
 0x23f   : > { %v4061_v49 = vpop.f32.mrf.mxu1 }
 0x240   : > { %4310 = vrot.lane.b32.xlu0 %v4294_v36, %s5016_s25  ;;  %v1031_v44 = vadd.f32 %v4961_v39, %v4061_v49  ;;  %4925 = vpow2.f32 %v3848_v11  ;;  %v1770_v49 = vrot.slane %v5702_v19, 1 }
 0x241   : > { %4295 = vrot.lane.b32.xlu1 %v4294_v36, %s5019_s21  ;;  %v1025_v60 = vpop.f32.mrf.mxu1  ;;  %4927 = vpow2.f32 %v3845_v35  ;;  %v4962_v35 = vld [vmem:[%s5209_s20 + $0x88] sm:$0xff] }
 0x242   : > { %v3850_v7 = vmul.f32 -1.442695, %v1031_v44  ;;  %v1026_v8 = vadd.f32 %v4961_v39, %v1025_v60  ;;  %v1773_v45 = vsel %vm1728_vm4, %v1770_v49, %v1772_v43 }
 0x243   : > { %v4064_v63 = vpop.f32.mrf.mxu1 }
 0x244   : > { %4320 = vrot.lane.b32.xlu0 %v4304_v61, %s5021_s18  ;;  %v1041_v23 = vadd.f32 %v4961_v39, %v4064_v63  ;;  %4929 = vpow2.f32 %v3850_v7  ;;  %v3849_v21 = vmul.f32 -1.442695, %v1026_v8  ;;  %v1851_v63 = vrot.slane %v5702_v19, 2 }
 0x245   : > { %4305 = vrot.lane.b32.xlu1 %v4304_v61, %s5020_s28 }
 0x246   : > { %v3852_v15 = vmul.f32 -1.442695, %v1041_v23  ;;  %v1852_v59 = vsel %vm1809_vm5, %v1850_v52, %v1851_v63  ;;  %v4963_v23 = vld [vmem:[%s5209_s20 + $0x80] sm:$0xff] }
 0x248   : > { %4330 = vrot.lane.b32.xlu0 %v4329_v14, %s5021_s18 }
 0x249   : > { %4315 = vrot.lane.b32.xlu1 %v4314_v13, %s5016_s25 }
 0x24c   : > { %4340 = vrot.lane.b32.xlu0 %v4304_v61, %s5017_s26  ;;  %v1841_v61 = vrot.slane %v5686_v53, 2  ;;  %v1765_v53 = vrot.slane %v5694_v1, 1  ;;  %v1849_v1 = vsel %vm1809_vm5, %v1846_v20, %v1848_v28  ;;  %v1269_v20 = vmul.f32 %v4964_v26, %v5555_v16 }
 0x24d   : > { %4325 = vrot.lane.b32.xlu1 %v4294_v36, %s5015_s24  ;;  %v1759_v36 = vrot.slane %v5684_v57, 1  ;;  %v4449_v4 = vpack.i.bf16 %v1849_v1, %v1847_v55  ;;  %v4926_v38 = vpop.eup %4925 }
 0x24e   : > { %v1842_v6 = vsel %vm1809_vm5, %v1840_v10, %v1841_v61  ;;  %v1844_v57 = vsel %vm1809_vm5, %v1841_v61, %v1843_v37  ;;  %v1766_v34 = vsel %vm1728_vm4, %v1764_v22, %v1765_v53  ;;  %v1768_v41 = vsel %vm1728_vm4, %v1765_v53, %v1767_v5 }
 0x24f   : > { %v1761_v56 = vsel %vm1728_vm4, %v1759_v36, %v1760_v50  ;;  %v4424_v12 = vpack.i.bf16 %v1844_v57, %v1842_v6  ;;  %v4434_v0 = vpack.i.bf16 %v1768_v41, %v1766_v34  ;;  %v1175_v60 = vadd.f32 1.0, %v4926_v38  ;;  %v4965_v41 = vld [vmem:[%s5209_s20 + $0x90] sm:$0xff] }
 0x250   : > { %4350 = vrot.lane.b32.xlu0 %v4314_v13, %s5019_s21  ;;  %v1266_v6 = vmul.f32 %v4963_v23, %v5555_v16 }
 0x251   : > { %4335 = vrot.lane.b32.xlu1 %v4314_v13, %s5015_s24  ;;  %v1035_v13 = vpop.f32.mrf.mxu1 }
 0x252   : > { %v1036_v62 = vadd.f32 %v4961_v39, %v1035_v13  ;;  %v1267_v13 = vmul.f32 %v4962_v35, %v5555_v16 }
 0x253   : > { %v4067_v25 = vpop.f32.mrf.mxu1 }
 0x254   : > { %4360 = vrot.lane.b32.xlu0 %v4329_v14, %s5020_s28  ;;  %v1051_v18 = vadd.f32 %v4961_v39, %v4067_v25  ;;  %v3851_v27 = vmul.f32 -1.442695, %v1036_v62  ;;  %v4966_v62 = vld [vmem:[%s5209_s20 + $0xa8] sm:$0xff] }
 0x255   : > { %4345 = vrot.lane.b32.xlu1 %v4329_v14, %s5017_s26  ;;  %v4414_v14 = vpack.i.bf16 %v1763_v2, %v1761_v56  ;;  %v1045_v54 = vpop.f32.mrf.mxu1  ;;  %v1853_v56 = vrot.slane %v1652_v33, 2 }
 0x256   : > { %v1046_v30 = vadd.f32 %v4961_v39, %v1045_v54 }
 0x257   : > { %v1854_v19 = vsel %vm1809_vm5, %v1851_v63, %v1853_v56 }
 0x258   : > { %4370 = vrot.lane.b32.xlu0 %v4354_v40, %s5016_s25  ;;  %v3853_v46 = vmul.f32 -1.442695, %v1046_v30  ;;  %v4484_v8 = vpack.i.bf16 %v1854_v19, %v1852_v59 }
 0x259   : > { %4355 = vrot.lane.b32.xlu1 %v4354_v40, %s5019_s21 }
 0x25c   : > { %4380 = vrot.lane.b32.xlu0 %v4364_v24, %s5021_s18 }
 0x25d   : > { %4365 = vrot.lane.b32.xlu1 %v4364_v24, %s5020_s28 }
 0x260   : > { %4390 = vrot.lane.b32.xlu0 %v4389_v29, %s5021_s18 }
 0x261   : > { %4375 = vrot.lane.b32.xlu1 %v4374_v51, %s5016_s25 }
 0x264   : > { %4400 = vrot.lane.b32.xlu0 %v4364_v24, %s5017_s26  ;;  %v3854_v24 = vmul.f32 -1.442695, %v1051_v18 }
 0x265   : > { %4385 = vrot.lane.b32.xlu1 %v4354_v40, %s5015_s24  ;;  %v3847_v40 = vmul.f32 -1.442695, %v1016_v9 }
 0x267   : > { %4931 = vpow2.f32 %v3847_v40 }
 0x268   : > { %4410 = vrot.lane.b32.xlu0 %v4374_v51, %s5019_s21  ;;  %4933 = vpow2.f32 %v3852_v15  ;;  %v1268_v15 = vmul.f32 %v4965_v41, %v5555_v16 }
 0x269   : > { %4395 = vrot.lane.b32.xlu1 %v4374_v51, %s5015_s24  ;;  %4935 = vpow2.f32 %v3849_v21  ;;  %v4928_v51 = vpop.eup %4927 }
 0x26a   : > { %4937 = vpow2.f32 %v3854_v24  ;;  %v4930_v36 = vpop.eup %4929  ;;  %v1172_v50 = vadd.f32 1.0, %v4928_v51 }
 0x26b   : > { %4939 = vpow2.f32 %v3851_v27  ;;  %v1177_v10 = vadd.f32 1.0, %v4930_v36 }
 0x26c   : > { %4420 = vrot.lane.b32.xlu0 %v4389_v29, %s5020_s28  ;;  %4941 = vpow2.f32 %v3853_v46  ;;  %v4967_v46 = vld [vmem:[%s5209_s20 + $0xa0] sm:$0xff] }
 0x26d   : > { %4405 = vrot.lane.b32.xlu1 %v4389_v29, %s5017_s26  ;;  %v1769_v29 = vrot.slane %v5700_v17, 1  ;;  %4943 = vrcp.f32 %v1175_v60  ;;  %v1270_v51 = vmul.f32 %v4967_v46, %v5555_v16 }
 0x26e   : > { %4945 = vrcp.f32 %v1172_v50 }
 0x26f   : > { %v1771_v42 = vsel %vm1728_vm4, %v1769_v29, %v1770_v49  ;;  %4947 = vrcp.f32 %v1177_v10 }
 0x270   : > { %4430 = vrot.lane.b32.xlu0 %v4414_v14, %s5016_s25  ;;  %v4474_v17 = vpack.i.bf16 %v1773_v45, %v1771_v42 }
 0x271   : > { %4415 = vrot.lane.b32.xlu1 %v4414_v14, %s5019_s21 }
 0x274   : > { %4440 = vrot.lane.b32.xlu0 %v4424_v12, %s5021_s18  ;;  %v4932_v39 = vpop.eup %4931 }
 0x275   : > { %4425 = vrot.lane.b32.xlu1 %v4424_v12, %s5020_s28  ;;  %v4934_v2 = vpop.eup %4933  ;;  %v1174_v37 = vadd.f32 1.0, %v4932_v39 }
 0x276   : > { %v4936_v61 = vpop.eup %4935  ;;  %v1179_v11 = vadd.f32 1.0, %v4934_v2 }
 0x277   : > { %v4938_v9 = vpop.eup %4937  ;;  %v1176_v22 = vadd.f32 1.0, %v4936_v61  ;;  %4949 = vrcp.f32 %v1174_v37 }
 0x278   : > { %4450 = vrot.lane.b32.xlu0 %v4449_v4, %s5021_s18  ;;  %v4940_v53 = vpop.eup %4939  ;;  %4951 = vrcp.f32 %v1179_v11  ;;  %v1181_v25 = vadd.f32 1.0, %v4938_v9 }
 0x279   : > { %4435 = vrot.lane.b32.xlu1 %v4434_v0, %s5016_s25  ;;  %v1178_v34 = vadd.f32 1.0, %v4940_v53  ;;  %4953 = vrcp.f32 %v1176_v22  ;;  %v4942_v1 = vpop.eup %4941 }
 0x27a   : > { %4955 = vrcp.f32 %v1181_v25  ;;  %v4944_v27 = vpop.eup %4943  ;;  %v1180_v33 = vadd.f32 1.0, %v4942_v1  ;;  %v4968_v1 = vld [vmem:[#allocation2] sm:$0xff] }
 0x27b   : > { %4957 = vrcp.f32 %v1178_v34  ;;  %v4946_v43 = vpop.eup %4945 }
 0x27c   : > { %4460 = vrot.lane.b32.xlu0 %v4424_v12, %s5017_s26  ;;  %v4948_v36 = vpop.eup %4947  ;;  %4959 = vrcp.f32 %v1180_v33 }
 0x27d   : > { %4445 = vrot.lane.b32.xlu1 %v4414_v14, %s5015_s24 }
 0x280   : > { %4470 = vrot.lane.b32.xlu0 %v4434_v0, %s5019_s21 }
 0x281   : > { %4455 = vrot.lane.b32.xlu1 %v4434_v0, %s5015_s24  ;;  %v1271_v0 = vmul.f32 %v4966_v62, %v5555_v16 }
 0x284   : > { %4480 = vrot.lane.b32.xlu0 %v4449_v4, %s5020_s28  ;;  %v4950_v52 = vpop.eup %4949 }
 0x285   : > { %4465 = vrot.lane.b32.xlu1 %v4449_v4, %s5017_s26  ;;  %v1370_v44 = vpop.permute.xlu1 %1369  ;;  %v4952_v42 = vpop.eup %4951 }
 0x286   : > { %v1459_v14 = vmul.f32 %v4962_v35, %v1370_v44  ;;  %v4954_v63 = vpop.eup %4953 }
 0x287   : > { %v1365_v57 = vpop.permute.xlu0 %1364  ;;  %v4956_v61 = vpop.eup %4955 }
 0x288   : > { %v1491_v5 = vadd.f32 %v1459_v14, %v1267_v13  ;;  %v1458_v7 = vmul.f32 %v4963_v23, %v1365_v57  ;;  %4490 = vrot.lane.b32.xlu0 %v4474_v17, %s5016_s25 }
 0x289   : > { %4475 = vrot.lane.b32.xlu1 %v4474_v17, %s5019_s21  ;;  %v1380_v28 = vpop.permute.xlu1 %1379 }
 0x28a   : > { %1523 = vst.msk [vmem:[%s5574_s15 + $0x88] sm:$0xff] %vm491_vm0, %v1491_v5  ;;  %1611 = vst.msk [vmem:[#allocation2 + $0xe1] sm:$0xff] %vm491_vm0, %v1491_v5  ;;  %v1490_v40 = vadd.f32 %v1458_v7, %v1266_v6  ;;  %v1461_v12 = vmul.f32 %v4964_v26, %v1380_v28 }
 0x28b   : > { %v1375_v18 = vpop.permute.xlu0 %1374 }
 0x28c   : > { %1522 = vst.msk [vmem:[%s5574_s15 + $0x80] sm:$0xff] %vm491_vm0, %v1490_v40  ;;  %1610 = vst.msk [vmem:[#allocation2 + $0xd9] sm:$0xff] %vm491_vm0, %v1490_v40  ;;  %v1493_v21 = vadd.f32 %v1461_v12, %v1269_v20  ;;  %v1460_v55 = vmul.f32 %v4965_v41, %v1375_v18  ;;  %4495 = vrot.lane.b32.xlu0 %v4484_v8, %s5021_s18  ;;  %v4190_v40 = vunpack.i.l.bf16 %v5511_v31  ;;  %v4191_v18 = vunpack.i.h.bf16 %v5511_v31 }
 0x28d   : > { %4485 = vrot.lane.b32.xlu1 %v4484_v8, %s5020_s28  ;;  %v1390_v54 = vpop.permute.xlu1 %1389 }
 0x28e   : > { %1525 = vst.msk [vmem:[%s5574_s15 + $0x98] sm:$0xff] %vm491_vm0, %v1493_v21  ;;  %1613 = vst.msk [vmem:[#allocation2 + $0xf9] sm:$0xff] %vm491_vm0, %v1493_v21  ;;  %v1492_v4 = vadd.f32 %v1460_v55, %v1268_v15  ;;  %v1463_v24 = vmul.f32 %v4966_v62, %v1390_v54  ;;  %v4195_v21 = vunpack.i.l.bf16 %v5515_v3  ;;  %v2684_v62 = vsel %vm491_vm0, %v4968_v1, %v4190_v40 }
 0x28f   : > { %v1385_v30 = vpop.permute.xlu0 %1384 }
 0x290   : > { %1524 = vst.msk [vmem:[%s5574_s15 + $0x90] sm:$0xff] %vm491_vm0, %v1492_v4  ;;  %1612 = vst.msk [vmem:[#allocation2 + $0xf1] sm:$0xff] %vm491_vm0, %v1492_v4  ;;  %v1495_v38 = vadd.f32 %v1463_v24, %v1271_v0  ;;  %v1462_v29 = vmul.f32 %v4967_v46, %v1385_v30  ;;  %4505 = vrot.lane.b32.xlu0 %v4484_v8, %s5017_s26  ;;  %v4969_v30 = vld [vmem:[%s5209_s20 + $0xb8] sm:$0xff] }
 0x291   : > { %4500 = vrot.lane.b32.xlu1 %v4474_v17, %s5015_s24  ;;  %v5862_v49 = vpop.permute.xlu1 %4210  ;;  %v4958_v17 = vpop.eup %4957  ;;  %v1655_v11 = vld [vmem:[#allocation2 + $0xe8] sm:$0x3]  ;;  %v1273_v33 = vmul.f32 %v4969_v30, %v5555_v16 }
 0x292   : > { %1527 = vst.msk [vmem:[%s5574_s15 + $0xa8] sm:$0xff] %vm491_vm0, %v1495_v38  ;;  %1615 = vst.msk [vmem:[#allocation2 + $0x111] sm:$0xff] %vm491_vm0, %v1495_v38  ;;  %v1494_v60 = vadd.f32 %v1462_v29, %v1270_v51  ;;  %v1777_v13 = vrot.slane %v1655_v11, 1  ;;  %v4960_v9 = vpop.eup %4959  ;;  %v1858_v26 = vrot.slane %v1655_v11, 2  ;;  %v4970_v38 = vld [vmem:[#allocation2 + $0x8] sm:$0xff]  ;;  %v2717_v51 = vsel %vm2716_vm7, %v2684_v62, %v4195_v21 }
 0x293   : > { %v5867_v50 = vpop.permute.xlu0 %4205  ;;  %v1653_v2 = vld [vmem:[#allocation2 + $0xd8] sm:$0xff]  ;;  %v1654_v10 = vld [vmem:[#allocation2 + $0xe0] sm:$0xff]  ;;  %v2685_v46 = vsel %vm491_vm0, %v4970_v38, %v4191_v18  ;;  %v4212_v11 = vunpack.i.l.bf16 %v5862_v49 }
 0x294   : > { %1526 = vst.msk [vmem:[%s5574_s15 + $0xa0] sm:$0xff] %vm491_vm0, %v1494_v60  ;;  %1614 = vst.msk [vmem:[#allocation2 + $0x109] sm:$0xff] %vm491_vm0, %v1494_v60  ;;  %1394 = vperm.xlu0 %4202, %v4946_v43   ;;  %v1774_v59 = vrot.slane %v1653_v2, 1  ;;  %v1775_v19 = vrot.slane %v1654_v10, 1  ;;  %v4509_v14 = vpack.i.bf16 %v1654_v10, %v1653_v2  ;;  %v1855_v53 = vrot.slane %v1653_v2, 2 }
 0x295   : > { %1409 = vperm.xlu1 %4203, %v4944_v27   ;;  %v5872_v39 = vpop.permute.xlu1 %4220  ;;  %v1856_v5 = vrot.slane %v1654_v10, 2  ;;  %v1658_v0 = vld [vmem:[#allocation2 + $0x100] sm:$0x3]  ;;  %v4196_v27 = vunpack.i.h.bf16 %v5515_v3  ;;  %v4208_v29 = vunpack.i.h.bf16 %v5867_v50  ;;  %v4207_v3 = vunpack.i.l.bf16 %v5867_v50 }
 0x296   : > { %v1776_v23 = vsel %vm1728_vm4, %v1774_v59, %v1775_v19  ;;  %v1778_v6 = vsel %vm1728_vm4, %v1775_v19, %v1777_v13  ;;  %v1782_v60 = vrot.slane %v1658_v0, 1  ;;  %v4213_v50 = vunpack.i.h.bf16 %v5862_v49 }
 0x297   : > { %v5874_v45 = vpop.permute.xlu0 %4215  ;;  %v4519_v7 = vpack.i.bf16 %v1778_v6, %v1776_v23  ;;  %v1857_v28 = vsel %vm1809_vm5, %v1855_v53, %v1856_v5  ;;  %v1859_v25 = vsel %vm1809_vm5, %v1856_v5, %v1858_v26  ;;  %v1656_v41 = vld [vmem:[#allocation2 + $0xf0] sm:$0xff]  ;;  %v1657_v15 = vld [vmem:[#allocation2 + $0xf8] sm:$0xff]  ;;  %v1863_v13 = vrot.slane %v1658_v0, 2 }
 0x298   : > { %1404 = vperm.xlu0 %4202, %v4950_v52   ;;  %v4524_v34 = vpack.i.bf16 %v1859_v25, %v1857_v28  ;;  %v1779_v4 = vrot.slane %v1656_v41, 1  ;;  %v1780_v24 = vrot.slane %v1657_v15, 1  ;;  %v4549_v52 = vpack.i.bf16 %v1657_v15, %v1656_v41 }
 0x299   : > { %1419 = vperm.xlu1 %4203, %v4948_v36   ;;  %v5876_v56 = vpop.permute.xlu1 %4230  ;;  %v1860_v10 = vrot.slane %v1656_v41, 2  ;;  %v4222_v23 = vunpack.i.l.bf16 %v5872_v39  ;;  %v4218_v49 = vunpack.i.h.bf16 %v5874_v45  ;;  %v4217_v18 = vunpack.i.l.bf16 %v5874_v45 }
 0x29a   : > { %v1783_v2 = vsel %vm1728_vm4, %v1780_v24, %v1782_v60 }
 0x29b   : > { %v5878_v37 = vpop.permute.xlu0 %4225  ;;  %v5934_v53 = vld [vmem:[#allocation2 + $0x108] sm:$0xff]  ;;  %v5936_v5 = vld [vmem:[#allocation2 + $0x110] sm:$0xff] }
 0x29c   : > { %1414 = vperm.xlu0 %4202, %v4954_v63   ;;  %v1781_v63 = vsel %vm1728_vm4, %v1779_v4, %v1780_v24  ;;  %v5947_v0 = vpack.i.bf16 %v5936_v5, %v5934_v53 }
 0x29d   : > { %1429 = vperm.xlu1 %4203, %v4952_v42   ;;  %v5880_v44 = vpop.permute.xlu1 %4240  ;;  %v4559_v6 = vpack.i.bf16 %v1783_v2, %v1781_v63 }
 0x29f   : > { %v5882_v35 = vpop.permute.xlu0 %4235 }
 0x2a0   : > { %1424 = vperm.xlu0 %4202, %v4958_v17   ;;  %v2718_v17 = vsel %vm2716_vm7, %v2685_v46, %v4196_v27  ;;  %v1784_v27 = vrot.slane %v5934_v53, 1 }
 0x2a1   : > { %1439 = vperm.xlu1 %4203, %v4956_v61   ;;  %v5884_v22 = vpop.permute.xlu1 %4250  ;;  %v1861_v61 = vrot.slane %v1657_v15, 2  ;;  %v2751_v59 = vsel %vm2749_vm8, %v2718_v17, %v4208_v29 }
 0x2a3   : > { %v5889_v57 = vpop.permute.xlu0 %4245  ;;  %v1862_v26 = vsel %vm1809_vm5, %v1860_v10, %v1861_v61  ;;  %v1864_v28 = vsel %vm1809_vm5, %v1861_v61, %v1863_v13 }
 0x2a4   : > { %1434 = vperm.xlu0 %4202, %v4960_v9   ;;  %v4223_v9 = vunpack.i.h.bf16 %v5872_v39  ;;  %v4564_v24 = vpack.i.bf16 %v1864_v28, %v1862_v26 }
 0x2a5   : > { %4510 = vrot.lane.b32.xlu1 %v4509_v14, %s5013_s23  ;;  %v5891_v8 = vpop.permute.xlu1 %4260 }
 0x2a7   : > { %v5894_v20 = vpop.permute.xlu0 %4255 }
 0x2a8   : > { %4515 = vrot.lane.b32.xlu0 %v4509_v14, %s5018_s16  ;;  %v2750_v14 = vsel %vm2749_vm8, %v2717_v51, %v4207_v3 }
 0x2a9   : > { %4520 = vrot.lane.b32.xlu1 %v4519_v7, %s5016_s25  ;;  %v5900_v12 = vpop.permute.xlu1 %4270 }
 0x2ab   : > { %v5905_v55 = vpop.permute.xlu0 %4265 }
 0x2ac   : > { %4525 = vrot.lane.b32.xlu0 %v4524_v34, %s5021_s18 }
 0x2ad   : > { %4530 = vrot.lane.b32.xlu1 %v4519_v7, %s5015_s24 }
 0x2af   : > { %v5916_v43 = vpop.permute.xlu0 %4275 }
 0x2b0   : > { %v1400_v54 = vpop.permute.xlu1 %1399  ;;  %4540 = vrot.lane.b32.xlu0 %v4519_v7, %s5019_s21 }
 0x2b1   : > { %v1465_v31 = vmul.f32 %v4969_v30, %v1400_v54  ;;  %4535 = vrot.lane.b32.xlu1 %v4524_v34, %s5017_s26 }
 0x2b3   : > { %v1497_v36 = vadd.f32 %v1465_v31, %v1273_v33  ;;  %v4291_v19 = vpop.permute.xlu0 %4290  ;;  %v1785_v33 = vrot.slane %v5936_v5, 1 }
 0x2b4   : > { %v4281_v42 = vpop.permute.xlu1 %4280  ;;  %4545 = vrot.lane.b32.xlu0 %v4524_v34, %s5020_s28  ;;  %v4293_v41 = vunpack.i.h.bf16 %v4291_v19  ;;  %v4292_v15 = vunpack.i.l.bf16 %v4291_v19  ;;  %v5942_v34 = vld [vmem:[#allocation2 + $0x118] sm:$0x3] }
 0x2b5   : > { %1529 = vst.msk [vmem:[%s5574_s15 + $0xb8] sm:$0xff] %vm491_vm0, %v1497_v36  ;;  %1617 = vst.msk [vmem:[#allocation2 + $0x129] sm:$0xff] %vm491_vm0, %v1497_v36  ;;  %4550 = vrot.lane.b32.xlu1 %v4549_v52, %s5018_s16  ;;  %v4283_v25 = vunpack.i.h.bf16 %v4281_v42  ;;  %v4282_v40 = vunpack.i.l.bf16 %v4281_v42  ;;  %v1787_v45 = vrot.slane %v5942_v34, 1  ;;  %v1786_v10 = vsel %vm1728_vm4, %v1784_v27, %v1785_v33 }
 0x2b6   : > { %v2783_v46 = vsel %vm2782_vm9, %v2750_v14, %v4292_v15  ;;  %v2784_v51 = vsel %vm2782_vm9, %v2751_v59, %v4293_v41 }
 0x2b7   : > { %v4301_v62 = vpop.permute.xlu0 %4300  ;;  %v2687_v31 = vsel %vm491_vm0, %v5656_v58, %v4283_v25  ;;  %v2686_v38 = vsel %vm491_vm0, %v5652_v47, %v4282_v40  ;;  %v1788_v61 = vsel %vm1728_vm4, %v1785_v33, %v1787_v45 }
 0x2b8   : > { %v4286_v7 = vpop.permute.xlu1 %4285  ;;  %v4303_v54 = vunpack.i.h.bf16 %v4301_v62  ;;  %v4302_v4 = vunpack.i.l.bf16 %v4301_v62  ;;  %4555 = vrot.lane.b32.xlu0 %v4549_v52, %s5013_s23 }
 0x2b9   : > { %4560 = vrot.lane.b32.xlu1 %v4559_v6, %s5019_s21  ;;  %v4288_v21 = vunpack.i.h.bf16 %v4286_v7  ;;  %v4287_v1 = vunpack.i.l.bf16 %v4286_v7 }
 0x2ba   : > { %v2816_v42 = vsel %vm2815_vm10, %v2783_v46, %v4302_v4  ;;  %v2817_v58 = vsel %vm2815_vm10, %v2784_v51, %v4303_v54 }
 0x2bb   : > { %v2719_v29 = vsel %vm2716_vm7, %v2686_v38, %v4287_v1  ;;  %v2720_v60 = vsel %vm2716_vm7, %v2687_v31, %v4288_v21  ;;  %v4311_v52 = vpop.permute.xlu0 %4310  ;;  %v2849_v26 = vsel %vm2848_vm11, %v2816_v42, %v4217_v18  ;;  %v2850_v28 = vsel %vm2848_vm11, %v2817_v58, %v4218_v49 }
 0x2bc   : > { %v4296_v30 = vpop.permute.xlu1 %4295  ;;  %4570 = vrot.lane.b32.xlu0 %v4559_v6, %s5016_s25  ;;  %v4313_v47 = vunpack.i.h.bf16 %v4311_v52  ;;  %v4312_v63 = vunpack.i.l.bf16 %v4311_v52  ;;  %v2752_v17 = vsel %vm2749_vm8, %v2719_v29, %v4212_v11  ;;  %v2753_v59 = vsel %vm2749_vm8, %v2720_v60, %v4213_v50 }
 0x2bd   : > { %4565 = vrot.lane.b32.xlu1 %v4564_v24, %s5020_s28  ;;  %v4298_v3 = vunpack.i.h.bf16 %v4296_v30  ;;  %v4297_v36 = vunpack.i.l.bf16 %v4296_v30  ;;  %v1865_v1 = vrot.slane %v5934_v53, 2  ;;  %v1866_v18 = vrot.slane %v5936_v5, 2 }
 0x2be   : > { %v2882_v50 = vsel %vm2881_vm12, %v2849_v26, %v4312_v63  ;;  %v4599_v5 = vpack.i.bf16 %v1788_v61, %v1786_v10 }
 0x2bf   : > { %v2785_v14 = vsel %vm2782_vm9, %v2752_v17, %v4297_v36  ;;  %v2786_v7 = vsel %vm2782_vm9, %v2753_v59, %v4298_v3  ;;  %v4321_v25 = vpop.permute.xlu0 %4320  ;;  %v1867_v52 = vsel %vm1809_vm5, %v1865_v1, %v1866_v18 }
 0x2c0   : > { %v4306_v2 = vpop.permute.xlu1 %4305  ;;  %v4323_v11 = vunpack.i.h.bf16 %v4321_v25  ;;  %v4322_v15 = vunpack.i.l.bf16 %v4321_v25  ;;  %4575 = vrot.lane.b32.xlu0 %v4564_v24, %s5021_s18  ;;  %v4227_v25 = vunpack.i.l.bf16 %v5878_v37 }
 0x2c1   : > { %v4308_v19 = vunpack.i.h.bf16 %v4306_v2  ;;  %v4307_v13 = vunpack.i.l.bf16 %v4306_v2  ;;  %4580 = vrot.lane.b32.xlu1 %v4559_v6, %s5015_s24  ;;  %v2883_v6 = vsel %vm2881_vm12, %v2850_v28, %v4313_v47  ;;  %v4971_v47 = vld [vmem:[#allocation2 + $0x38] sm:$0xff]  ;;  %v4972_v2 = vld [vmem:[#allocation2 + $0x30] sm:$0xff]  ;;  %v4228_v28 = vunpack.i.h.bf16 %v5878_v37 }
 0x2c2   : > { %v2915_v49 = vsel %vm2914_vm13, %v2882_v50, %v4322_v15  ;;  %v2916_v62 = vsel %vm2914_vm13, %v2883_v6, %v4323_v11 }
 0x2c3   : > { %v2818_v40 = vsel %vm2815_vm10, %v2785_v14, %v4307_v13  ;;  %v2819_v41 = vsel %vm2815_vm10, %v2786_v7, %v4308_v19  ;;  %v4331_v53 = vpop.permute.xlu0 %4330  ;;  %v2947_v33 = vpack.c.bf16 %v2916_v62, %v2915_v49  ;;  %v4974_v62 = vld [vmem:[#allocation2 + $0x48] sm:$0xff] }
 0x2c4   : > { %v4316_v21 = vpop.permute.xlu1 %4315  ;;  %v2851_v27 = vsel %vm2848_vm11, %v2818_v40, %v4222_v23  ;;  %v2852_v30 = vsel %vm2848_vm11, %v2819_v41, %v4223_v9  ;;  %v4333_v38 = vunpack.i.h.bf16 %v4331_v53  ;;  %v4332_v46 = vunpack.i.l.bf16 %v4331_v53  ;;  %4585 = vrot.lane.b32.xlu0 %v4564_v24, %s5017_s26 }
 0x2c5   : > { %v4318_v54 = vunpack.i.h.bf16 %v4316_v21  ;;  %v4317_v4 = vunpack.i.l.bf16 %v4316_v21  ;;  %4590 = vrot.lane.b32.xlu1 %v5947_v0, %s5013_s23  ;;  %4078 = vmatprep.mubr.msk.bf16.mxu1 %vm2999_vm14, %v2947_v33  ;;  %v1868_v23 = vrot.slane %v5942_v34, 2 }
 0x2c7   : > { %v2884_v45 = vsel %vm2881_vm12, %v2851_v27, %v4317_v4  ;;  %v2885_v31 = vsel %vm2881_vm12, %v2852_v30, %v4318_v54  ;;  %v4341_v36 = vpop.permute.xlu0 %4340  ;;  %v1869_v42 = vsel %vm1809_vm5, %v1866_v18, %v1868_v23  ;;  %v4973_v18 = vld [vmem:[#allocation2 + $0x50] sm:$0xff]  ;;  %v4237_v23 = vunpack.i.l.bf16 %v5882_v35 }
 0x2c8   : > { %v4326_v51 = vpop.permute.xlu1 %4325  ;;  %v2918_v39 = vsel %vm2914_vm13, %v2885_v31, %v4333_v38  ;;  %v2917_v9 = vsel %vm2914_vm13, %v2884_v45, %v4332_v46  ;;  %4595 = vrot.lane.b32.xlu0 %v5947_v0, %s5018_s16  ;;  %v4343_v24 = vunpack.i.h.bf16 %v4341_v36  ;;  %v4342_v58 = vunpack.i.l.bf16 %v4341_v36 }
 0x2c9   : > { %v4328_v29 = vunpack.i.h.bf16 %v4326_v51  ;;  %v4327_v60 = vunpack.i.l.bf16 %v4326_v51  ;;  %4600 = vrot.lane.b32.xlu1 %v4599_v5, %s5016_s25  ;;  %v2948_v3 = vpack.c.bf16 %v2918_v39, %v2917_v9  ;;  %v4604_v61 = vpack.i.bf16 %v1869_v42, %v1867_v52 }
 0x2ca   : > { %v4233_v45 = vunpack.i.h.bf16 %v5876_v56  ;;  %v4232_v31 = vunpack.i.l.bf16 %v5876_v56  ;;  %v4238_v51 = vunpack.i.h.bf16 %v5882_v35 }
 0x2cb   : > { %4079 = vmatmul.mubr.msk.bf16.vlgmr.msra.gmra.mxu1 %vm2999_vm14, %v2948_v3  ;;  %v2689_v63 = vsel %vm491_vm0, %v4971_v47, %v4328_v29  ;;  %v2688_v10 = vsel %vm491_vm0, %v4972_v2, %v4327_v60  ;;  %v4351_v17 = vpop.permute.xlu0 %4350 }
 0x2cc   : > { %v4336_v34 = vpop.permute.xlu1 %4335  ;;  %4605 = vrot.lane.b32.xlu0 %v4604_v61, %s5021_s18  ;;  %v2722_v59 = vsel %vm2716_vm7, %v2689_v63, %v4343_v24  ;;  %v2721_v0 = vsel %vm2716_vm7, %v2688_v10, %v4342_v58  ;;  %v4353_v7 = vunpack.i.h.bf16 %v4351_v17  ;;  %v4352_v26 = vunpack.i.l.bf16 %v4351_v17 }
 0x2cd   : > { %4610 = vrot.lane.b32.xlu1 %v4599_v5, %s5015_s24  ;;  %v4338_v13 = vunpack.i.h.bf16 %v4336_v34  ;;  %v4337_v14 = vunpack.i.l.bf16 %v4336_v34  ;;  %v2754_v6 = vsel %vm2749_vm8, %v2721_v0, %v4227_v25  ;;  %v2755_v21 = vsel %vm2749_vm8, %v2722_v59, %v4228_v28 }
 0x2ce   : > { %v2787_v37 = vsel %vm2782_vm9, %v2754_v6, %v4352_v26  ;;  %v2788_v4 = vsel %vm2782_vm9, %v2755_v21, %v4353_v7  ;;  %v4243_v10 = vunpack.i.h.bf16 %v5880_v44 }
 0x2cf   : > { %v4361_v11 = vpop.permute.xlu0 %4360  ;;  %v2691_v49 = vsel %vm491_vm0, %v4973_v18, %v4338_v13  ;;  %v2690_v54 = vsel %vm491_vm0, %v4974_v62, %v4337_v14 }
 0x2d0   : > { %v4346_v19 = vpop.permute.xlu1 %4345  ;;  %v4363_v15 = vunpack.i.h.bf16 %v4361_v11  ;;  %v4362_v50 = vunpack.i.l.bf16 %v4361_v11  ;;  %4620 = vrot.lane.b32.xlu0 %v4599_v5, %s5019_s21 }
 0x2d1   : > { %4615 = vrot.lane.b32.xlu1 %v4604_v61, %s5017_s26  ;;  %v4348_v40 = vunpack.i.h.bf16 %v4346_v19  ;;  %v4347_v41 = vunpack.i.l.bf16 %v4346_v19 }
 0x2d2   : > { %v2820_v38 = vsel %vm2815_vm10, %v2787_v37, %v4362_v50  ;;  %v2821_v46 = vsel %vm2815_vm10, %v2788_v4, %v4363_v15 }
 0x2d3   : > { %v2723_v27 = vsel %vm2716_vm7, %v2690_v54, %v4347_v41  ;;  %v2724_v30 = vsel %vm2716_vm7, %v2691_v49, %v4348_v40  ;;  %v4371_v5 = vpop.permute.xlu0 %4370  ;;  %v2853_v24 = vsel %vm2848_vm11, %v2820_v38, %v4237_v23  ;;  %v2854_v58 = vsel %vm2848_vm11, %v2821_v46, %v4238_v51  ;;  %v4979_v46 = vld [vmem:[#allocation2 + $0x1a8] sm:$0x3] }
 0x2d4   : > { %v4356_v1 = vpop.permute.xlu1 %4355  ;;  %4625 = vrot.lane.b32.xlu0 %v4604_v61, %s5020_s28  ;;  %v4373_v39 = vunpack.i.h.bf16 %v4371_v5  ;;  %v4372_v9 = vunpack.i.l.bf16 %v4371_v5  ;;  %v2756_v60 = vsel %vm2749_vm8, %v2723_v27, %v4232_v31  ;;  %v2757_v3 = vsel %vm2749_vm8, %v2724_v30, %v4233_v45  ;;  %v4975_v27 = vld [vmem:[#allocation2 + $0x68] sm:$0xff]  ;;  %v4977_v5 = vld [vmem:[#allocation2 + $0x1a0] sm:$0xff]  ;;  %v4978_v31 = vld [vmem:[#allocation2 + $0x198] sm:$0xff] }
 0x2d5   : > { %v4358_v53 = vunpack.i.h.bf16 %v4356_v1  ;;  %v4357_v33 = vunpack.i.l.bf16 %v4356_v1  ;;  %v4242_v61 = vunpack.i.l.bf16 %v5880_v44  ;;  %v1912_v45 = vrot.slane %v4977_v5, 2 }
 0x2d6   : > { %v2886_v17 = vsel %vm2881_vm12, %v2853_v24, %v4372_v9  ;;  %v2887_v59 = vsel %vm2881_vm12, %v2854_v58, %v4373_v39  ;;  %v1911_v38 = vrot.slane %v4978_v31, 2  ;;  %v1914_v51 = vrot.slane %v4979_v46, 2 }
 0x2d7   : > { %v2789_v56 = vsel %vm2782_vm9, %v2756_v60, %v4357_v33  ;;  %v2790_v42 = vsel %vm2782_vm9, %v2757_v3, %v4358_v53  ;;  %v4381_v34 = vpop.permute.xlu0 %4380  ;;  %v4976_v53 = vld [vmem:[#allocation2 + $0x60] sm:$0xff]  ;;  %v4248_v39 = vunpack.i.h.bf16 %v5889_v57  ;;  %v4247_v9 = vunpack.i.l.bf16 %v5889_v57 }
 0x2d8   : > { %v4366_v29 = vpop.permute.xlu1 %4365  ;;  %v4383_v63 = vunpack.i.h.bf16 %v4381_v34  ;;  %v4382_v2 = vunpack.i.l.bf16 %v4381_v34  ;;  %v4262_v46 = vunpack.i.l.bf16 %v5891_v8 }
 0x2d9   : > { %v4368_v36 = vunpack.i.h.bf16 %v4366_v29  ;;  %v4367_v52 = vunpack.i.l.bf16 %v4366_v29 }
 0x2da   : > { %v2919_v19 = vsel %vm2914_vm13, %v2886_v17, %v4382_v2  ;;  %v2920_v13 = vsel %vm2914_vm13, %v2887_v59, %v4383_v63  ;;  %v4980_v59 = vld [vmem:[#allocation2 + $0x80] sm:$0xff] }
 0x2db   : > { %v2822_v35 = vsel %vm2815_vm10, %v2789_v56, %v4367_v52  ;;  %v2823_v47 = vsel %vm2815_vm10, %v2790_v42, %v4368_v36  ;;  %v4391_v25 = vpop.permute.xlu0 %4390  ;;  %v2949_v40 = vpack.c.bf16 %v2920_v13, %v2919_v19  ;;  %v4981_v19 = vld [vmem:[#allocation2 + $0x78] sm:$0xff] }
 0x2dc   : > { %v4376_v0 = vpop.permute.xlu1 %4375  ;;  %v2855_v26 = vsel %vm2848_vm11, %v2822_v35, %v4242_v61  ;;  %v2856_v28 = vsel %vm2848_vm11, %v2823_v47, %v4243_v10  ;;  %v4393_v11 = vunpack.i.h.bf16 %v4391_v25  ;;  %v4392_v15 = vunpack.i.l.bf16 %v4391_v25 }
 0x2dd   : > { %v4378_v14 = vunpack.i.h.bf16 %v4376_v0  ;;  %v4377_v7 = vunpack.i.l.bf16 %v4376_v0  ;;  %4082 = vmatprep.mubr.msk.bf16.mxu1 %vm2999_vm14, %v2949_v40  ;;  %v6058_v35 = vsel %vm1809_vm5, %v1911_v38, %v1912_v45  ;;  %v6061_v47 = vsel %vm1809_vm5, %v1912_v45, %v1914_v51 }
 0x2de   : > { %v4819_v17 = vpack.i.bf16 %v6061_v47, %v6058_v35  ;;  %v4263_v38 = vunpack.i.h.bf16 %v5891_v8  ;;  %v6407_v35 = vld [vmem:[%s6769_s9] ss:$0 sm:$0xff] }
 0x2df   : > { %v2888_v41 = vsel %vm2881_vm12, %v2855_v26, %v4377_v7  ;;  %v2889_v44 = vsel %vm2881_vm12, %v2856_v28, %v4378_v14  ;;  %v4401_v62 = vpop.permute.xlu0 %4400 }
 0x2e0   : > { %v4386_v50 = vpop.permute.xlu1 %4385  ;;  %v2922_v6 = vsel %vm2914_vm13, %v2889_v44, %v4393_v11  ;;  %v2921_v21 = vsel %vm2914_vm13, %v2888_v41, %v4392_v15  ;;  %v4403_v54 = vunpack.i.h.bf16 %v4401_v62  ;;  %v4402_v37 = vunpack.i.l.bf16 %v4401_v62 }
 0x2e1   : > { %v4388_v1 = vunpack.i.h.bf16 %v4386_v50  ;;  %v4387_v18 = vunpack.i.l.bf16 %v4386_v50  ;;  %v2950_v49 = vpack.c.bf16 %v2922_v6, %v2921_v21  ;;  %v4253_v44 = vunpack.i.h.bf16 %v5884_v22 }
 0x2e2   : > { %v4252_v11 = vunpack.i.l.bf16 %v5884_v22  ;;  %v4258_v6 = vunpack.i.h.bf16 %v5894_v20  ;;  %v4257_v21 = vunpack.i.l.bf16 %v5894_v20 }
 0x2e3   : > { %4083 = vmatmul.mubr.msk.bf16.gmra.mxu1 %vm2999_vm14, %v2950_v49  ;;  %v2693_v30 = vsel %vm491_vm0, %v4975_v27, %v4388_v1  ;;  %v2692_v33 = vsel %vm491_vm0, %v4976_v53, %v4387_v18  ;;  %v4411_v23 = vpop.permute.xlu0 %4410 }
 0x2e4   : > { %v4396_v4 = vpop.permute.xlu1 %4395  ;;  %v2726_v29 = vsel %vm2716_vm7, %v2693_v30, %v4403_v54  ;;  %v2725_v60 = vsel %vm2716_vm7, %v2692_v33, %v4402_v37  ;;  %v4413_v56 = vunpack.i.h.bf16 %v4411_v23  ;;  %v4412_v42 = vunpack.i.l.bf16 %v4411_v23 }
 0x2e5   : > { %v4398_v36 = vunpack.i.h.bf16 %v4396_v4  ;;  %v4397_v52 = vunpack.i.l.bf16 %v4396_v4  ;;  %v2758_v2 = vsel %vm2749_vm8, %v2725_v60, %v4247_v9  ;;  %v2759_v10 = vsel %vm2749_vm8, %v2726_v29, %v4248_v39 }
 0x2e6   : > { %v2791_v14 = vsel %vm2782_vm9, %v2758_v2, %v4412_v42  ;;  %v2792_v7 = vsel %vm2782_vm9, %v2759_v10, %v4413_v56 }
 0x2e7   : > { %v4421_v34 = vpop.permute.xlu0 %4420  ;;  %v2695_v0 = vsel %vm491_vm0, %v4980_v59, %v4398_v36  ;;  %v2694_v13 = vsel %vm491_vm0, %v4981_v19, %v4397_v52 }
 0x2e8   : > { %v4406_v3 = vpop.permute.xlu1 %4405  ;;  %v4423_v63 = vunpack.i.h.bf16 %v4421_v34  ;;  %v4422_v57 = vunpack.i.l.bf16 %v4421_v34 }
 0x2e9   : > { %v4408_v24 = vunpack.i.h.bf16 %v4406_v3  ;;  %v4407_v58 = vunpack.i.l.bf16 %v4406_v3 }
 0x2ea   : > { %v2824_v15 = vsel %vm2815_vm10, %v2791_v14, %v4422_v57  ;;  %v2825_v50 = vsel %vm2815_vm10, %v2792_v7, %v4423_v63 }
 0x2eb   : > { %v2727_v26 = vsel %vm2716_vm7, %v2694_v13, %v4407_v58  ;;  %v2728_v28 = vsel %vm2716_vm7, %v2695_v0, %v4408_v24  ;;  %v4431_v41 = vpop.permute.xlu0 %4430  ;;  %v2857_v30 = vsel %vm2848_vm11, %v2824_v15, %v4257_v21  ;;  %v2858_v53 = vsel %vm2848_vm11, %v2825_v50, %v4258_v6 }
 0x2ec   : > { %v4416_v61 = vpop.permute.xlu1 %4415  ;;  %v4433_v1 = vunpack.i.h.bf16 %v4431_v41  ;;  %v4432_v18 = vunpack.i.l.bf16 %v4431_v41  ;;  %v2760_v62 = vsel %vm2749_vm8, %v2727_v26, %v4252_v11  ;;  %v2761_v54 = vsel %vm2749_vm8, %v2728_v28, %v4253_v44  ;;  %v4982_v26 = vld [vmem:[#allocation2 + $0x98] sm:$0xff] }
 0x2ed   : > { %v4418_v25 = vunpack.i.h.bf16 %v4416_v61  ;;  %v4417_v40 = vunpack.i.l.bf16 %v4416_v61  ;;  %v4268_v21 = vunpack.i.h.bf16 %v5905_v55 }
 0x2ee   : > { %v2890_v51 = vsel %vm2881_vm12, %v2857_v30, %v4432_v18  ;;  %v2891_v23 = vsel %vm2881_vm12, %v2858_v53, %v4433_v1  ;;  %v4267_v1 = vunpack.i.l.bf16 %v5905_v55 }
 0x2ef   : > { %v2793_v27 = vsel %vm2782_vm9, %v2760_v62, %v4417_v40  ;;  %v2794_v22 = vsel %vm2782_vm9, %v2761_v54, %v4418_v25  ;;  %v4441_v33 = vpop.permute.xlu0 %4440  ;;  %v4983_v25 = vld [vmem:[#allocation2 + $0x90] sm:$0xff] }
 0x2f0   : > { %v4426_v49 = vpop.permute.xlu1 %4425  ;;  %v4443_v45 = vunpack.i.h.bf16 %v4441_v33  ;;  %v4442_v31 = vunpack.i.l.bf16 %v4441_v33 }
 0x2f1   : > { %v4428_v37 = vunpack.i.h.bf16 %v4426_v49  ;;  %v4427_v4 = vunpack.i.l.bf16 %v4426_v49 }
 0x2f2   : > { %v2923_v9 = vsel %vm2914_vm13, %v2890_v51, %v4442_v31  ;;  %v2924_v29 = vsel %vm2914_vm13, %v2891_v23, %v4443_v45  ;;  %v4277_v45 = vunpack.i.l.bf16 %v5916_v43 }
 0x2f3   : > { %v2826_v20 = vsel %vm2815_vm10, %v2793_v27, %v4427_v4  ;;  %v2827_v5 = vsel %vm2815_vm10, %v2794_v22, %v4428_v37  ;;  %v2951_v36 = vpack.c.bf16 %v2924_v29, %v2923_v9  ;;  %v4451_v42 = vpop.permute.xlu0 %4450 }
 0x2f4   : > { %v4436_v39 = vpop.permute.xlu1 %4435  ;;  %v2859_v52 = vsel %vm2848_vm11, %v2826_v20, %v4262_v46  ;;  %v2860_v56 = vsel %vm2848_vm11, %v2827_v5, %v4263_v38  ;;  %v4453_v58 = vunpack.i.h.bf16 %v4451_v42  ;;  %v4452_v34 = vunpack.i.l.bf16 %v4451_v42 }
 0x2f5   : > { %v4438_v60 = vunpack.i.h.bf16 %v4436_v39  ;;  %v4437_v3 = vunpack.i.l.bf16 %v4436_v39  ;;  %4086 = vmatprep.mubr.msk.bf16.mxu1 %vm2999_vm14, %v2951_v36  ;;  %v4278_v5 = vunpack.i.h.bf16 %v5916_v43 }
 0x2f7   : > { %v2892_v24 = vsel %vm2881_vm12, %v2859_v52, %v4437_v3  ;;  %v2893_v8 = vsel %vm2881_vm12, %v2860_v56, %v4438_v60  ;;  %v4461_v61 = vpop.permute.xlu0 %4460  ;;  %v4984_v56 = vld [vmem:[%s5209_s20 + $0xc8] sm:$0xff] }
 0x2f8   : > { %v4446_v63 = vpop.permute.xlu1 %4445  ;;  %v2926_v57 = vsel %vm2914_vm13, %v2893_v8, %v4453_v58  ;;  %v2925_v2 = vsel %vm2914_vm13, %v2892_v24, %v4452_v34  ;;  %v4463_v14 = vunpack.i.h.bf16 %v4461_v61  ;;  %v4462_v7 = vunpack.i.l.bf16 %v4461_v61  ;;  %v4985_v34 = vld [vmem:[%s5209_s20 + $0xb0] sm:$0xff]  ;;  %v4986_v61 = vld [vmem:[%s5209_s20 + $0xd8] sm:$0xff] }
 0x2f9   : > { %v2952_v10 = vpack.c.bf16 %v2926_v57, %v2925_v2  ;;  %v4448_v59 = vunpack.i.h.bf16 %v4446_v63  ;;  %v4447_v0 = vunpack.i.l.bf16 %v4446_v63  ;;  %v1275_v42 = vmul.f32 %v4984_v56, %v5555_v16 }
 0x2fa   : > { %v1272_v63 = vmul.f32 %v4985_v34, %v5555_v16 }
 0x2fb   : > { %4087 = vmatmul.mubr.msk.bf16.gmra.mxu1 %vm2999_vm14, %v2952_v10  ;;  %v4471_v13 = vpop.permute.xlu0 %4470  ;;  %v2697_v28 = vsel %vm491_vm0, %v4982_v26, %v4448_v59  ;;  %v2696_v40 = vsel %vm491_vm0, %v4983_v25, %v4447_v0  ;;  %v1277_v59 = vmul.f32 %v4986_v61, %v5555_v16  ;;  %v3322_v25 = vld [vmem:[%s6770_s10] sm:$0xf] }
 0x2fc   : > { %v6100_v19 = vpop.permute.xlu1 %4455  ;;  %v2730_v11 = vsel %vm2716_vm7, %v2697_v28, %v4463_v14  ;;  %v2729_v15 = vsel %vm2716_vm7, %v2696_v40, %v4462_v7  ;;  %v4473_v50 = vunpack.i.h.bf16 %v4471_v13  ;;  %v4472_v6 = vunpack.i.l.bf16 %v4471_v13  ;;  %v4987_v7 = vld [vmem:[%s5209_s20 + $0xc0] sm:$0xff]  ;;  %4110 = vmatprep.subr.msk.mxu0 %vm645_vm2, %v3322_v25 }
 0x2fd   : > { %v2762_v54 = vsel %vm2749_vm8, %v2729_v15, %v4267_v1  ;;  %v2763_v37 = vsel %vm2749_vm8, %v2730_v11, %v4268_v21  ;;  %v1274_v26 = vmul.f32 %v4987_v7, %v5555_v16  ;;  %v4988_v11 = vld [vmem:[%s5209_s20 + $0xe8] sm:$0xff]  ;;  %4111 = vmatpush3.msk.msra.mxu0 %vm645_vm2, %v3322_v25  ;;  %v4989_v1 = vld [vmem:[%s5209_s20 + $0xd0] sm:$0xff] }
 0x2fe   : > { %v2795_v27 = vsel %vm2782_vm9, %v2762_v54, %v4472_v6  ;;  %v2796_v22 = vsel %vm2782_vm9, %v2763_v37, %v4473_v50  ;;  %v1279_v15 = vmul.f32 %v4988_v11, %v5555_v16  ;;  %v1664_v54 = vld [vmem:[#allocation2 + $0x130] sm:$0x3]  ;;  %v4990_v37 = vld [vmem:[%s5209_s20 + $0xf8] sm:$0xff] }
 0x2ff   : > { %v4481_v44 = vpop.permute.xlu0 %4480 }
 0x300   : > { %v6105_v41 = vpop.permute.xlu1 %4465  ;;  %v4483_v18 = vunpack.i.h.bf16 %v4481_v44  ;;  %v4482_v49 = vunpack.i.l.bf16 %v4481_v44 }
 0x302   : > { %v2828_v30 = vsel %vm2815_vm10, %v2795_v27, %v4482_v49  ;;  %v2829_v53 = vsel %vm2815_vm10, %v2796_v22, %v4483_v18  ;;  %v1276_v18 = vmul.f32 %v4989_v1, %v5555_v16  ;;  %v4991_v22 = vld [vmem:[%s5209_s20 + $0xe0] sm:$0xff] }
 0x303   : > { %v4491_v4 = vpop.permute.xlu0 %4490  ;;  %v2861_v38 = vsel %vm2848_vm11, %v2828_v30, %v4277_v45  ;;  %v2862_v46 = vsel %vm2848_vm11, %v2829_v53, %v4278_v5  ;;  %v1278_v30 = vmul.f32 %v4991_v22, %v5555_v16  ;;  %v4457_v53 = vunpack.i.l.bf16 %v6100_v19  ;;  %v4992_v5 = vld [vmem:[%s5209_s20 + $0xf0] sm:$0xff] }
 0x304   : > { %v6111_v62 = vpop.permute.xlu1 %4475  ;;  %v4493_v33 = vunpack.i.h.bf16 %v4491_v4  ;;  %v4492_v20 = vunpack.i.l.bf16 %v4491_v4  ;;  %v1281_v4 = vmul.f32 %v4990_v37, %v5555_v16  ;;  %v1280_v45 = vmul.f32 %v4992_v5, %v5555_v16 }
 0x306   : > { %v2894_v39 = vsel %vm2881_vm12, %v2861_v38, %v4492_v20  ;;  %v2895_v9 = vsel %vm2881_vm12, %v2862_v46, %v4493_v33  ;;  %v4468_v38 = vunpack.i.h.bf16 %v6105_v41  ;;  %v4467_v46 = vunpack.i.l.bf16 %v6105_v41 }
 0x307   : > { %v4496_v31 = vpop.permute.xlu0 %4495 }
 0x308   : > { %v6119_v55 = vpop.permute.xlu1 %4485  ;;  %v4498_v51 = vunpack.i.h.bf16 %v4496_v31  ;;  %v4497_v23 = vunpack.i.l.bf16 %v4496_v31  ;;  %v4458_v31 = vunpack.i.h.bf16 %v6100_v19 }
 0x30a   : > { %v2927_v60 = vsel %vm2914_vm13, %v2894_v39, %v4497_v23  ;;  %v2928_v3 = vsel %vm2914_vm13, %v2895_v9, %v4498_v51  ;;  %v1792_v9 = vrot.slane %v1664_v54, 1 }
 0x30b   : > { %v2953_v43 = vpack.c.bf16 %v2928_v3, %v2927_v60  ;;  %v6131_v36 = vpop.permute.xlu0 %4505 }
 0x30c   : > { %v6127_v29 = vpop.permute.xlu1 %4500 }
 0x30d   : > { %4090 = vmatprep.mubr.msk.bf16.mxu1 %vm2999_vm14, %v2953_v43 }
 0x30f   : > { %v1395_v8 = vpop.permute.xlu0 %1394 }
 0x310   : > { %v1410_v52 = vpop.permute.xlu1 %1409  ;;  %v1464_v57 = vmul.f32 %v4985_v34, %v1395_v8  ;;  %v1873_v34 = vrot.slane %v1664_v54, 2 }
 0x311   : > { %v1467_v24 = vmul.f32 %v4984_v56, %v1410_v52 }
 0x312   : > { %v1496_v10 = vadd.f32 %v1464_v57, %v1272_v63  ;;  %v4994_v63 = vld [vmem:[#allocation2 + $0xb0] sm:$0xff] }
 0x313   : > { %v1499_v58 = vadd.f32 %v1467_v24, %v1275_v42  ;;  %v1405_v13 = vpop.permute.xlu0 %1404  ;;  %v4273_v42 = vunpack.i.h.bf16 %v5900_v12  ;;  %v4993_v24 = vld [vmem:[#allocation2 + $0xa8] sm:$0xff]  ;;  %v2699_v57 = vsel %vm491_vm0, %v4994_v63, %v4458_v31 }
 0x314   : > { %v1420_v2 = vpop.permute.xlu1 %1419  ;;  %1528 = vst.msk [vmem:[%s5574_s15 + $0xb0] sm:$0xff] %vm491_vm0, %v1496_v10  ;;  %1616 = vst.msk [vmem:[#allocation2 + $0x121] sm:$0xff] %vm491_vm0, %v1496_v10  ;;  %v1466_v28 = vmul.f32 %v4987_v7, %v1405_v13  ;;  %v2698_v8 = vsel %vm491_vm0, %v4993_v24, %v4457_v53  ;;  %v4478_v13 = vunpack.i.h.bf16 %v6111_v62  ;;  %v4502_v24 = vunpack.i.l.bf16 %v6127_v29 }
 0x315   : > { %1531 = vst.msk [vmem:[%s5574_s15 + $0xc8] sm:$0xff] %vm491_vm0, %v1499_v58  ;;  %1619 = vst.msk [vmem:[#allocation2 + $0x141] sm:$0xff] %vm491_vm0, %v1499_v58  ;;  %v1469_v0 = vmul.f32 %v4986_v61, %v1420_v2  ;;  %v2731_v2 = vsel %vm2716_vm7, %v2698_v8, %v4467_v46 }
 0x316   : > { %v1498_v44 = vadd.f32 %v1466_v28, %v1274_v26  ;;  %v4477_v26 = vunpack.i.l.bf16 %v6111_v62 }
 0x317   : > { %v1501_v14 = vadd.f32 %v1469_v0, %v1277_v59  ;;  %v1415_v6 = vpop.permute.xlu0 %1414  ;;  %v2732_v0 = vsel %vm2716_vm7, %v2699_v57, %v4468_v38 }
 0x318   : > { %v1430_v40 = vpop.permute.xlu1 %1429  ;;  %1530 = vst.msk [vmem:[%s5574_s15 + $0xc0] sm:$0xff] %vm491_vm0, %v1498_v44  ;;  %1618 = vst.msk [vmem:[#allocation2 + $0x139] sm:$0xff] %vm491_vm0, %v1498_v44  ;;  %v1468_v49 = vmul.f32 %v4989_v1, %v1415_v6  ;;  %v4272_v44 = vunpack.i.l.bf16 %v5900_v12  ;;  %v2765_v6 = vsel %vm2749_vm8, %v2732_v0, %v4273_v42 }
 0x319   : > { %1533 = vst.msk [vmem:[%s5574_s15 + $0xd8] sm:$0xff] %vm491_vm0, %v1501_v14  ;;  %1621 = vst.msk [vmem:[#allocation2 + $0x159] sm:$0xff] %vm491_vm0, %v1501_v14  ;;  %v1471_v50 = vmul.f32 %v4988_v11, %v1430_v40  ;;  %v4488_v11 = vunpack.i.h.bf16 %v6119_v55 }
 0x31a   : > { %v1500_v33 = vadd.f32 %v1468_v49, %v1276_v18  ;;  %v2764_v18 = vsel %vm2749_vm8, %v2731_v2, %v4272_v44  ;;  %v2798_v49 = vsel %vm2782_vm9, %v2765_v6, %v4478_v13 }
 0x31b   : > { %v1503_v21 = vadd.f32 %v1471_v50, %v1279_v15  ;;  %v1425_v51 = vpop.permute.xlu0 %1424  ;;  %v6176_v23 = vld [vmem:[#allocation2 + $0x120] sm:$0xff]  ;;  %v6178_v39 = vld [vmem:[#allocation2 + $0x128] sm:$0xff]  ;;  %v4487_v15 = vunpack.i.l.bf16 %v6119_v55  ;;  %v2797_v55 = vsel %vm2782_vm9, %v2764_v18, %v4477_v26 }
 0x31c   : > { %v1440_v27 = vpop.permute.xlu1 %1439  ;;  %1532 = vst.msk [vmem:[%s5574_s15 + $0xd0] sm:$0xff] %vm491_vm0, %v1500_v33  ;;  %1620 = vst.msk [vmem:[#allocation2 + $0x151] sm:$0xff] %vm491_vm0, %v1500_v33  ;;  %v1470_v3 = vmul.f32 %v4991_v22, %v1425_v51  ;;  %v4634_v16 = vpack.i.bf16 %v6178_v39, %v6176_v23  ;;  %v1789_v43 = vrot.slane %v6176_v23, 1  ;;  %v1790_v41 = vrot.slane %v6178_v39, 1  ;;  %v1667_v38 = vld [vmem:[#allocation2 + $0x148] sm:$0x3] }
 0x31d   : > { %1535 = vst.msk [vmem:[%s5574_s15 + $0xe8] sm:$0xff] %vm491_vm0, %v1503_v21  ;;  %1623 = vst.msk [vmem:[#allocation2 + $0x171] sm:$0xff] %vm491_vm0, %v1503_v21  ;;  %v1473_v20 = vmul.f32 %v4990_v37, %v1440_v27  ;;  %v1870_v52 = vrot.slane %v6176_v23, 2  ;;  %v1871_v56 = vrot.slane %v6178_v39, 2  ;;  %v2830_v27 = vsel %vm2815_vm10, %v2797_v55, %v4487_v15 }
 0x31e   : > { %v1502_v58 = vadd.f32 %v1470_v3, %v1278_v30  ;;  %4635 = vrot.lane.b32.xlu0 %v4634_v16, %s5013_s23  ;;  %4630 = vrot.lane.b32.xlu1 %v4634_v16, %s5018_s16  ;;  %v1791_v61 = vsel %vm1728_vm4, %v1789_v43, %v1790_v41  ;;  %v1793_v59 = vsel %vm1728_vm4, %v1790_v41, %v1792_v9  ;;  %v1878_v42 = vrot.slane %v1667_v38, 2 }
 0x31f   : > { %v1505_v60 = vadd.f32 %v1473_v20, %v1281_v4  ;;  %v1435_v10 = vpop.permute.xlu0 %1434  ;;  %v4649_v7 = vpack.i.bf16 %v1793_v59, %v1791_v61  ;;  %v1872_v25 = vsel %vm1809_vm5, %v1870_v52, %v1871_v56  ;;  %v1874_v40 = vsel %vm1809_vm5, %v1871_v56, %v1873_v34  ;;  %v6227_v30 = vld [vmem:[#allocation2 + $0x138] sm:$0xff]  ;;  %v6229_v53 = vld [vmem:[#allocation2 + $0x140] sm:$0xff] }
 0x320   : > { %v4511_v19 = vpop.permute.xlu1 %4510  ;;  %1534 = vst.msk [vmem:[%s5574_s15 + $0xe0] sm:$0xff] %vm491_vm0, %v1502_v58  ;;  %1622 = vst.msk [vmem:[#allocation2 + $0x169] sm:$0xff] %vm491_vm0, %v1502_v58  ;;  %v1472_v14 = vmul.f32 %v4992_v5, %v1435_v10  ;;  %v4654_v12 = vpack.i.bf16 %v1874_v40, %v1872_v25  ;;  %v2831_v22 = vsel %vm2815_vm10, %v2798_v49, %v4488_v11  ;;  %v1876_v3 = vrot.slane %v6229_v53, 2 }
 0x321   : > { %1537 = vst.msk [vmem:[%s5574_s15 + $0xf8] sm:$0xff] %vm491_vm0, %v1505_v60  ;;  %1625 = vst.msk [vmem:[#allocation2 + $0x189] sm:$0xff] %vm491_vm0, %v1505_v60  ;;  %v4513_v21 = vunpack.i.h.bf16 %v4511_v19  ;;  %v4512_v1 = vunpack.i.l.bf16 %v4511_v19  ;;  %v1875_v60 = vrot.slane %v6227_v30, 2  ;;  %v1794_v43 = vrot.slane %v6227_v30, 1 }
 0x322   : > { %v1504_v50 = vadd.f32 %v1472_v14, %v1280_v45  ;;  %4650 = vrot.lane.b32.xlu0 %v4649_v7, %s5016_s25  ;;  %4640 = vrot.lane.b32.xlu1 %v4649_v7, %s5019_s21  ;;  %v1795_v41 = vrot.slane %v6229_v53, 1  ;;  %v4674_v8 = vpack.i.bf16 %v6229_v53, %v6227_v30  ;;  %v1797_v58 = vrot.slane %v1667_v38, 1 }
 0x323   : > { %v6214_v62 = vpop.permute.xlu0 %4515  ;;  %v2864_v33 = vsel %vm2848_vm11, %v2831_v22, %v4513_v21  ;;  %v2863_v20 = vsel %vm2848_vm11, %v2830_v27, %v4512_v1  ;;  %v4503_v34 = vunpack.i.h.bf16 %v6127_v29  ;;  %v1877_v57 = vsel %vm1809_vm5, %v1875_v60, %v1876_v3  ;;  %v4995_v29 = vld [vmem:[#allocation2 + $0xc0] sm:$0xff]  ;;  %v6278_v18 = vld [vmem:[#allocation2 + $0x150] sm:$0xff]  ;;  %v6280_v49 = vld [vmem:[#allocation2 + $0x158] sm:$0xff] }
 0x324   : > { %v4521_v28 = vpop.permute.xlu1 %4520  ;;  %1536 = vst.msk [vmem:[%s5574_s15 + $0xf0] sm:$0xff] %vm491_vm0, %v1504_v50  ;;  %1624 = vst.msk [vmem:[#allocation2 + $0x181] sm:$0xff] %vm491_vm0, %v1504_v50  ;;  %v1879_v2 = vsel %vm1809_vm5, %v1876_v3, %v1878_v42  ;;  %v1796_v10 = vsel %vm1728_vm4, %v1794_v43, %v1795_v41  ;;  %v1798_v61 = vsel %vm1728_vm4, %v1795_v41, %v1797_v58  ;;  %v4507_v59 = vunpack.i.l.bf16 %v6131_v36  ;;  %v6270_v50 = vld [vmem:[#allocation2 + $0x160] sm:$0x3]  ;;  %v4998_v27 = vld [vmem:[#allocation2 + $0xd8] sm:$0xff] }
 0x325   : > { %v4523_v54 = vunpack.i.h.bf16 %v4521_v28  ;;  %v4522_v37 = vunpack.i.l.bf16 %v4521_v28  ;;  %v2700_v13 = vsel %vm491_vm0, %v4995_v29, %v4502_v24  ;;  %v4508_v14 = vunpack.i.h.bf16 %v6131_v36  ;;  %v4996_v28 = vld [vmem:[#allocation2 + $0xc8] sm:$0xff] }
 0x326   : > { %4655 = vrot.lane.b32.xlu0 %v4654_v12, %s5021_s18  ;;  %4645 = vrot.lane.b32.xlu1 %v4654_v12, %s5020_s28  ;;  %v4684_v26 = vpack.i.bf16 %v1879_v2, %v1877_v57  ;;  %v2701_v25 = vsel %vm491_vm0, %v4996_v28, %v4503_v34  ;;  %v4518_v40 = vunpack.i.h.bf16 %v6214_v62  ;;  %v4679_v15 = vpack.i.bf16 %v1798_v61, %v1796_v10 }
 0x327   : > { %v4526_v5 = vpop.permute.xlu0 %4525  ;;  %v2897_v46 = vsel %vm2881_vm12, %v2864_v33, %v4523_v54  ;;  %v2896_v51 = vsel %vm2881_vm12, %v2863_v20, %v4522_v37  ;;  %v2733_v36 = vsel %vm2716_vm7, %v2700_v13, %v4507_v59  ;;  %v2734_v1 = vsel %vm2716_vm7, %v2701_v25, %v4508_v14  ;;  %v4997_v54 = vld [vmem:[#allocation2 + $0xe0] sm:$0xff] }
 0x328   : > { %v6222_v4 = vpop.permute.xlu1 %4530  ;;  %v4528_v45 = vunpack.i.h.bf16 %v4526_v5  ;;  %v4527_v31 = vunpack.i.l.bf16 %v4526_v5  ;;  %v2767_v55 = vsel %vm2749_vm8, %v2734_v1, %v4518_v40  ;;  %v1799_v38 = vrot.slane %v6278_v18, 1 }
 0x329   : > { %v4533_v44 = vunpack.i.h.bf16 %v6222_v4  ;;  %v4532_v6 = vunpack.i.l.bf16 %v6222_v4  ;;  %v1880_v24 = vrot.slane %v6278_v18, 2 }
 0x32a   : > { %v2930_v16 = vsel %vm2914_vm13, %v2897_v46, %v4528_v45  ;;  %v2929_v19 = vsel %vm2914_vm13, %v2896_v51, %v4527_v31  ;;  %4665 = vrot.lane.b32.xlu0 %v4654_v12, %s5017_s26  ;;  %4660 = vrot.lane.b32.xlu1 %v4649_v7, %s5015_s24  ;;  %v4517_v7 = vunpack.i.l.bf16 %v6214_v62  ;;  %v1802_v12 = vrot.slane %v6270_v50, 1 }
 0x32b   : > { %v2954_v52 = vpack.c.bf16 %v2930_v16, %v2929_v19  ;;  %v6246_v56 = vpop.permute.xlu0 %4540  ;;  %v2703_v37 = vsel %vm491_vm0, %v4997_v54, %v4533_v44  ;;  %v2702_v22 = vsel %vm491_vm0, %v4998_v27, %v4532_v6  ;;  %v1800_v46 = vrot.slane %v6280_v49, 1 }
 0x32c   : > { %v6236_v9 = vpop.permute.xlu1 %4535  ;;  %v2766_v62 = vsel %vm2749_vm8, %v2733_v36, %v4517_v7  ;;  %v4543_v33 = vunpack.i.h.bf16 %v6246_v56  ;;  %v4542_v20 = vunpack.i.l.bf16 %v6246_v56  ;;  %v1883_v44 = vrot.slane %v6270_v50, 2 }
 0x32d   : > { %4091 = vmatmul.mubr.msk.bf16.gmra.mxu1 %vm2999_vm14, %v2954_v52  ;;  %v4538_v51 = vunpack.i.h.bf16 %v6236_v9  ;;  %v4537_v60 = vunpack.i.l.bf16 %v6236_v9  ;;  %v4714_v52 = vpack.i.bf16 %v6280_v49, %v6278_v18  ;;  %v1801_v57 = vsel %vm1728_vm4, %v1799_v38, %v1800_v46 }
 0x32e   : > { %4675 = vrot.lane.b32.xlu0 %v4674_v8, %s5018_s16  ;;  %4670 = vrot.lane.b32.xlu1 %v4674_v8, %s5013_s23  ;;  %v2799_v56 = vsel %vm2782_vm9, %v2766_v62, %v4542_v20  ;;  %v2800_v42 = vsel %vm2782_vm9, %v2767_v55, %v4543_v33  ;;  %v1881_v8 = vrot.slane %v6280_v49, 2  ;;  %v1803_v2 = vsel %vm1728_vm4, %v1800_v46, %v1802_v12  ;;  %v5000_v33 = vld [vmem:[#allocation2 + $0xf0] sm:$0xff] }
 0x32f   : > { %v4546_v0 = vpop.permute.xlu0 %4545  ;;  %v4729_v55 = vpack.i.bf16 %v1803_v2, %v1801_v57 }
 0x330   : > { %v6252_v63 = vpop.permute.xlu1 %4550  ;;  %v4548_v5 = vunpack.i.h.bf16 %v4546_v0  ;;  %v4547_v45 = vunpack.i.l.bf16 %v4546_v0  ;;  %v1882_v1 = vsel %vm1809_vm5, %v1880_v24, %v1881_v8  ;;  %v1884_v54 = vsel %vm1809_vm5, %v1881_v8, %v1883_v44 }
 0x331   : > { %v4553_v6 = vunpack.i.h.bf16 %v6252_v63  ;;  %v4552_v27 = vunpack.i.l.bf16 %v6252_v63 }
 0x332   : > { %4685 = vrot.lane.b32.xlu0 %v4684_v26, %s5021_s18  ;;  %4680 = vrot.lane.b32.xlu1 %v4679_v15, %s5016_s25  ;;  %v2832_v9 = vsel %vm2815_vm10, %v2799_v56, %v4547_v45  ;;  %v2833_v58 = vsel %vm2815_vm10, %v2800_v42, %v4548_v5 }
 0x333   : > { %v4556_v21 = vpop.permute.xlu0 %4555 }
 0x334   : > { %v6268_v11 = vpop.permute.xlu1 %4560  ;;  %v4558_v3 = vunpack.i.h.bf16 %v4556_v21  ;;  %v4557_v16 = vunpack.i.l.bf16 %v4556_v21 }
 0x335   : > { %v4563_v20 = vunpack.i.h.bf16 %v6268_v11  ;;  %v4562_v5 = vunpack.i.l.bf16 %v6268_v11 }
 0x336   : > { %4700 = vrot.lane.b32.xlu0 %v4679_v15, %s5019_s21  ;;  %4690 = vrot.lane.b32.xlu1 %v4679_v15, %s5015_s24  ;;  %v2865_v10 = vsel %vm2848_vm11, %v2832_v9, %v4557_v16  ;;  %v2866_v61 = vsel %vm2848_vm11, %v2833_v58, %v4558_v3  ;;  %v2736_v15 = vsel %vm2716_vm7, %v2703_v37, %v4538_v51  ;;  %v6345_v9 = vld [vmem:[#allocation2 + $0x168] sm:$0xff]  ;;  %v6347_v58 = vld [vmem:[#allocation2 + $0x170] sm:$0xff] }
 0x337   : > { %v4571_v31 = vpop.permute.xlu0 %4570  ;;  %v2769_v63 = vsel %vm2749_vm8, %v2736_v15, %v4553_v6  ;;  %v4734_v3 = vpack.i.bf16 %v1884_v54, %v1882_v1  ;;  %v1805_v44 = vrot.slane %v6347_v58, 1 }
 0x338   : > { %v6285_v4 = vpop.permute.xlu1 %4565  ;;  %v4573_v19 = vunpack.i.h.bf16 %v4571_v31  ;;  %v4572_v43 = vunpack.i.l.bf16 %v4571_v31  ;;  %v2802_v42 = vsel %vm2782_vm9, %v2769_v63, %v4563_v20 }
 0x339   : > { %v4568_v46 = vunpack.i.h.bf16 %v6285_v4  ;;  %v4567_v51 = vunpack.i.l.bf16 %v6285_v4 }
 0x33a   : > { %4705 = vrot.lane.b32.xlu0 %v4684_v26, %s5020_s28  ;;  %4695 = vrot.lane.b32.xlu1 %v4684_v26, %s5017_s26  ;;  %v2898_v29 = vsel %vm2881_vm12, %v2865_v10, %v4572_v43  ;;  %v2899_v13 = vsel %vm2881_vm12, %v2866_v61, %v4573_v19  ;;  %v2735_v26 = vsel %vm2716_vm7, %v2702_v22, %v4537_v60  ;;  %v4999_v22 = vld [vmem:[#allocation2 + $0xf8] sm:$0xff] }
 0x33b   : > { %v4576_v34 = vpop.permute.xlu0 %4575  ;;  %v2835_v57 = vsel %vm2815_vm10, %v2802_v42, %v4568_v46 }
 0x33c   : > { %v4581_v41 = vpop.permute.xlu1 %4580  ;;  %v4578_v59 = vunpack.i.h.bf16 %v4576_v34  ;;  %v4577_v0 = vunpack.i.l.bf16 %v4576_v34 }
 0x33d   : > { %v4583_v14 = vunpack.i.h.bf16 %v4581_v41  ;;  %v4582_v7 = vunpack.i.l.bf16 %v4581_v41  ;;  %v2768_v41 = vsel %vm2749_vm8, %v2735_v26, %v4552_v27 }
 0x33e   : > { %v2931_v25 = vsel %vm2914_vm13, %v2898_v29, %v4577_v0  ;;  %v2932_v40 = vsel %vm2914_vm13, %v2899_v13, %v4578_v59  ;;  %4715 = vrot.lane.b32.xlu0 %v4714_v52, %s5013_s23  ;;  %4710 = vrot.lane.b32.xlu1 %v4714_v52, %s5018_s16  ;;  %v2801_v24 = vsel %vm2782_vm9, %v2768_v41, %v4562_v5  ;;  %v1673_v29 = vld [vmem:[#allocation2 + $0x178] sm:$0x3] }
 0x33f   : > { %v2955_v36 = vpack.c.bf16 %v2932_v40, %v2931_v25  ;;  %v4586_v21 = vpop.permute.xlu0 %4585  ;;  %v2705_v50 = vsel %vm491_vm0, %v4999_v22, %v4583_v14  ;;  %v2704_v37 = vsel %vm491_vm0, %v5000_v33, %v4582_v7  ;;  %v2834_v34 = vsel %vm2815_vm10, %v2801_v24, %v4567_v51  ;;  %v1674_v22 = vld [vmem:[#allocation2 + $0x180] sm:$0xff]  ;;  %v1676_v33 = vld [vmem:[#allocation2 + $0x190] sm:$0x3] }
 0x340   : > { %v4591_v28 = vpop.permute.xlu1 %4590  ;;  %v4588_v62 = vunpack.i.h.bf16 %v4586_v21  ;;  %v4587_v12 = vunpack.i.l.bf16 %v4586_v21  ;;  %v1885_v7 = vrot.slane %v6345_v9, 2  ;;  %v1804_v40 = vrot.slane %v6345_v9, 1 }
 0x341   : > { %4094 = vmatprep.mubr.msk.bf16.mxu1 %vm2999_vm14, %v2955_v36  ;;  %v4593_v16 = vunpack.i.h.bf16 %v4591_v28  ;;  %v4592_v19 = vunpack.i.l.bf16 %v4591_v28  ;;  %v1886_v28 = vrot.slane %v6347_v58, 2  ;;  %v1888_v6 = vrot.slane %v1673_v29, 2 }
 0x342   : > { %v2738_v45 = vsel %vm2716_vm7, %v2705_v50, %v4588_v62  ;;  %v2737_v31 = vsel %vm2716_vm7, %v2704_v37, %v4587_v12  ;;  %4730 = vrot.lane.b32.xlu0 %v4729_v55, %s5016_s25  ;;  %4720 = vrot.lane.b32.xlu1 %v4729_v55, %s5019_s21  ;;  %v4754_v36 = vpack.i.bf16 %v6347_v58, %v6345_v9  ;;  %v1807_v21 = vrot.slane %v1673_v29, 1  ;;  %v1675_v50 = vld [vmem:[#allocation2 + $0x188] sm:$0xff] }
 0x343   : > { %v4596_v60 = vpop.permute.xlu0 %4595  ;;  %v2868_v10 = vsel %vm2848_vm11, %v2835_v57, %v4593_v16  ;;  %v2867_v61 = vsel %vm2848_vm11, %v2834_v34, %v4592_v19  ;;  %v1887_v1 = vsel %vm1809_vm5, %v1885_v7, %v1886_v28  ;;  %v1889_v62 = vsel %vm1809_vm5, %v1886_v28, %v1888_v6 }
 0x344   : > { %v4601_v38 = vpop.permute.xlu1 %4600  ;;  %v4598_v11 = vunpack.i.h.bf16 %v4596_v60  ;;  %v4597_v43 = vunpack.i.l.bf16 %v4596_v60  ;;  %v1806_v12 = vsel %vm1728_vm4, %v1804_v40, %v1805_v44  ;;  %v1808_v54 = vsel %vm1728_vm4, %v1805_v44, %v1807_v21 }
 0x345   : > { %v4603_v52 = vunpack.i.h.bf16 %v4601_v38  ;;  %v4602_v56 = vunpack.i.l.bf16 %v4601_v38  ;;  %v4759_v27 = vpack.i.bf16 %v1808_v54, %v1806_v12  ;;  %v1893_v37 = vrot.slane %v1674_v22, 1 }
 0x346   : > { %v6339_v8 = vsel %vm2749_vm8, %v2737_v31, %v4597_v43  ;;  %v6342_v4 = vsel %vm2749_vm8, %v2738_v45, %v4598_v11  ;;  %4735 = vrot.lane.b32.xlu0 %v4734_v3, %s5021_s18  ;;  %4725 = vrot.lane.b32.xlu1 %v4734_v3, %s5020_s28  ;;  %v1894_v20 = vrot.slane %v1675_v50, 1  ;;  %v1896_v5 = vrot.slane %v1676_v33, 1 }
 0x347   : > { %v4606_v2 = vpop.permute.xlu0 %4605  ;;  %v2901_v13 = vsel %vm2881_vm12, %v2868_v10, %v4603_v52  ;;  %v2900_v14 = vsel %vm2881_vm12, %v2867_v61, %v4602_v56  ;;  %v4794_v45 = vpack.i.bf16 %v1675_v50, %v1674_v22  ;;  %v1898_v63 = vrot.slane %v1674_v22, 2  ;;  %v6398_v52 = vld [vmem:[%s6768_s8] ss:$0 sm:$0xff] }
 0x348   : > { %v4608_v59 = vunpack.i.h.bf16 %v4606_v2  ;;  %v4607_v0 = vunpack.i.l.bf16 %v4606_v2  ;;  %v1895_v31 = vsel %vm1728_vm4, %v1893_v37, %v1894_v20  ;;  %v1897_v38 = vsel %vm1728_vm4, %v1894_v20, %v1896_v5  ;;  %v6393_v11 = vpop.permute.xlu1 %4610 }
 0x349   : > { %v1899_v46 = vrot.slane %v1675_v50, 2  ;;  %v1901_v51 = vrot.slane %v1676_v33, 2  ;;  %v4809_v60 = vpack.i.bf16 %v1897_v38, %v1895_v31 }
 0x34a   : > { %v2934_v26 = vsel %vm2914_vm13, %v2901_v13, %v4608_v59  ;;  %v2933_v25 = vsel %vm2914_vm13, %v2900_v14, %v4607_v0  ;;  %4745 = vrot.lane.b32.xlu0 %v4734_v3, %s5017_s26  ;;  %4740 = vrot.lane.b32.xlu1 %v4729_v55, %s5015_s24  ;;  %v4764_v55 = vpack.i.bf16 %v1889_v62, %v1887_v1 }
 0x34b   : > { %v2956_v15 = vpack.c.bf16 %v2934_v26, %v2933_v25  ;;  %v1900_v3 = vsel %vm1809_vm5, %v1898_v63, %v1899_v46  ;;  %v1902_v16 = vsel %vm1809_vm5, %v1899_v46, %v1901_v51  ;;  %v4621_v43 = vpop.permute.xlu0 %4620 }
 0x34c   : > { %v4814_v19 = vpack.i.bf16 %v1902_v16, %v1900_v3  ;;  %v6400_v42 = vpop.permute.xlu1 %4615  ;;  %v4623_v7 = vunpack.i.h.bf16 %v4621_v43  ;;  %v4622_v28 = vunpack.i.l.bf16 %v4621_v43  ;;  %v4612_v3 = vunpack.i.l.bf16 %v6393_v11 }
 0x34d   : > { %4095 = vmatmul.mubr.msk.bf16.gmra.mxu1 %vm2999_vm14, %v2956_v15  ;;  %v4617_v43 = vunpack.i.l.bf16 %v6400_v42 }
 0x34e   : > { %4755 = vrot.lane.b32.xlu0 %v4754_v36, %s5018_s16  ;;  %4750 = vrot.lane.b32.xlu1 %v4754_v36, %s5013_s23  ;;  %v2803_v54 = vsel %vm2782_vm9, %v6339_v8, %v4622_v28 }
 0x34f   : > { %v4626_v24 = vpop.permute.xlu0 %4625 }
 0x350   : > { %v4628_v26 = vunpack.i.h.bf16 %v4626_v24  ;;  %v4627_v25 = vunpack.i.l.bf16 %v4626_v24 }
 0x352   : > { %4765 = vrot.lane.b32.xlu0 %v4764_v55, %s5021_s18  ;;  %4760 = vrot.lane.b32.xlu1 %v4759_v27, %s5016_s25 }
 0x356   : > { %4780 = vrot.lane.b32.xlu0 %v4759_v27, %s5019_s21  ;;  %4770 = vrot.lane.b32.xlu1 %v4759_v27, %s5015_s24  ;;  %v2836_v27 = vsel %vm2815_vm10, %v2803_v54, %v4627_v25 }
 0x35a   : > { %4785 = vrot.lane.b32.xlu0 %v4764_v55, %s5020_s28  ;;  %4775 = vrot.lane.b32.xlu1 %v4764_v55, %s5017_s26  ;;  %v2804_v55 = vsel %vm2782_vm9, %v6342_v4, %v4623_v7 }
 0x35b   : > { %v2837_v22 = vsel %vm2815_vm10, %v2804_v55, %v4628_v26 }
 0x35e   : > { %4795 = vrot.lane.b32.xlu0 %v4794_v45, %s5013_s23  ;;  %4790 = vrot.lane.b32.xlu1 %v4794_v45, %s5018_s16  ;;  %s6623_s16 = scalar_lea.vmem %s6772_s13, %s5203_s17 }
 0x362   : > { %4810 = vrot.lane.b32.xlu0 %v4809_v60, %s5016_s25  ;;  %4800 = vrot.lane.b32.xlu1 %v4809_v60, %s5019_s21  ;;  %v4613_v60 = vunpack.i.h.bf16 %v6393_v11 }
 0x366   : > { %4815 = vrot.lane.b32.xlu0 %v4814_v19, %s5021_s18  ;;  %4805 = vrot.lane.b32.xlu1 %v4814_v19, %s5020_s28  ;;  %v4618_v19 = vunpack.i.h.bf16 %v6400_v42 }
 0x36a   : > { %4820 = vrot.lane.b32.xlu1 %v4819_v17, %s5021_s18 }
 0x38b   : > { %v4080_v41 = vpop.f32.mrf.mxu1 }
 0x38c   : > { %v3221_v57 = vmul.f32 %v4080_v41, %v6398_v52 }
 0x38d   : > { %v3085_v56 = vpop.f32.mrf.mxu1 }
 0x38e   : > { %v3219_v34 = vmul.f32 %v6398_v52, %v3085_v56  ;;  %v3260_v13 = vadd.f32 %v6407_v35, %v3221_v57 }
 0x38f   : > { %v4081_v47 = vpop.f32.mrf.mxu1 }
 0x390   : > { %v3258_v17 = vadd.f32 %v6407_v35, %v3219_v34  ;;  %v3222_v61 = vmul.f32 %v4081_v47, %v6398_v52  ;;  %v4631_v0 = vpop.permute.xlu1 %4630  ;;  %v4636_v29 = vpop.permute.xlu0 %4635  ;;  %v3292_v6 = vmax.f32 %v3260_v13, 0.0  ;;  %v5001_v47 = vld [vmem:[#allocation2 + $0x110] sm:$0xff] }
 0x391   : > { %v3088_v2 = vpop.f32.mrf.mxu1  ;;  %v4638_v36 = vunpack.i.h.bf16 %v4636_v29  ;;  %v4637_v21 = vunpack.i.l.bf16 %v4636_v29  ;;  %v4633_v41 = vunpack.i.h.bf16 %v4631_v0  ;;  %v4632_v56 = vunpack.i.l.bf16 %v4631_v0 }
 0x392   : > { %v3290_v10 = vmax.f32 %v3258_v17, 0.0  ;;  %v3220_v59 = vmul.f32 %v6398_v52, %v3088_v2  ;;  %v3261_v40 = vadd.f32 %v6407_v35, %v3222_v61  ;;  %v2707_v17 = vsel %vm491_vm0, %v5001_v47, %v4613_v60  ;;  %v5002_v2 = vld [vmem:[#allocation2 + $0x108] sm:$0xff] }
 0x393   : > { %v2869_v37 = vsel %vm2848_vm11, %v2836_v27, %v4637_v21  ;;  %v2870_v20 = vsel %vm2848_vm11, %v2837_v22, %v4638_v36  ;;  %v2706_v11 = vsel %vm491_vm0, %v5002_v2, %v4612_v3  ;;  %v2740_v42 = vsel %vm2716_vm7, %v2707_v17, %v4618_v19 }
 0x394   : > { %v3259_v14 = vadd.f32 %v6407_v35, %v3220_v59  ;;  %4112 = vmatprep.mubr.msk.f32.mxu0 %vm641_vm6, %v3290_v10  ;;  %v4651_v15 = vpop.permute.xlu0 %4650  ;;  %v4641_v1 = vpop.permute.xlu1 %4640  ;;  %v3293_v50 = vmax.f32 %v3261_v40, 0.0  ;;  %v2739_v29 = vsel %vm2716_vm7, %v2706_v11, %v4617_v43  ;;  %v2773_v0 = vsel %vm2749_vm8, %v2740_v42, %v4633_v41 }
 0x395   : > { %v4653_v62 = vunpack.i.h.bf16 %v4651_v15  ;;  %v4652_v12 = vunpack.i.l.bf16 %v4651_v15  ;;  %v4643_v24 = vunpack.i.h.bf16 %v4641_v1  ;;  %v4642_v34 = vunpack.i.l.bf16 %v4641_v1 }
 0x396   : > { %v3291_v44 = vmax.f32 %v3259_v14, 0.0  ;;  %v2772_v14 = vsel %vm2749_vm8, %v2739_v29, %v4632_v56 }
 0x397   : > { %v2902_v8 = vsel %vm2881_vm12, %v2869_v37, %v4652_v12  ;;  %v2903_v38 = vsel %vm2881_vm12, %v2870_v20, %v4653_v62  ;;  %v2806_v25 = vsel %vm2782_vm9, %v2773_v0, %v4643_v24  ;;  %v2805_v40 = vsel %vm2782_vm9, %v2772_v14, %v4642_v34 }
 0x398   : > { %4113 = vmatmul.mubr.msk.f32.vlgmr.msra.gmra.mxu0 %vm641_vm6, %v3291_v44  ;;  %v4656_v33 = vpop.permute.xlu0 %4655  ;;  %v4646_v5 = vpop.permute.xlu1 %4645 }
 0x399   : > { %4115 = vmatprep.mubr.msk.f32.mxu0 %vm641_vm6, %v3292_v6  ;;  %v4658_v45 = vunpack.i.h.bf16 %v4656_v33  ;;  %v4657_v31 = vunpack.i.l.bf16 %v4656_v33  ;;  %v4647_v10 = vunpack.i.l.bf16 %v4646_v5  ;;  %v4648_v13 = vunpack.i.h.bf16 %v4646_v5 }
 0x39b   : > { %v2935_v4 = vsel %vm2914_vm13, %v2902_v8, %v4657_v31  ;;  %v2936_v63 = vsel %vm2914_vm13, %v2903_v38, %v4658_v45  ;;  %v2838_v6 = vsel %vm2815_vm10, %v2805_v40, %v4647_v10  ;;  %v2839_v54 = vsel %vm2815_vm10, %v2806_v25, %v4648_v13 }
 0x39c   : > { %4116 = vmatmul.mubr.msk.f32.gmra.mxu0 %vm641_vm6, %v3293_v50  ;;  %v2957_v46 = vpack.c.bf16 %v2936_v63, %v2935_v4  ;;  %v6431_v51 = vpop.permute.xlu0 %4665  ;;  %v6435_v16 = vpop.permute.xlu1 %4660 }
 0x39d   : > { %v4663_v47 = vunpack.i.h.bf16 %v6435_v16  ;;  %v4662_v17 = vunpack.i.l.bf16 %v6435_v16  ;;  %v4668_v10 = vunpack.i.h.bf16 %v6431_v51 }
 0x39e   : > { %4098 = vmatprep.mubr.msk.bf16.mxu1 %vm2999_vm14, %v2957_v46 }
 0x39f   : > { %v2709_v29 = vsel %vm491_vm0, %v6178_v39, %v4663_v47  ;;  %v2708_v42 = vsel %vm491_vm0, %v6176_v23, %v4662_v17 }
 0x3a0   : > { %v6440_v57 = vpop.permute.xlu0 %4675  ;;  %v4671_v61 = vpop.permute.xlu1 %4670 }
 0x3a1   : > { %v4673_v7 = vunpack.i.h.bf16 %v4671_v61  ;;  %v4672_v28 = vunpack.i.l.bf16 %v4671_v61  ;;  %v4667_v61 = vunpack.i.l.bf16 %v6431_v51  ;;  %v4678_v16 = vunpack.i.h.bf16 %v6440_v57 }
 0x3a2   : > { %v4677_v13 = vunpack.i.l.bf16 %v6440_v57  ;;  %v2742_v51 = vsel %vm2716_vm7, %v2709_v29, %v4668_v10 }
 0x3a3   : > { %v4084_v59 = vpop.f32.mrf.mxu1  ;;  %v2872_v50 = vsel %vm2848_vm11, %v2839_v54, %v4673_v7  ;;  %v2871_v33 = vsel %vm2848_vm11, %v2838_v6, %v4672_v28  ;;  %v2741_v25 = vsel %vm2716_vm7, %v2708_v42, %v4667_v61 }
 0x3a4   : > { %v4686_v15 = vpop.permute.xlu0 %4685  ;;  %v3225_v36 = vmul.f32 %v4084_v59, %v6398_v52  ;;  %v4681_v21 = vpop.permute.xlu1 %4680  ;;  %v2774_v23 = vsel %vm2749_vm8, %v2741_v25, %v4677_v13 }
 0x3a5   : > { %v3101_v26 = vpop.f32.mrf.mxu1  ;;  %v4688_v1 = vunpack.i.h.bf16 %v4686_v15  ;;  %v4687_v62 = vunpack.i.l.bf16 %v4686_v15  ;;  %v4683_v27 = vunpack.i.h.bf16 %v4681_v21  ;;  %v4682_v22 = vunpack.i.l.bf16 %v4681_v21 }
 0x3a6   : > { %v3223_v44 = vmul.f32 %v6398_v52, %v3101_v26  ;;  %v3264_v4 = vadd.f32 %v6407_v35, %v3225_v36  ;;  %v2775_v15 = vsel %vm2749_vm8, %v2742_v51, %v4678_v16 }
 0x3a7   : > { %v4085_v12 = vpop.f32.mrf.mxu1  ;;  %v2905_v45 = vsel %vm2881_vm12, %v2872_v50, %v4683_v27  ;;  %v2904_v31 = vsel %vm2881_vm12, %v2871_v33, %v4682_v22 }
 0x3a8   : > { %v3262_v55 = vadd.f32 %v6407_v35, %v3223_v44  ;;  %v3226_v37 = vmul.f32 %v4085_v12, %v6398_v52  ;;  %v4701_v38 = vpop.permute.xlu0 %4700  ;;  %v2938_v63 = vsel %vm2914_vm13, %v2905_v45, %v4688_v1  ;;  %v2937_v46 = vsel %vm2914_vm13, %v2904_v31, %v4687_v62  ;;  %v6464_v60 = vpop.permute.xlu1 %4690 }
 0x3a9   : > { %v3104_v20 = vpop.f32.mrf.mxu1  ;;  %v2958_v3 = vpack.c.bf16 %v2938_v63, %v2937_v46  ;;  %v3296_v24 = vmax.f32 %v3264_v4, 0.0  ;;  %v4703_v0 = vunpack.i.h.bf16 %v4701_v38  ;;  %v4702_v14 = vunpack.i.l.bf16 %v4701_v38 }
 0x3aa   : > { %v3294_v5 = vmax.f32 %v3262_v55, 0.0  ;;  %v3224_v8 = vmul.f32 %v6398_v52, %v3104_v20  ;;  %v3265_v43 = vadd.f32 %v6407_v35, %v3226_v37  ;;  %v4692_v63 = vunpack.i.l.bf16 %v6464_v60 }
 0x3ab   : > { %4099 = vmatmul.mubr.msk.bf16.gmra.mxu1 %vm2999_vm14, %v2958_v3  ;;  %v2807_v36 = vsel %vm2782_vm9, %v2774_v23, %v4702_v14  ;;  %v2808_v21 = vsel %vm2782_vm9, %v2775_v15, %v4703_v0 }
 0x3ac   : > { %v3263_v19 = vadd.f32 %v6407_v35, %v3224_v8  ;;  %4118 = vmatprep.mubr.msk.f32.mxu0 %vm641_vm6, %v3294_v5  ;;  %v4706_v56 = vpop.permute.xlu0 %4705  ;;  %v6470_v34 = vpop.permute.xlu1 %4695  ;;  %v3297_v2 = vmax.f32 %v3265_v43, 0.0  ;;  %v4693_v5 = vunpack.i.h.bf16 %v6464_v60  ;;  %v2710_v42 = vsel %vm491_vm0, %v6227_v30, %v4692_v63 }
 0x3ad   : > { %v4708_v7 = vunpack.i.h.bf16 %v4706_v56  ;;  %v4707_v28 = vunpack.i.l.bf16 %v4706_v56 }
 0x3ae   : > { %v3295_v41 = vmax.f32 %v3263_v19, 0.0  ;;  %v2711_v56 = vsel %vm491_vm0, %v6229_v53, %v4693_v5 }
 0x3af   : > { %v2840_v1 = vsel %vm2815_vm10, %v2807_v36, %v4707_v28  ;;  %v2841_v62 = vsel %vm2815_vm10, %v2808_v21, %v4708_v7 }
 0x3b0   : > { %4119 = vmatmul.mubr.msk.f32.gmra.mxu0 %vm641_vm6, %v3295_v41  ;;  %v4716_v11 = vpop.permute.xlu0 %4715  ;;  %v6478_v59 = vpop.permute.xlu1 %4710  ;;  %v4698_v41 = vunpack.i.h.bf16 %v6470_v34 }
 0x3b1   : > { %4121 = vmatprep.mubr.msk.f32.mxu0 %vm641_vm6, %v3296_v24  ;;  %v4718_v40 = vunpack.i.h.bf16 %v4716_v11  ;;  %v4717_v39 = vunpack.i.l.bf16 %v4716_v11  ;;  %v4697_v24 = vunpack.i.l.bf16 %v6470_v34  ;;  %v4713_v47 = vunpack.i.h.bf16 %v6478_v59 }
 0x3b2   : > { %v2744_v0 = vsel %vm2716_vm7, %v2711_v56, %v4698_v41 }
 0x3b3   : > { %v2873_v54 = vsel %vm2848_vm11, %v2840_v1, %v4717_v39  ;;  %v2874_v55 = vsel %vm2848_vm11, %v2841_v62, %v4718_v40  ;;  %v2743_v28 = vsel %vm2716_vm7, %v2710_v42, %v4697_v24 }
 0x3b4   : > { %4122 = vmatmul.mubr.msk.f32.gmra.mxu0 %vm641_vm6, %v3297_v2  ;;  %v4731_v26 = vpop.permute.xlu0 %4730  ;;  %v4721_v44 = vpop.permute.xlu1 %4720  ;;  %v4712_v2 = vunpack.i.l.bf16 %v6478_v59 }
 0x3b5   : > { %v4733_v6 = vunpack.i.h.bf16 %v4731_v26  ;;  %v4732_v57 = vunpack.i.l.bf16 %v4731_v26  ;;  %v4723_v11 = vunpack.i.h.bf16 %v4721_v44  ;;  %v4722_v53 = vunpack.i.l.bf16 %v4721_v44 }
 0x3b6   : > { %v2777_v26 = vsel %vm2749_vm8, %v2744_v0, %v4713_v47  ;;  %v2776_v30 = vsel %vm2749_vm8, %v2743_v28, %v4712_v2  ;;  %v4201_v2 = vunpack.i.h.bf16 %v5517_v48 }
 0x3b7   : > { %v2906_v37 = vsel %vm2881_vm12, %v2873_v54, %v4732_v57  ;;  %v2907_v20 = vsel %vm2881_vm12, %v2874_v55, %v4733_v6  ;;  %v2810_v40 = vsel %vm2782_vm9, %v2777_v26, %v4723_v11  ;;  %v2809_v15 = vsel %vm2782_vm9, %v2776_v30, %v4722_v53 }
 0x3b8   : > { %v4736_v12 = vpop.permute.xlu0 %4735  ;;  %v4726_v27 = vpop.permute.xlu1 %4725 }
 0x3b9   : > { %v4738_v22 = vunpack.i.h.bf16 %v4736_v12  ;;  %v4737_v50 = vunpack.i.l.bf16 %v4736_v12  ;;  %v4728_v14 = vunpack.i.h.bf16 %v4726_v27  ;;  %v4727_v7 = vunpack.i.l.bf16 %v4726_v27 }
 0x3bb   : > { %v4088_v33 = vpop.f32.mrf.mxu1  ;;  %v2939_v45 = vsel %vm2914_vm13, %v2906_v37, %v4737_v50  ;;  %v2940_v31 = vsel %vm2914_vm13, %v2907_v20, %v4738_v22  ;;  %v2842_v1 = vsel %vm2815_vm10, %v2809_v15, %v4727_v7  ;;  %v2843_v62 = vsel %vm2815_vm10, %v2810_v40, %v4728_v14 }
 0x3bc   : > { %v2959_v38 = vpack.c.bf16 %v2940_v31, %v2939_v45  ;;  %v6502_v4 = vpop.permute.xlu0 %4745  ;;  %v3229_v46 = vmul.f32 %v4088_v33, %v6398_v52  ;;  %v6507_v19 = vpop.permute.xlu1 %4740 }
 0x3bd   : > { %v3117_v8 = vpop.f32.mrf.mxu1 }
 0x3be   : > { %v3227_v3 = vmul.f32 %v6398_v52, %v3117_v8  ;;  %4102 = vmatprep.mubr.msk.bf16.mxu1 %vm2999_vm14, %v2959_v38  ;;  %v3268_v34 = vadd.f32 %v6407_v35, %v3229_v46  ;;  %v4743_v8 = vunpack.i.h.bf16 %v6507_v19  ;;  %v4742_v38 = vunpack.i.l.bf16 %v6507_v19 }
 0x3bf   : > { %v4089_v43 = vpop.f32.mrf.mxu1  ;;  %v4186_v19 = vunpack.i.h.bf16 %v5513_v32 }
 0x3c0   : > { %v3266_v60 = vadd.f32 %v6407_v35, %v3227_v3  ;;  %v3230_v10 = vmul.f32 %v4089_v43, %v6398_v52  ;;  %v6519_v29 = vpop.permute.xlu0 %4755  ;;  %v4751_v13 = vpop.permute.xlu1 %4750  ;;  %v3300_v6 = vmax.f32 %v3268_v34, 0.0  ;;  %v4748_v3 = vunpack.i.h.bf16 %v6502_v4 }
 0x3c1   : > { %v3120_v17 = vpop.f32.mrf.mxu1  ;;  %v4753_v51 = vunpack.i.h.bf16 %v4751_v13  ;;  %v4752_v25 = vunpack.i.l.bf16 %v4751_v13  ;;  %v4747_v43 = vunpack.i.l.bf16 %v6502_v4  ;;  %v2713_v41 = vsel %vm491_vm0, %v6280_v49, %v4743_v8 }
 0x3c2   : > { %v3228_v61 = vmul.f32 %v6398_v52, %v3120_v17  ;;  %v3298_v16 = vmax.f32 %v3266_v60, 0.0  ;;  %v3269_v39 = vadd.f32 %v6407_v35, %v3230_v10  ;;  %v2712_v56 = vsel %vm491_vm0, %v6278_v18, %v4742_v38 }
 0x3c3   : > { %v2876_v55 = vsel %vm2848_vm11, %v2843_v62, %v4753_v51  ;;  %v2875_v27 = vsel %vm2848_vm11, %v2842_v1, %v4752_v25  ;;  %v4758_v24 = vunpack.i.h.bf16 %v6519_v29  ;;  %v4757_v47 = vunpack.i.l.bf16 %v6519_v29 }
 0x3c4   : > { %v3267_v59 = vadd.f32 %v6407_v35, %v3228_v61  ;;  %4124 = vmatprep.mubr.msk.f32.mxu0 %vm641_vm6, %v3298_v16  ;;  %v4766_v23 = vpop.permute.xlu0 %4765  ;;  %v4761_v57 = vpop.permute.xlu1 %4760  ;;  %v3301_v22 = vmax.f32 %v3269_v39, 0.0  ;;  %v4185_v17 = vunpack.i.l.bf16 %v5513_v32  ;;  %v2746_v61 = vsel %vm2716_vm7, %v2713_v41, %v4748_v3 }
 0x3c5   : > { %v4768_v36 = vunpack.i.h.bf16 %v4766_v23  ;;  %v4767_v21 = vunpack.i.l.bf16 %v4766_v23  ;;  %v4763_v12 = vunpack.i.h.bf16 %v4761_v57  ;;  %v4762_v54 = vunpack.i.l.bf16 %v4761_v57 }
 0x3c6   : > { %v3299_v44 = vmax.f32 %v3267_v59, 0.0  ;;  %v2745_v49 = vsel %vm2716_vm7, %v2712_v56, %v4747_v43  ;;  %v2779_v29 = vsel %vm2749_vm8, %v2746_v61, %v4758_v24  ;;  %v4200_v8 = vunpack.i.l.bf16 %v5517_v48 }
 0x3c7   : > { %v2909_v50 = vsel %vm2881_vm12, %v2876_v55, %v4763_v12  ;;  %v2908_v33 = vsel %vm2881_vm12, %v2875_v27, %v4762_v54  ;;  %v2778_v53 = vsel %vm2749_vm8, %v2745_v49, %v4757_v47 }
 0x3c8   : > { %4125 = vmatmul.mubr.msk.f32.gmra.mxu0 %vm641_vm6, %v3299_v44  ;;  %v4781_v37 = vpop.permute.xlu0 %4780  ;;  %v2942_v20 = vsel %vm2914_vm13, %v2909_v50, %v4768_v36  ;;  %v2941_v5 = vsel %vm2914_vm13, %v2908_v33, %v4767_v21  ;;  %v4771_v45 = vpop.permute.xlu1 %4770 }
 0x3c9   : > { %4127 = vmatprep.mubr.msk.f32.mxu0 %vm641_vm6, %v3300_v6  ;;  %v2960_v31 = vpack.c.bf16 %v2942_v20, %v2941_v5  ;;  %v4783_v11 = vunpack.i.h.bf16 %v4781_v37  ;;  %v4782_v10 = vunpack.i.l.bf16 %v4781_v37  ;;  %v4773_v42 = vunpack.i.h.bf16 %v4771_v45 }
 0x3ca   : > { %v4772_v18 = vunpack.i.l.bf16 %v4771_v45 }
 0x3cb   : > { %4103 = vmatmul.mubr.msk.bf16.gmra.mxu1 %vm2999_vm14, %v2960_v31  ;;  %v2811_v59 = vsel %vm2782_vm9, %v2778_v53, %v4782_v10  ;;  %v2812_v28 = vsel %vm2782_vm9, %v2779_v29, %v4783_v11  ;;  %v2715_v30 = vsel %vm491_vm0, %v6347_v58, %v4773_v42 }
 0x3cc   : > { %4128 = vmatmul.mubr.msk.f32.gmra.mxu0 %vm641_vm6, %v3301_v22  ;;  %v4786_v63 = vpop.permute.xlu0 %4785  ;;  %v4776_v46 = vpop.permute.xlu1 %4775  ;;  %v2714_v40 = vsel %vm491_vm0, %v6345_v9, %v4772_v18 }
 0x3cd   : > { %v4788_v34 = vunpack.i.h.bf16 %v4786_v63  ;;  %v4787_v16 = vunpack.i.l.bf16 %v4786_v63  ;;  %v4778_v13 = vunpack.i.h.bf16 %v4776_v46  ;;  %v4777_v0 = vunpack.i.l.bf16 %v4776_v46 }
 0x3cf   : > { %v2844_v23 = vsel %vm2815_vm10, %v2811_v59, %v4787_v16  ;;  %v2845_v15 = vsel %vm2815_vm10, %v2812_v28, %v4788_v34  ;;  %v2747_v36 = vsel %vm2716_vm7, %v2714_v40, %v4777_v0  ;;  %v2748_v21 = vsel %vm2716_vm7, %v2715_v30, %v4778_v13 }
 0x3d0   : > { %v4796_v60 = vpop.permute.xlu0 %4795  ;;  %v4791_v4 = vpop.permute.xlu1 %4790 }
 0x3d1   : > { %v4798_v32 = vunpack.i.h.bf16 %v4796_v60  ;;  %v4797_v14 = vunpack.i.l.bf16 %v4796_v60  ;;  %v4793_v26 = vunpack.i.h.bf16 %v4791_v4  ;;  %v4792_v51 = vunpack.i.l.bf16 %v4791_v4 }
 0x3d3   : > { %v2877_v1 = vsel %vm2848_vm11, %v2844_v23, %v4797_v14  ;;  %v2878_v62 = vsel %vm2848_vm11, %v2845_v15, %v4798_v32  ;;  %v2781_v12 = vsel %vm2749_vm8, %v2748_v21, %v4793_v26  ;;  %v2780_v9 = vsel %vm2749_vm8, %v2747_v36, %v4792_v51 }
 0x3d4   : > { %v4811_v7 = vpop.permute.xlu0 %4810  ;;  %v4801_v25 = vpop.permute.xlu1 %4800 }
 0x3d5   : > { %v4813_v39 = vunpack.i.h.bf16 %v4811_v7  ;;  %v4812_v44 = vunpack.i.l.bf16 %v4811_v7  ;;  %v4803_v6 = vunpack.i.h.bf16 %v4801_v25  ;;  %v4802_v57 = vunpack.i.l.bf16 %v4801_v25 }
 0x3d7   : > { %v2910_v22 = vsel %vm2881_vm12, %v2877_v1, %v4812_v44  ;;  %v2911_v50 = vsel %vm2881_vm12, %v2878_v62, %v4813_v39  ;;  %v2814_v20 = vsel %vm2782_vm9, %v2781_v12, %v4803_v6  ;;  %v2813_v5 = vsel %vm2782_vm9, %v2780_v9, %v4802_v57  ;;  %v6617_v1 = vld [vmem:[#allocation4] ss:$0 sm:$0xff] }
 0x3d8   : > { %v4816_v58 = vpop.permute.xlu0 %4815  ;;  %v4806_v54 = vpop.permute.xlu1 %4805 }
 0x3d9   : > { %v4818_v55 = vunpack.i.h.bf16 %v4816_v58  ;;  %v4817_v27 = vunpack.i.l.bf16 %v4816_v58  ;;  %v4808_v33 = vunpack.i.h.bf16 %v4806_v54  ;;  %v4807_v37 = vunpack.i.l.bf16 %v4806_v54 }
 0x3db   : > { %v2943_v45 = vsel %vm2914_vm13, %v2910_v22, %v4817_v27  ;;  %v2944_v31 = vsel %vm2914_vm13, %v2911_v50, %v4818_v55  ;;  %v2846_v38 = vsel %vm2815_vm10, %v2813_v5, %v4807_v37  ;;  %v2847_v63 = vsel %vm2815_vm10, %v2814_v20, %v4808_v33 }
 0x3dc   : > { %v2961_v46 = vpack.c.bf16 %v2944_v31, %v2943_v45  ;;  %v2879_v3 = vsel %vm2848_vm11, %v2846_v38, %v4185_v17  ;;  %v2880_v43 = vsel %vm2848_vm11, %v2847_v63, %v4186_v19  ;;  %v4821_v41 = vpop.permute.xlu1 %4820 }
 0x3dd   : > { %v4823_v56 = vunpack.i.h.bf16 %v4821_v41  ;;  %v4822_v24 = vunpack.i.l.bf16 %v4821_v41  ;;  %v2912_v47 = vsel %vm2881_vm12, %v2879_v3, %v4200_v8  ;;  %v2913_v60 = vsel %vm2881_vm12, %v2880_v43, %v4201_v2 }
 0x3de   : > { %4106 = vmatprep.mubr.msk.bf16.mxu1 %vm2999_vm14, %v2961_v46 }
 0x3df   : > { %v2945_v48 = vsel %vm2914_vm13, %v2912_v47, %v4822_v24  ;;  %v2946_v11 = vsel %vm2914_vm13, %v2913_v60, %v4823_v56 }
 0x3e0   : > { %v2962_v10 = vpack.c.bf16 %v2946_v11, %v2945_v48 }
 0x3e2   : > { %4107 = vmatmul.mubr.msk.bf16.gmra.mxu1 %vm2999_vm14, %v2962_v10 }
 0x3ed   : > { %v4092_v4 = vpop.f32.mrf.mxu1 }
 0x3ee   : > { %v3233_v61 = vmul.f32 %v4092_v4, %v6398_v52 }
 0x3ef   : > { %v3133_v17 = vpop.f32.mrf.mxu1 }
 0x3f0   : > { %v3231_v19 = vmul.f32 %v6398_v52, %v3133_v17  ;;  %v3272_v34 = vadd.f32 %v6407_v35, %v3233_v61 }
 0x3f1   : > { %v4093_v49 = vpop.f32.mrf.mxu1 }
 0x3f2   : > { %v3270_v42 = vadd.f32 %v6407_v35, %v3231_v19  ;;  %v3234_v53 = vmul.f32 %v4093_v49, %v6398_v52  ;;  %v3304_v32 = vmax.f32 %v3272_v34, 0.0 }
 0x3f3   : > { %v3136_v18 = vpop.f32.mrf.mxu1 }
 0x3f4   : > { %v3302_v2 = vmax.f32 %v3270_v42, 0.0  ;;  %v3232_v29 = vmul.f32 %v6398_v52, %v3136_v18  ;;  %v3273_v13 = vadd.f32 %v6407_v35, %v3234_v53 }
 0x3f6   : > { %v3271_v16 = vadd.f32 %v6407_v35, %v3232_v29  ;;  %4130 = vmatprep.mubr.msk.f32.mxu0 %vm641_vm6, %v3302_v2  ;;  %v3305_v14 = vmax.f32 %v3273_v13, 0.0 }
 0x3f8   : > { %v3303_v0 = vmax.f32 %v3271_v16, 0.0 }
 0x3fa   : > { %4131 = vmatmul.mubr.msk.f32.gmra.mxu0 %vm641_vm6, %v3303_v0 }
 0x3fb   : > { %4133 = vmatprep.mubr.msk.f32.mxu0 %vm641_vm6, %v3304_v32 }
 0x3fe   : > { %4134 = vmatmul.mubr.msk.f32.gmra.mxu0 %vm641_vm6, %v3305_v14 }
 0x40d   : > { %v4096_v7 = vpop.f32.mrf.mxu1 }
 0x40e   : > { %v3237_v26 = vmul.f32 %v4096_v7, %v6398_v52 }
 0x40f   : > { %v3149_v59 = vpop.f32.mrf.mxu1 }
 0x410   : > { %v3235_v28 = vmul.f32 %v6398_v52, %v3149_v59  ;;  %v3276_v23 = vadd.f32 %v6407_v35, %v3237_v26 }
 0x411   : > { %v4097_v51 = vpop.f32.mrf.mxu1 }
 0x412   : > { %v3274_v25 = vadd.f32 %v6407_v35, %v3235_v28  ;;  %v3238_v39 = vmul.f32 %v4097_v51, %v6398_v52  ;;  %v3308_v36 = vmax.f32 %v3276_v23, 0.0 }
 0x413   : > { %v3152_v30 = vpop.f32.mrf.mxu1 }
 0x414   : > { %v3306_v40 = vmax.f32 %v3274_v25, 0.0  ;;  %v3236_v44 = vmul.f32 %v6398_v52, %v3152_v30  ;;  %v3277_v6 = vadd.f32 %v6407_v35, %v3238_v39 }
 0x416   : > { %v3275_v15 = vadd.f32 %v6407_v35, %v3236_v44  ;;  %4136 = vmatprep.mubr.msk.f32.mxu0 %vm641_vm6, %v3306_v40  ;;  %v3309_v21 = vmax.f32 %v3277_v6, 0.0 }
 0x418   : > { %v3307_v57 = vmax.f32 %v3275_v15, 0.0 }
 0x41a   : > { %4137 = vmatmul.mubr.msk.f32.gmra.mxu0 %vm641_vm6, %v3307_v57 }
 0x41b   : > { %4139 = vmatprep.mubr.msk.f32.mxu0 %vm641_vm6, %v3308_v36 }
 0x41e   : > { %4140 = vmatmul.mubr.msk.f32.gmra.mxu0 %vm641_vm6, %v3309_v21 }
 0x458   : > { %v4114_v62 = vpop.f32.mrf.mxu0 }
 0x459   : > { %v3501_v58 = vadd.f32 %v4114_v62, %v6617_v1 }
 0x45a   : > { %v3495_v12 = vpop.f32.mrf.mxu0 }
 0x45b   : > { %3656 = vst.msk [vmem:[%s6623_s16 + $0x8] sm:$0xff] %vm3654_vm15, %v3501_v58  ;;  %v3496_v9 = vadd.f32 %v6617_v1, %v3495_v12 }
 0x45c   : > { %v4117_v54 = vpop.f32.mrf.mxu0 }
 0x45d   : > { %3655 = vst.msk [vmem:[%s6623_s16] sm:$0xff] %vm3654_vm15, %v3496_v9  ;;  %v3511_v55 = vadd.f32 %v4117_v54, %v6617_v1 }
 0x45e   : > { %v3505_v27 = vpop.f32.mrf.mxu0 }
 0x45f   : > { %3658 = vst.msk [vmem:[%s6623_s16 + $0x18] sm:$0xff] %vm3654_vm15, %v3511_v55  ;;  %v3506_v22 = vadd.f32 %v6617_v1, %v3505_v27 }
 0x461   : > { %3657 = vst.msk [vmem:[%s6623_s16 + $0x10] sm:$0xff] %vm3654_vm15, %v3506_v22 }
 0x46b   : > { %v4100_v50 = vpop.f32.mrf.mxu1 }
 0x46c   : > { %v3241_v45 = vmul.f32 %v4100_v50, %v6398_v52 }
 0x46d   : > { %v3165_v33 = vpop.f32.mrf.mxu1 }
 0x46e   : > { %v3239_v20 = vmul.f32 %v6398_v52, %v3165_v33  ;;  %v3280_v47 = vadd.f32 %v6407_v35, %v3241_v45 }
 0x46f   : > { %v4101_v31 = vpop.f32.mrf.mxu1 }
 0x470   : > { %v4120_v37 = vpop.f32.mrf.mxu0  ;;  %v3278_v38 = vadd.f32 %v6407_v35, %v3239_v20  ;;  %v3242_v41 = vmul.f32 %v4101_v31, %v6398_v52  ;;  %v3312_v17 = vmax.f32 %v3280_v47, 0.0 }
 0x471   : > { %v3521_v5 = vadd.f32 %v4120_v37, %v6617_v1  ;;  %v3168_v46 = vpop.f32.mrf.mxu1 }
 0x472   : > { %v3515_v8 = vpop.f32.mrf.mxu0  ;;  %v3310_v43 = vmax.f32 %v3278_v38, 0.0  ;;  %v3240_v56 = vmul.f32 %v6398_v52, %v3168_v46  ;;  %v3281_v10 = vadd.f32 %v6407_v35, %v3242_v41 }
 0x473   : > { %3660 = vst.msk [vmem:[%s6623_s16 + $0x28] sm:$0xff] %vm3654_vm15, %v3521_v5  ;;  %v3516_v63 = vadd.f32 %v6617_v1, %v3515_v8 }
 0x474   : > { %v4123_v3 = vpop.f32.mrf.mxu0  ;;  %v3279_v48 = vadd.f32 %v6407_v35, %v3240_v56  ;;  %4142 = vmatprep.mubr.msk.f32.mxu0 %vm641_vm6, %v3310_v43  ;;  %v3313_v19 = vmax.f32 %v3281_v10, 0.0 }
 0x475   : > { %3659 = vst.msk [vmem:[%s6623_s16 + $0x20] sm:$0xff] %vm3654_vm15, %v3516_v63  ;;  %v3531_v24 = vadd.f32 %v4123_v3, %v6617_v1 }
 0x476   : > { %v3525_v60 = vpop.f32.mrf.mxu0  ;;  %v3311_v4 = vmax.f32 %v3279_v48, 0.0 }
 0x477   : > { %3662 = vst.msk [vmem:[%s6623_s16 + $0x38] sm:$0xff] %vm3654_vm15, %v3531_v24  ;;  %v3526_v11 = vadd.f32 %v6617_v1, %v3525_v60 }
 0x478   : > { %4143 = vmatmul.mubr.msk.f32.gmra.mxu0 %vm641_vm6, %v3311_v4 }
 0x479   : > { %3661 = vst.msk [vmem:[%s6623_s16 + $0x30] sm:$0xff] %vm3654_vm15, %v3526_v11  ;;  %4145 = vmatprep.mubr.msk.f32.mxu0 %vm641_vm6, %v3312_v17 }
 0x47c   : > { %4146 = vmatmul.mubr.msk.f32.gmra.mxu0 %vm641_vm6, %v3313_v19 }
 0x488   : > { %v4126_v61 = vpop.f32.mrf.mxu0 }
 0x489   : > { %v3541_v49 = vadd.f32 %v4126_v61, %v6617_v1 }
 0x48a   : > { %v3535_v42 = vpop.f32.mrf.mxu0 }
 0x48b   : > { %3664 = vst.msk [vmem:[%s6623_s16 + $0x48] sm:$0xff] %vm3654_vm15, %v3541_v49  ;;  %v3536_v18 = vadd.f32 %v6617_v1, %v3535_v42  ;;  %v4104_v29 = vpop.f32.mrf.mxu1 }
 0x48c   : > { %v4129_v2 = vpop.f32.mrf.mxu0  ;;  %v3245_v32 = vmul.f32 %v4104_v29, %v6398_v52 }
 0x48d   : > { %3663 = vst.msk [vmem:[%s6623_s16 + $0x40] sm:$0xff] %vm3654_vm15, %v3536_v18  ;;  %v3551_v53 = vadd.f32 %v4129_v2, %v6617_v1  ;;  %v3181_v13 = vpop.f32.mrf.mxu1 }
 0x48e   : > { %v3545_v34 = vpop.f32.mrf.mxu0  ;;  %v3243_v0 = vmul.f32 %v6398_v52, %v3181_v13  ;;  %v3284_v25 = vadd.f32 %v6407_v35, %v3245_v32 }
 0x48f   : > { %3666 = vst.msk [vmem:[%s6623_s16 + $0x58] sm:$0xff] %vm3654_vm15, %v3551_v53  ;;  %v3546_v16 = vadd.f32 %v6617_v1, %v3545_v34  ;;  %v4105_v14 = vpop.f32.mrf.mxu1 }
 0x490   : > { %v3282_v7 = vadd.f32 %v6407_v35, %v3243_v0  ;;  %v3246_v26 = vmul.f32 %v4105_v14, %v6398_v52  ;;  %v3316_v44 = vmax.f32 %v3284_v25, 0.0 }
 0x491   : > { %3665 = vst.msk [vmem:[%s6623_s16 + $0x50] sm:$0xff] %vm3654_vm15, %v3546_v16  ;;  %v3184_v59 = vpop.f32.mrf.mxu1 }
 0x492   : > { %v3314_v28 = vmax.f32 %v3282_v7, 0.0  ;;  %v3244_v51 = vmul.f32 %v6398_v52, %v3184_v59  ;;  %v3285_v40 = vadd.f32 %v6407_v35, %v3246_v26 }
 0x494   : > { %v3283_v30 = vadd.f32 %v6407_v35, %v3244_v51  ;;  %4148 = vmatprep.mubr.msk.f32.mxu0 %vm641_vm6, %v3314_v28  ;;  %v3317_v23 = vmax.f32 %v3285_v40, 0.0 }
 0x496   : > { %v3315_v39 = vmax.f32 %v3283_v30, 0.0 }
 0x498   : > { %4149 = vmatmul.mubr.msk.f32.gmra.mxu0 %vm641_vm6, %v3315_v39 }
 0x499   : > { %4151 = vmatprep.mubr.msk.f32.mxu0 %vm641_vm6, %v3316_v44 }
 0x49c   : > { %4152 = vmatmul.mubr.msk.f32.gmra.mxu0 %vm641_vm6, %v3317_v23 }
 0x4a2   : > { %v4108_v15 = vpop.f32.mrf.mxu1 }
 0x4a3   : > { %v3249_v36 = vmul.f32 %v4108_v15, %v6398_v52 }
 0x4a4   : > { %v3197_v6 = vpop.f32.mrf.mxu1 }
 0x4a5   : > { %v3247_v57 = vmul.f32 %v6398_v52, %v3197_v6  ;;  %v3288_v55 = vadd.f32 %v6407_v35, %v3249_v36 }
 0x4a6   : > { %v4109_v21 = vpop.f32.mrf.mxu1 }
 0x4a7   : > { %v3286_v62 = vadd.f32 %v6407_v35, %v3247_v57  ;;  %v3250_v9 = vmul.f32 %v4109_v21, %v6398_v52  ;;  %v3320_v33 = vmax.f32 %v3288_v55, 0.0 }
 0x4a8   : > { %v3200_v58 = vpop.f32.mrf.mxu1 }
 0x4a9   : > { %v3318_v12 = vmax.f32 %v3286_v62, 0.0  ;;  %v3248_v54 = vmul.f32 %v6398_v52, %v3200_v58  ;;  %v3289_v22 = vadd.f32 %v6407_v35, %v3250_v9 }
 0x4ab   : > { %v3287_v27 = vadd.f32 %v6407_v35, %v3248_v54  ;;  %4154 = vmatprep.mubr.msk.f32.mxu0 %vm641_vm6, %v3318_v12  ;;  %v3321_v37 = vmax.f32 %v3289_v22, 0.0 }
 0x4ad   : > { %v3319_v50 = vmax.f32 %v3287_v27, 0.0 }
 0x4af   : > { %4155 = vmatmul.mubr.msk.f32.gmra.mxu0 %vm641_vm6, %v3319_v50 }
 0x4b0   : > { %4157 = vmatprep.mubr.msk.f32.mxu0 %vm641_vm6, %v3320_v33 }
 0x4b3   : > { %4158 = vmatmul.mubr.msk.f32.gmra.mxu0 %vm641_vm6, %v3321_v37 }
 0x4ba   : > { %v4132_v52 = vpop.f32.mrf.mxu0 }
 0x4bb   : > { %v3561_v20 = vadd.f32 %v4132_v52, %v6617_v1 }
 0x4bc   : > { %v3555_v5 = vpop.f32.mrf.mxu0 }
 0x4bd   : > { %3668 = vst.msk [vmem:[%s6623_s16 + $0x68] sm:$0xff] %vm3654_vm15, %v3561_v20  ;;  %v3556_v35 = vadd.f32 %v6617_v1, %v3555_v5 }
 0x4be   : > { %v4135_v45 = vpop.f32.mrf.mxu0 }
 0x4bf   : > { %3667 = vst.msk [vmem:[%s6623_s16 + $0x60] sm:$0xff] %vm3654_vm15, %v3556_v35  ;;  %v3571_v31 = vadd.f32 %v4135_v45, %v6617_v1 }
 0x4c0   : > { %v3565_v8 = vpop.f32.mrf.mxu0 }
 0x4c1   : > { %3670 = vst.msk [vmem:[%s6623_s16 + $0x78] sm:$0xff] %vm3654_vm15, %v3571_v31  ;;  %v3566_v38 = vadd.f32 %v6617_v1, %v3565_v8 }
 0x4c3   : > { %3669 = vst.msk [vmem:[%s6623_s16 + $0x70] sm:$0xff] %vm3654_vm15, %v3566_v38 }
 0x4da   : > { %v4138_v63 = vpop.f32.mrf.mxu0 }
 0x4db   : > { %v3581_v46 = vadd.f32 %v4138_v63, %v6617_v1 }
 0x4dc   : > { %v3575_v3 = vpop.f32.mrf.mxu0 }
 0x4dd   : > { %3672 = vst.msk [vmem:[%s6623_s16 + $0x88] sm:$0xff] %vm3654_vm15, %v3581_v46  ;;  %v3576_v43 = vadd.f32 %v6617_v1, %v3575_v3 }
 0x4de   : > { %v4141_v41 = vpop.f32.mrf.mxu0 }
 0x4df   : > { %3671 = vst.msk [vmem:[%s6623_s16 + $0x80] sm:$0xff] %vm3654_vm15, %v3576_v43  ;;  %v3591_v56 = vadd.f32 %v4141_v41, %v6617_v1 }
 0x4e0   : > { %v3585_v24 = vpop.f32.mrf.mxu0 }
 0x4e1   : > { %3674 = vst.msk [vmem:[%s6623_s16 + $0x98] sm:$0xff] %vm3654_vm15, %v3591_v56  ;;  %v3586_v47 = vadd.f32 %v6617_v1, %v3585_v24 }
 0x4e3   : > { %3673 = vst.msk [vmem:[%s6623_s16 + $0x90] sm:$0xff] %vm3654_vm15, %v3586_v47 }
 0x538   : > { %v4144_v60 = vpop.f32.mrf.mxu0 }
 0x539   : > { %v3601_v48 = vadd.f32 %v4144_v60, %v6617_v1 }
 0x53a   : > { %v3595_v11 = vpop.f32.mrf.mxu0 }
 0x53b   : > { %3676 = vst.msk [vmem:[%s6623_s16 + $0xa8] sm:$0xff] %vm3654_vm15, %v3601_v48  ;;  %v3596_v10 = vadd.f32 %v6617_v1, %v3595_v11 }
 0x53c   : > { %v4147_v4 = vpop.f32.mrf.mxu0 }
 0x53d   : > { %3675 = vst.msk [vmem:[%s6623_s16 + $0xa0] sm:$0xff] %vm3654_vm15, %v3596_v10  ;;  %v3611_v17 = vadd.f32 %v4147_v4, %v6617_v1 }
 0x53e   : > { %v3605_v19 = vpop.f32.mrf.mxu0 }
 0x53f   : > { %3678 = vst.msk [vmem:[%s6623_s16 + $0xb8] sm:$0xff] %vm3654_vm15, %v3611_v17  ;;  %v3606_v61 = vadd.f32 %v6617_v1, %v3605_v19 }
 0x541   : > { %3677 = vst.msk [vmem:[%s6623_s16 + $0xb0] sm:$0xff] %vm3654_vm15, %v3606_v61 }
 0x558   : > { %v4150_v49 = vpop.f32.mrf.mxu0 }
 0x559   : > { %v3621_v42 = vadd.f32 %v4150_v49, %v6617_v1 }
 0x55a   : > { %v3615_v18 = vpop.f32.mrf.mxu0 }
 0x55b   : > { %3680 = vst.msk [vmem:[%s6623_s16 + $0xc8] sm:$0xff] %vm3654_vm15, %v3621_v42  ;;  %v3616_v2 = vadd.f32 %v6617_v1, %v3615_v18 }
 0x55c   : > { %v4153_v53 = vpop.f32.mrf.mxu0 }
 0x55d   : > { %3679 = vst.msk [vmem:[%s6623_s16 + $0xc0] sm:$0xff] %vm3654_vm15, %v3616_v2  ;;  %v3631_v29 = vadd.f32 %v4153_v53, %v6617_v1 }
 0x55e   : > { %v3625_v34 = vpop.f32.mrf.mxu0 }
 0x55f   : > { %3682 = vst.msk [vmem:[%s6623_s16 + $0xd8] sm:$0xff] %vm3654_vm15, %v3631_v29  ;;  %v3626_v16 = vadd.f32 %v6617_v1, %v3625_v34 }
 0x561   : > { %3681 = vst.msk [vmem:[%s6623_s16 + $0xd0] sm:$0xff] %vm3654_vm15, %v3626_v16 }
 0x56f   : > { %v4156_v13 = vpop.f32.mrf.mxu0 }
 0x570   : > { %v3641_v0 = vadd.f32 %v4156_v13, %v6617_v1 }
 0x571   : > { %v3635_v32 = vpop.f32.mrf.mxu0 }
 0x572   : > { %3684 = vst.msk [vmem:[%s6623_s16 + $0xe8] sm:$0xff] %vm3654_vm15, %v3641_v0  ;;  %v3636_v14 = vadd.f32 %v6617_v1, %v3635_v32 }
 0x573   : > { %v4159_v7 = vpop.f32.mrf.mxu0 }
 0x574   : > { %3683 = vst.msk [vmem:[%s6623_s16 + $0xe0] sm:$0xff] %vm3654_vm15, %v3636_v14  ;;  %v3651_v59 = vadd.f32 %v4159_v7, %v6617_v1 }
 0x575   : > { %v3645_v28 = vpop.f32.mrf.mxu0 }
 0x576   : > { %3686 = vst.msk [vmem:[%s6623_s16 + $0xf8] sm:$0xff] %vm3654_vm15, %v3651_v59  ;;  %v3646_v26 = vadd.f32 %v6617_v1, %v3645_v28 }
 0x578   : > { %3685 = vst.msk [vmem:[%s6623_s16 + $0xf0] sm:$0xff] %vm3654_vm15, %v3646_v26 }
 0x579 PF: > { %s28_s29 = sadd.s32 1, %s5009_s29  }
 0x57a   : > { %p25_p4 = scmp.ge.s32.totalorder %s28_s29, 4  }
 0x57c   :  { %27 = sbr.rel (!%p25_p4) target bundleno = 3 (0x3), region = 111 }

</bundles_post_ra>
